<compile_context>
chip_gen: v5e
topology: v5e:2x2
jax: 0.10.0
libtpu: 0.0.40
codegen_flags: <defaults>
</compile_context>

<pallas_src>
import math

import jax
import jax.numpy as jnp
from jax import lax
from jax.experimental import pallas as pl

# ----------------------------- configuration -----------------------------
IN_DIM = 16
HIDDEN = 32
OUT_DIM = 32
NUM_HEADS = 4
HEAD_DIM = HIDDEN // NUM_HEADS

N_POINTS = 64          # N
M_NODES = 16           # M
K_NEIGHBORS = 8        # K  (M*K = 128 -> exactly one lane row)

SIGMA_D = 0.2
SIGMA_A = 15.0
FACTOR_A = 180.0 / (SIGMA_A * math.pi)
LN_EPS = 1e-5

# transposed-rhs contraction (A @ B^T), as used by the TPU flash-attention kernel
_TRANS_B = (((1,), (1,)), ((), ()))


# ------------------------------- kernel ----------------------------------
def _fused_kernel(ppf_ref, gidx_ref, nidx_ref, featsT_ref,
                  winT_ref, wdT_ref, waT_ref, wkpvT_ref, wqT_ref,
                  wlin_ref, wout_ref, colb_ref, rowb_ref, bout_ref,
                  out_ref):
    f32 = jnp.float32
    in_dim, n = featsT_ref.shape
    d = winT_ref.shape[0]
    mk = gidx_ref.shape[1]
    m = nidx_ref.shape[1]
    k = mk // m
    h = NUM_HEADS
    c = d // h

    # ---- 0/1 helper matrices built from iota (no data movement, MXU-friendly) ----
    def band(shape, fine_axis, coarse_axis, group):
        fine = lax.broadcasted_iota(jnp.int32, shape, fine_axis)
        coarse = lax.broadcasted_iota(jnp.int32, shape, coarse_axis)
        lo = coarse * group
        return jnp.logical_and(fine >= lo, fine < lo + group).astype(f32)

    expand = band((m, mk), 1, 0, k)      # expand[m, mk]  = 1  iff  mk // K == m
    expandT = band((mk, m), 0, 1, k)
    hsel = band((h, d), 1, 0, c)         # hsel[h, d]     = 1  iff  d // c == h
    hselT = band((d, h), 0, 1, c)
    eye_m = (lax.broadcasted_iota(jnp.int32, (m, m), 0)
             == lax.broadcasted_iota(jnp.int32, (m, m), 1)).astype(f32)

    # ---- packed biases (item 9) ----
    colb = colb_ref[...]                 # (2D, 4)
    bin_col = colb[:d, 0:1]
    emb_bcol = colb[:d, 1:2]             # bd + ba
    bq_col = colb[:d, 2:3]
    bkpv_col = colb[:, 3:4]              # [bk + bp ; bv]
    rowb = rowb_ref[...]                 # (3, D)
    blin_row = rowb[0:1, :]
    gamma = rowb[1:2, :]
    beta = rowb[2:3, :]

    # ---- 1) in_proj  (features on sublanes, points on lanes) ----
    feats_hT = jnp.dot(winT_ref[...], featsT_ref[...],
                       preferred_element_type=f32) + bin_col        # (D, N)

    # ---- 2) in-kernel gathers as one-hot MXU matmuls ----
    oh_kvT = (gidx_ref[...] ==
              lax.broadcasted_iota(jnp.int32, (n, mk), 0)).astype(f32)   # (N, MK)
    kv_inT = jnp.dot(feats_hT, oh_kvT, preferred_element_type=f32)       # (D, MK)
    oh_qT = (nidx_ref[...] ==
             lax.broadcasted_iota(jnp.int32, (n, m), 0)).astype(f32)     # (N, M)
    q_inT = jnp.dot(feats_hT, oh_qT, preferred_element_type=f32)         # (D, M)

    # ---- 3) PPF structural embedding (lane-dense sinusoid, batched angle matmul) ----
    ppf = ppf_ref[...]                                                   # (4, MK)
    j_col = lax.broadcasted_iota(jnp.int32, (d // 2, 1), 0).astype(f32)
    div_col = jnp.exp(j_col * (-2.0 * math.log(10000.0) / d))            # (D/2, 1)

    def sincos_t(row):                   # row: (1, MK) scaled indices
        om = div_col * row                                               # (D/2, MK)
        # sin/cos stacked along sublanes -> matches the row-permuted Wd/Wa
        return jnp.concatenate([jnp.sin(om), jnp.cos(om)], axis=0)       # (D, MK)

    s_dist = sincos_t(ppf[3:4, :] * (1.0 / SIGMA_D))                     # (D, MK)
    s_ang = jnp.concatenate([sincos_t(ppf[0:1, :] * FACTOR_A),
                             sincos_t(ppf[1:2, :] * FACTOR_A),
                             sincos_t(ppf[2:3, :] * FACTOR_A)], axis=1)  # (D, 3*MK)

    d_projT = jnp.dot(wdT_ref[...], s_dist, preferred_element_type=f32)  # (D, MK)
    a_projT = jnp.dot(waT_ref[...], s_ang, preferred_element_type=f32)   # (D, 3*MK)
    a_redT = jnp.maximum(jnp.maximum(a_projT[:, :mk], a_projT[:, mk:2 * mk]),
                         a_projT[:, 2 * mk:])
    posT = d_projT + a_redT + emb_bcol                                   # (D, MK)

    # ---- 4) merged k / p / v projection: one (2D,2D)@(2D,MK) matmul ----
    kvpos = jnp.concatenate([kv_inT, posT], axis=0)                      # (2D, MK)
    kpv = jnp.dot(wkpvT_ref[...], kvpos,
                  preferred_element_type=f32) + bkpv_col                 # (2D, MK)
    kpT = kpv[:d, :]                     # (k + p) transposed             (D, MK)
    vvT = kpv[d:, :]                     # v transposed                   (D, MK)

    # ---- 5) multi-head RPE attention, all heads at once ----
    qT = jnp.dot(wqT_ref[...], q_inT, preferred_element_type=f32) + bq_col   # (D, M)
    qeT = jnp.dot(qT, expand, preferred_element_type=f32)                # (D, MK)
    scoresT = jnp.dot(hsel, qeT * kpT,
                      preferred_element_type=f32) * (1.0 / math.sqrt(c))  # (H, MK)

    # Softmax over each node's K neighbours. Subtracting the per-head (row) max is
    # mathematically exact for the per-group softmax and keeps exp() in range.
    row_max = jnp.max(scoresT, axis=1, keepdims=True)                    # (H, 1)
    ex = jnp.exp(scoresT - row_max)                                      # (H, MK)
    seg_sum = jnp.dot(ex, expandT, preferred_element_type=f32)           # (H, M)
    denomT = jnp.dot(seg_sum, expand, preferred_element_type=f32)        # (H, MK)
    attnT = ex * pl.reciprocal(denomT, approx=True)                      # (H, MK)

    attn_fT = jnp.dot(hselT, attnT, preferred_element_type=f32)          # (D, MK)
    weightedT = attn_fT * vvT                                            # (D, MK)

    # back to node-major (row) layout via transposed-rhs contractions
    hid = lax.dot_general(expand, weightedT, _TRANS_B,
                          preferred_element_type=f32)                    # (M, D)
    q_in = lax.dot_general(eye_m, q_inT, _TRANS_B,
                           preferred_element_type=f32)                   # (M, D)

    # ---- 6) output linear + residual + LayerNorm + out_proj ----
    hid2 = jnp.dot(hid, wlin_ref[...], preferred_element_type=f32) + blin_row
    res = hid2 + q_in
    mu = jnp.mean(res, axis=-1, keepdims=True)
    var = jnp.mean((res - mu) ** 2, axis=-1, keepdims=True)
    normed = (res - mu) * lax.rsqrt(var + LN_EPS) * gamma + beta
    out_ref[...] = jnp.dot(normed, wout_ref[...],
                           preferred_element_type=f32) + bout_ref[...]


# ------------------------------ wrapper -----------------------------------
def local_ppf_transformer(feats, node_idx, group_idx, ppfs, params):
    n, in_dim = feats.shape
    m, k = group_idx.shape
    mk = m * k
    d = HIDDEN
    out_dim = params["wout"].shape[1]
    f32 = jnp.float32

    # row permutation compensating [sin..., cos...] vs the interleaved PyTorch order
    perm = jnp.concatenate([jnp.arange(0, d, 2), jnp.arange(1, d, 2)])
    wd_t = params["wd"][perm].T.astype(f32)                      # (D, D)
    wa_t = params["wa"][perm].T.astype(f32)                      # (D, D)

    # merged k/p/v weight block:  [kp ; v] = W_kpv @ [kv_in ; pos]
    w_kpv_t = jnp.concatenate([
        jnp.concatenate([params["wk"].T, params["wp"].T], axis=1),
        jnp.concatenate([params["wv"].T, jnp.zeros((d, d), f32)], axis=1)],
        axis=0).astype(f32)                                      # (2D, 2D)

    # packed column biases (bin | bd+ba | bq | [bk+bp ; bv])
    colb = jnp.zeros((2 * d, 4), f32)
    colb = colb.at[:d, 0].set(params["bin"].astype(f32))
    colb = colb.at[:d, 1].set((params["bd"] + params["ba"]).astype(f32))
    colb = colb.at[:d, 2].set(params["bq"].astype(f32))
    colb = colb.at[:, 3].set(jnp.concatenate(
        [params["bk"] + params["bp"], params["bv"]]).astype(f32))
    # packed row vectors (blin | gamma | beta)
    rowb = jnp.stack([params["blin"], params["gamma"], params["beta"]],
                     axis=0).astype(f32)                         # (3, D)

    out = pl.pallas_call(
        _fused_kernel,
        out_shape=jax.ShapeDtypeStruct((m, out_dim), f32),
    )(
        ppfs.reshape(mk, 4).T.astype(f32),                       # (4, MK)   lane-dense ppfs
        group_idx.reshape(1, mk).astype(jnp.int32),              # (1, MK)
        node_idx.reshape(1, m).astype(jnp.int32),                # (1, M)
        feats.T.astype(f32),                                     # (in_dim, N)
        params["win"].T.astype(f32),                             # (D, in_dim)
        wd_t, wa_t, w_kpv_t,
        params["wq"].T.astype(f32),                              # (D, D)
        params["wlin"].astype(f32),                              # (D, D)
        params["wout"].astype(f32),                              # (D, out_dim)
        colb, rowb,
        params["bout"].reshape(1, out_dim).astype(f32),
    )
    return out


# ------------------ pure-JAX reference (PyTorch semantics) ------------------
def _sinusoidal_ref(indices, d_model):
    div_indices = jnp.arange(0, d_model, 2, dtype=jnp.float32)
    div_term = jnp.exp(div_indices * (-math.log(10000.0) / d_model))
    omegas = indices[..., None] * div_term
    emb = jnp.stack([jnp.sin(omegas), jnp.cos(omegas)], axis=-1)   # interleaved
    return emb.reshape(indices.shape + (d_model,))


def reference_forward(feats, node_idx, group_idx, ppfs, params):
    m, k = group_idx.shape
    d, h, c = HIDDEN, NUM_HEADS, HEAD_DIM
    d_emb = _sinusoidal_ref(ppfs[..., 3] / SIGMA_D, d) @ params["wd"] + params["bd"]
    a_emb = _sinusoidal_ref(ppfs[..., :3] * FACTOR_A, d) @ params["wa"] + params["ba"]
    pos = d_emb + a_emb.max(axis=2)
    x = feats @ params["win"] + params["bin"]
    q = (x @ params["wq"] + params["bq"])[node_idx].reshape(m, h, c)
    kk = (x @ params["wk"] + params["bk"])[group_idx].reshape(m, k, h, c)
    vv = (x @ params["wv"] + params["bv"])[group_idx].reshape(m, k, h, c)
    pp = (pos @ params["wp"] + params["bp"]).reshape(m, k, h, c)
    scores = (jnp.einsum("mhc,mkhc->mhk", q, kk)
              + jnp.einsum("mhc,mkhc->mhk", q, pp)) / math.sqrt(c)
    attn = jax.nn.softmax(scores, axis=-1)
    hidden = jnp.einsum("mhk,mkhc->mhc", attn, vv).reshape(m, d)
    hidden = hidden @ params["wlin"] + params["blin"]
    res = hidden + x[node_idx]
    mu = res.mean(-1, keepdims=True)
    var = ((res - mu) ** 2).mean(-1, keepdims=True)
    normed = (res - mu) / jnp.sqrt(var + LN_EPS) * params["gamma"] + params["beta"]
    return normed @ params["wout"] + params["bout"]


# ------------------------------ params / main ------------------------------
def init_params(key):
    ks = jax.random.split(key, 12)

    def lin(k_, fi, fo):
        kw, kb = jax.random.split(k_)
        w = jax.random.normal(kw, (fi, fo), jnp.float32) * (1.0 / math.sqrt(fi))
        b = jax.random.normal(kb, (fo,), jnp.float32) * 0.01
        return w, b

    p = {}
    p["win"], p["bin"] = lin(ks[0], IN_DIM, HIDDEN)      # in_proj
    p["wd"], p["bd"] = lin(ks[1], HIDDEN, HIDDEN)        # embedding.proj_d
    p["wa"], p["ba"] = lin(ks[2], HIDDEN, HIDDEN)        # embedding.proj_a
    p["wq"], p["bq"] = lin(ks[3], HIDDEN, HIDDEN)
    p["wk"], p["bk"] = lin(ks[4], HIDDEN, HIDDEN)
    p["wv"], p["bv"] = lin(ks[5], HIDDEN, HIDDEN)
    p["wp"], p["bp"] = lin(ks[6], HIDDEN, HIDDEN)
    p["wlin"], p["blin"] = lin(ks[7], HIDDEN, HIDDEN)
    p["gamma"] = jnp.ones((HIDDEN,), jnp.float32)        # LayerNorm affine
    p["beta"] = jnp.zeros((HIDDEN,), jnp.float32)
    p["wout"], p["bout"] = lin(ks[8], HIDDEN, OUT_DIM)   # out_proj
    return p


if __name__ == "__main__":
    key = jax.random.PRNGKey(0)
    kf, kn, kg, ka, kd_, kp = jax.random.split(key, 6)

    feats = jax.random.normal(kf, (N_POINTS, IN_DIM), jnp.float32)
    node_idx = jax.random.randint(kn, (M_NODES,), 0, N_POINTS, dtype=jnp.int32)
    group_idx = jax.random.randint(kg, (M_NODES, K_NEIGHBORS), 0, N_POINTS,
                                   dtype=jnp.int32)
    ppf_ang = jax.random.uniform(ka, (M_NODES, K_NEIGHBORS, 3), jnp.float32,
                                 0.0, math.pi)
    ppf_dist = jax.random.uniform(kd_, (M_NODES, K_NEIGHBORS, 1), jnp.float32,
                                  0.0, 1.0)
    ppfs = jnp.concatenate([ppf_ang, ppf_dist], axis=-1)

    params = init_params(kp)

    out = local_ppf_transformer(feats, node_idx, group_idx, ppfs, params)
    out = jax.block_until_ready(out)

    ref = jax.block_until_ready(reference_forward(feats, node_idx, group_idx,
                                                  ppfs, params))
    max_err = float(jnp.max(jnp.abs(out - ref)))
    assert out.shape == (M_NODES, OUT_DIM), out.shape
    # Tolerance accounts for pl.reciprocal(approx=True) in the softmax denominator
    # (with approx=False the kernel matches the reference to <1e-3).
    assert max_err < 5e-3, f"mismatch vs reference: {max_err}"
    print("KERNEL_OK")
</pallas_src>

<mosaic_0001>
module attributes {stable_mosaic.version = 11 : i64} {
  func.func @_fused_kernel(%arg0: memref<4x128xf32, #tpu.memory_space<vmem>>, %arg1: memref<1x128xi32, #tpu.memory_space<vmem>>, %arg2: memref<1x16xi32, #tpu.memory_space<vmem>>, %arg3: memref<16x64xf32, #tpu.memory_space<vmem>>, %arg4: memref<32x16xf32, #tpu.memory_space<vmem>>, %arg5: memref<32x32xf32, #tpu.memory_space<vmem>>, %arg6: memref<32x32xf32, #tpu.memory_space<vmem>>, %arg7: memref<64x64xf32, #tpu.memory_space<vmem>>, %arg8: memref<32x32xf32, #tpu.memory_space<vmem>>, %arg9: memref<32x32xf32, #tpu.memory_space<vmem>>, %arg10: memref<32x32xf32, #tpu.memory_space<vmem>>, %arg11: memref<64x4xf32, #tpu.memory_space<vmem>>, %arg12: memref<3x32xf32, #tpu.memory_space<vmem>>, %arg13: memref<1x32xf32, #tpu.memory_space<vmem>>, %arg14: memref<16x32xf32, #tpu.memory_space<vmem>>) attributes {dimension_semantics = [], scalar_prefetch = 0 : i64, scratch_operands = 0 : i64, tpu.core_type = #tpu.core_type<tc>} {
    %0 = tpu.iota {dimensions = array<i32: 1>} : vector<16x128xi32>
    %1 = tpu.iota {dimensions = array<i32: 0>} : vector<16x128xi32>
    %c8_i32 = arith.constant 8 : i32
    %2 = vector.broadcast %c8_i32 : i32 to vector<16x128xi32>
    %3 = arith.muli %1, %2 : vector<16x128xi32>
    %4 = arith.cmpi sge, %0, %3 : vector<16x128xi32>
    %c8_i32_0 = arith.constant 8 : i32
    %5 = vector.broadcast %c8_i32_0 : i32 to vector<16x128xi32>
    %6 = arith.addi %3, %5 : vector<16x128xi32>
    %7 = arith.cmpi slt, %0, %6 : vector<16x128xi32>
    %8 = arith.andi %4, %7 : vector<16x128xi1>
    %9 = arith.extui %8 : vector<16x128xi1> to vector<16x128xi32>
    %10 = arith.sitofp %9 : vector<16x128xi32> to vector<16x128xf32>
    %11 = tpu.iota {dimensions = array<i32: 0>} : vector<128x16xi32>
    %12 = tpu.iota {dimensions = array<i32: 1>} : vector<128x16xi32>
    %c8_i32_1 = arith.constant 8 : i32
    %13 = vector.broadcast %c8_i32_1 : i32 to vector<128x16xi32>
    %14 = arith.muli %12, %13 : vector<128x16xi32>
    %15 = arith.cmpi sge, %11, %14 : vector<128x16xi32>
    %c8_i32_2 = arith.constant 8 : i32
    %16 = vector.broadcast %c8_i32_2 : i32 to vector<128x16xi32>
    %17 = arith.addi %14, %16 : vector<128x16xi32>
    %18 = arith.cmpi slt, %11, %17 : vector<128x16xi32>
    %19 = arith.andi %15, %18 : vector<128x16xi1>
    %20 = arith.extui %19 : vector<128x16xi1> to vector<128x16xi32>
    %21 = arith.sitofp %20 : vector<128x16xi32> to vector<128x16xf32>
    %22 = tpu.iota {dimensions = array<i32: 1>} : vector<4x32xi32>
    %23 = tpu.iota {dimensions = array<i32: 0>} : vector<4x32xi32>
    %c8_i32_3 = arith.constant 8 : i32
    %24 = vector.broadcast %c8_i32_3 : i32 to vector<4x32xi32>
    %25 = arith.muli %23, %24 : vector<4x32xi32>
    %26 = arith.cmpi sge, %22, %25 : vector<4x32xi32>
    %c8_i32_4 = arith.constant 8 : i32
    %27 = vector.broadcast %c8_i32_4 : i32 to vector<4x32xi32>
    %28 = arith.addi %25, %27 : vector<4x32xi32>
    %29 = arith.cmpi slt, %22, %28 : vector<4x32xi32>
    %30 = arith.andi %26, %29 : vector<4x32xi1>
    %31 = arith.extui %30 : vector<4x32xi1> to vector<4x32xi32>
    %32 = arith.sitofp %31 : vector<4x32xi32> to vector<4x32xf32>
    %33 = tpu.iota {dimensions = array<i32: 0>} : vector<32x4xi32>
    %34 = tpu.iota {dimensions = array<i32: 1>} : vector<32x4xi32>
    %c8_i32_5 = arith.constant 8 : i32
    %35 = vector.broadcast %c8_i32_5 : i32 to vector<32x4xi32>
    %36 = arith.muli %34, %35 : vector<32x4xi32>
    %37 = arith.cmpi sge, %33, %36 : vector<32x4xi32>
    %c8_i32_6 = arith.constant 8 : i32
    %38 = vector.broadcast %c8_i32_6 : i32 to vector<32x4xi32>
    %39 = arith.addi %36, %38 : vector<32x4xi32>
    %40 = arith.cmpi slt, %33, %39 : vector<32x4xi32>
    %41 = arith.andi %37, %40 : vector<32x4xi1>
    %42 = arith.extui %41 : vector<32x4xi1> to vector<32x4xi32>
    %43 = arith.sitofp %42 : vector<32x4xi32> to vector<32x4xf32>
    %44 = tpu.iota {dimensions = array<i32: 0>} : vector<16x16xi32>
    %45 = tpu.iota {dimensions = array<i32: 1>} : vector<16x16xi32>
    %46 = arith.cmpi eq, %44, %45 : vector<16x16xi32>
    %47 = arith.extui %46 : vector<16x16xi1> to vector<16x16xi32>
    %48 = arith.sitofp %47 : vector<16x16xi32> to vector<16x16xf32>
    %c0 = arith.constant 0 : index
    %c0_7 = arith.constant 0 : index
    %49 = vector.load %arg11[%c0, %c0_7] : memref<64x4xf32, #tpu.memory_space<vmem>>, vector<64x4xf32>
    %50 = vector.extract_strided_slice %49 {offsets = [0, 0], sizes = [32, 1], strides = [1, 1]} : vector<64x4xf32> to vector<32x1xf32>
    %51 = vector.extract_strided_slice %49 {offsets = [0, 1], sizes = [32, 1], strides = [1, 1]} : vector<64x4xf32> to vector<32x1xf32>
    %52 = vector.extract_strided_slice %49 {offsets = [0, 2], sizes = [32, 1], strides = [1, 1]} : vector<64x4xf32> to vector<32x1xf32>
    %53 = vector.extract_strided_slice %49 {offsets = [0, 3], sizes = [64, 1], strides = [1, 1]} : vector<64x4xf32> to vector<64x1xf32>
    %c0_8 = arith.constant 0 : index
    %c0_9 = arith.constant 0 : index
    %54 = vector.load %arg12[%c0_8, %c0_9] : memref<3x32xf32, #tpu.memory_space<vmem>>, vector<3x32xf32>
    %55 = vector.extract_strided_slice %54 {offsets = [0, 0], sizes = [1, 32], strides = [1, 1]} : vector<3x32xf32> to vector<1x32xf32>
    %56 = vector.extract_strided_slice %54 {offsets = [1, 0], sizes = [1, 32], strides = [1, 1]} : vector<3x32xf32> to vector<1x32xf32>
    %57 = vector.extract_strided_slice %54 {offsets = [2, 0], sizes = [1, 32], strides = [1, 1]} : vector<3x32xf32> to vector<1x32xf32>
    %c0_10 = arith.constant 0 : index
    %c0_11 = arith.constant 0 : index
    %58 = vector.load %arg4[%c0_10, %c0_11] : memref<32x16xf32, #tpu.memory_space<vmem>>, vector<32x16xf32>
    %c0_12 = arith.constant 0 : index
    %c0_13 = arith.constant 0 : index
    %59 = vector.load %arg3[%c0_12, %c0_13] : memref<16x64xf32, #tpu.memory_space<vmem>>, vector<16x64xf32>
    %cst = arith.constant dense<0.000000e+00> : vector<32x64xf32>
    %60 = tpu.matmul %58, %59, %cst {dimension_numbers = #tpu.dot_dimension_numbers<[1], [0], [0], [1], [0, 0, 1, 1], [], []>} : vector<32x16xf32>, vector<16x64xf32>, vector<32x64xf32> -> vector<32x64xf32>
    %61 = vector.broadcast %50 : vector<32x1xf32> to vector<32x64xf32>
    %62 = arith.addf %60, %61 : vector<32x64xf32>
    %c0_14 = arith.constant 0 : index
    %c0_15 = arith.constant 0 : index
    %63 = vector.load %arg1[%c0_14, %c0_15] : memref<1x128xi32, #tpu.memory_space<vmem>>, vector<1x128xi32>
    %64 = tpu.iota {dimensions = array<i32: 0>} : vector<64x128xi32>
    %65 = vector.broadcast %63 : vector<1x128xi32> to vector<64x128xi32>
    %66 = arith.cmpi eq, %65, %64 : vector<64x128xi32>
    %67 = arith.extui %66 : vector<64x128xi1> to vector<64x128xi32>
    %68 = arith.sitofp %67 : vector<64x128xi32> to vector<64x128xf32>
    %cst_16 = arith.constant dense<0.000000e+00> : vector<32x128xf32>
    %69 = tpu.matmul %62, %68, %cst_16 {dimension_numbers = #tpu.dot_dimension_numbers<[1], [0], [0], [1], [0, 0, 1, 1], [], []>} : vector<32x64xf32>, vector<64x128xf32>, vector<32x128xf32> -> vector<32x128xf32>
    %c0_17 = arith.constant 0 : index
    %c0_18 = arith.constant 0 : index
    %70 = vector.load %arg2[%c0_17, %c0_18] : memref<1x16xi32, #tpu.memory_space<vmem>>, vector<1x16xi32>
    %71 = tpu.iota {dimensions = array<i32: 0>} : vector<64x16xi32>
    %72 = vector.broadcast %70 : vector<1x16xi32> to vector<64x16xi32>
    %73 = arith.cmpi eq, %72, %71 : vector<64x16xi32>
    %74 = arith.extui %73 : vector<64x16xi1> to vector<64x16xi32>
    %75 = arith.sitofp %74 : vector<64x16xi32> to vector<64x16xf32>
    %cst_19 = arith.constant dense<0.000000e+00> : vector<32x16xf32>
    %76 = tpu.matmul %62, %75, %cst_19 {dimension_numbers = #tpu.dot_dimension_numbers<[1], [0], [0], [1], [0, 0, 1, 1], [], []>} : vector<32x64xf32>, vector<64x16xf32>, vector<32x16xf32> -> vector<32x16xf32>
    %c0_20 = arith.constant 0 : index
    %c0_21 = arith.constant 0 : index
    %77 = vector.load %arg0[%c0_20, %c0_21] : memref<4x128xf32, #tpu.memory_space<vmem>>, vector<4x128xf32>
    %78 = tpu.iota {dimensions = array<i32: 0>} : vector<16x1xi32>
    %79 = arith.sitofp %78 : vector<16x1xi32> to vector<16x1xf32>
    %cst_22 = arith.constant -0.575646281 : f32
    %80 = vector.broadcast %cst_22 : f32 to vector<16x1xf32>
    %81 = arith.mulf %79, %80 : vector<16x1xf32>
    %82 = math.exp %81 : vector<16x1xf32>
    %83 = vector.extract_strided_slice %77 {offsets = [3, 0], sizes = [1, 128], strides = [1, 1]} : vector<4x128xf32> to vector<1x128xf32>
    %cst_23 = arith.constant 5.000000e+00 : f32
    %84 = vector.broadcast %cst_23 : f32 to vector<1x128xf32>
    %85 = arith.mulf %83, %84 : vector<1x128xf32>
    %86 = vector.broadcast %82 : vector<16x1xf32> to vector<16x128xf32>
    %87 = vector.broadcast %85 : vector<1x128xf32> to vector<16x128xf32>
    %88 = arith.mulf %86, %87 : vector<16x128xf32>
    %89 = math.sin %88 : vector<16x128xf32>
    %90 = math.cos %88 : vector<16x128xf32>
    %91 = tpu.concatenate %89, %90 in 0 : vector<16x128xf32>, vector<16x128xf32> -> vector<32x128xf32>
    %92 = vector.extract_strided_slice %77 {offsets = [0, 0], sizes = [1, 128], strides = [1, 1]} : vector<4x128xf32> to vector<1x128xf32>
    %cst_24 = arith.constant 3.8197186 : f32
    %93 = vector.broadcast %cst_24 : f32 to vector<1x128xf32>
    %94 = arith.mulf %92, %93 : vector<1x128xf32>
    %95 = vector.broadcast %82 : vector<16x1xf32> to vector<16x128xf32>
    %96 = vector.broadcast %94 : vector<1x128xf32> to vector<16x128xf32>
    %97 = arith.mulf %95, %96 : vector<16x128xf32>
    %98 = math.sin %97 : vector<16x128xf32>
    %99 = math.cos %97 : vector<16x128xf32>
    %100 = tpu.concatenate %98, %99 in 0 : vector<16x128xf32>, vector<16x128xf32> -> vector<32x128xf32>
    %101 = vector.extract_strided_slice %77 {offsets = [1, 0], sizes = [1, 128], strides = [1, 1]} : vector<4x128xf32> to vector<1x128xf32>
    %cst_25 = arith.constant 3.8197186 : f32
    %102 = vector.broadcast %cst_25 : f32 to vector<1x128xf32>
    %103 = arith.mulf %101, %102 : vector<1x128xf32>
    %104 = vector.broadcast %82 : vector<16x1xf32> to vector<16x128xf32>
    %105 = vector.broadcast %103 : vector<1x128xf32> to vector<16x128xf32>
    %106 = arith.mulf %104, %105 : vector<16x128xf32>
    %107 = math.sin %106 : vector<16x128xf32>
    %108 = math.cos %106 : vector<16x128xf32>
    %109 = tpu.concatenate %107, %108 in 0 : vector<16x128xf32>, vector<16x128xf32> -> vector<32x128xf32>
    %110 = vector.extract_strided_slice %77 {offsets = [2, 0], sizes = [1, 128], strides = [1, 1]} : vector<4x128xf32> to vector<1x128xf32>
    %cst_26 = arith.constant 3.8197186 : f32
    %111 = vector.broadcast %cst_26 : f32 to vector<1x128xf32>
    %112 = arith.mulf %110, %111 : vector<1x128xf32>
    %113 = vector.broadcast %82 : vector<16x1xf32> to vector<16x128xf32>
    %114 = vector.broadcast %112 : vector<1x128xf32> to vector<16x128xf32>
    %115 = arith.mulf %113, %114 : vector<16x128xf32>
    %116 = math.sin %115 : vector<16x128xf32>
    %117 = math.cos %115 : vector<16x128xf32>
    %118 = tpu.concatenate %116, %117 in 0 : vector<16x128xf32>, vector<16x128xf32> -> vector<32x128xf32>
    %119 = tpu.concatenate %100, %109, %118 in 1 : vector<32x128xf32>, vector<32x128xf32>, vector<32x128xf32> -> vector<32x384xf32>
    %c0_27 = arith.constant 0 : index
    %c0_28 = arith.constant 0 : index
    %120 = vector.load %arg5[%c0_27, %c0_28] : memref<32x32xf32, #tpu.memory_space<vmem>>, vector<32x32xf32>
    %cst_29 = arith.constant dense<0.000000e+00> : vector<32x128xf32>
    %121 = tpu.matmul %120, %91, %cst_29 {dimension_numbers = #tpu.dot_dimension_numbers<[1], [0], [0], [1], [0, 0, 1, 1], [], []>} : vector<32x32xf32>, vector<32x128xf32>, vector<32x128xf32> -> vector<32x128xf32>
    %c0_30 = arith.constant 0 : index
    %c0_31 = arith.constant 0 : index
    %122 = vector.load %arg6[%c0_30, %c0_31] : memref<32x32xf32, #tpu.memory_space<vmem>>, vector<32x32xf32>
    %cst_32 = arith.constant dense<0.000000e+00> : vector<32x384xf32>
    %123 = tpu.matmul %122, %119, %cst_32 {dimension_numbers = #tpu.dot_dimension_numbers<[1], [0], [0], [1], [0, 0, 1, 1], [], []>} : vector<32x32xf32>, vector<32x384xf32>, vector<32x384xf32> -> vector<32x384xf32>
    %124 = vector.extract_strided_slice %123 {offsets = [0, 0], sizes = [32, 128], strides = [1, 1]} : vector<32x384xf32> to vector<32x128xf32>
    %125 = vector.extract_strided_slice %123 {offsets = [0, 128], sizes = [32, 128], strides = [1, 1]} : vector<32x384xf32> to vector<32x128xf32>
    %126 = arith.maximumf %124, %125 : vector<32x128xf32>
    %127 = vector.extract_strided_slice %123 {offsets = [0, 256], sizes = [32, 128], strides = [1, 1]} : vector<32x384xf32> to vector<32x128xf32>
    %128 = arith.maximumf %126, %127 : vector<32x128xf32>
    %129 = arith.addf %121, %128 : vector<32x128xf32>
    %130 = vector.broadcast %51 : vector<32x1xf32> to vector<32x128xf32>
    %131 = arith.addf %129, %130 : vector<32x128xf32>
    %132 = tpu.concatenate %69, %131 in 0 : vector<32x128xf32>, vector<32x128xf32> -> vector<64x128xf32>
    %c0_33 = arith.constant 0 : index
    %c0_34 = arith.constant 0 : index
    %133 = vector.load %arg7[%c0_33, %c0_34] : memref<64x64xf32, #tpu.memory_space<vmem>>, vector<64x64xf32>
    %cst_35 = arith.constant dense<0.000000e+00> : vector<64x128xf32>
    %134 = tpu.matmul %133, %132, %cst_35 {dimension_numbers = #tpu.dot_dimension_numbers<[1], [0], [0], [1], [0, 0, 1, 1], [], []>} : vector<64x64xf32>, vector<64x128xf32>, vector<64x128xf32> -> vector<64x128xf32>
    %135 = vector.broadcast %53 : vector<64x1xf32> to vector<64x128xf32>
    %136 = arith.addf %134, %135 : vector<64x128xf32>
    %137 = vector.extract_strided_slice %136 {offsets = [0, 0], sizes = [32, 128], strides = [1, 1]} : vector<64x128xf32> to vector<32x128xf32>
    %138 = vector.extract_strided_slice %136 {offsets = [32, 0], sizes = [32, 128], strides = [1, 1]} : vector<64x128xf32> to vector<32x128xf32>
    %c0_36 = arith.constant 0 : index
    %c0_37 = arith.constant 0 : index
    %139 = vector.load %arg8[%c0_36, %c0_37] : memref<32x32xf32, #tpu.memory_space<vmem>>, vector<32x32xf32>
    %cst_38 = arith.constant dense<0.000000e+00> : vector<32x16xf32>
    %140 = tpu.matmul %139, %76, %cst_38 {dimension_numbers = #tpu.dot_dimension_numbers<[1], [0], [0], [1], [0, 0, 1, 1], [], []>} : vector<32x32xf32>, vector<32x16xf32>, vector<32x16xf32> -> vector<32x16xf32>
    %141 = vector.broadcast %52 : vector<32x1xf32> to vector<32x16xf32>
    %142 = arith.addf %140, %141 : vector<32x16xf32>
    %cst_39 = arith.constant dense<0.000000e+00> : vector<32x128xf32>
    %143 = tpu.matmul %142, %10, %cst_39 {dimension_numbers = #tpu.dot_dimension_numbers<[1], [0], [0], [1], [0, 0, 1, 1], [], []>} : vector<32x16xf32>, vector<16x128xf32>, vector<32x128xf32> -> vector<32x128xf32>
    %144 = arith.mulf %143, %137 : vector<32x128xf32>
    %cst_40 = arith.constant dense<0.000000e+00> : vector<4x128xf32>
    %145 = tpu.matmul %32, %144, %cst_40 {dimension_numbers = #tpu.dot_dimension_numbers<[1], [0], [0], [1], [0, 0, 1, 1], [], []>} : vector<4x32xf32>, vector<32x128xf32>, vector<4x128xf32> -> vector<4x128xf32>
    %cst_41 = arith.constant 0.353553385 : f32
    %146 = vector.broadcast %cst_41 : f32 to vector<4x128xf32>
    %147 = arith.mulf %145, %146 : vector<4x128xf32>
    %cst_42 = arith.constant dense<0xFF800000> : vector<4xf32>
    %148 = vector.multi_reduction <maximumf>, %147, %cst_42 [1] : vector<4x128xf32> to vector<4xf32>
    %149 = vector.shape_cast %148 : vector<4xf32> to vector<4x1xf32>
    %150 = vector.broadcast %149 : vector<4x1xf32> to vector<4x128xf32>
    %151 = arith.subf %147, %150 : vector<4x128xf32>
    %152 = math.exp %151 : vector<4x128xf32>
    %cst_43 = arith.constant dense<0.000000e+00> : vector<4x16xf32>
    %153 = tpu.matmul %152, %21, %cst_43 {dimension_numbers = #tpu.dot_dimension_numbers<[1], [0], [0], [1], [0, 0, 1, 1], [], []>} : vector<4x128xf32>, vector<128x16xf32>, vector<4x16xf32> -> vector<4x16xf32>
    %cst_44 = arith.constant dense<0.000000e+00> : vector<4x128xf32>
    %154 = tpu.matmul %153, %10, %cst_44 {dimension_numbers = #tpu.dot_dimension_numbers<[1], [0], [0], [1], [0, 0, 1, 1], [], []>} : vector<4x16xf32>, vector<16x128xf32>, vector<4x128xf32> -> vector<4x128xf32>
    %155 = tpu.reciprocal %154 {approx = true} : vector<4x128xf32> -> vector<4x128xf32>
    %156 = arith.mulf %152, %155 : vector<4x128xf32>
    %cst_45 = arith.constant dense<0.000000e+00> : vector<32x128xf32>
    %157 = tpu.matmul %43, %156, %cst_45 {dimension_numbers = #tpu.dot_dimension_numbers<[1], [0], [0], [1], [0, 0, 1, 1], [], []>} : vector<32x4xf32>, vector<4x128xf32>, vector<32x128xf32> -> vector<32x128xf32>
    %158 = arith.mulf %157, %138 : vector<32x128xf32>
    %cst_46 = arith.constant dense<0.000000e+00> : vector<16x32xf32>
    %159 = tpu.matmul %10, %158, %cst_46 {dimension_numbers = #tpu.dot_dimension_numbers<[1], [1], [0], [0], [0, 0, 1, 0], [], []>} : vector<16x128xf32>, vector<32x128xf32>, vector<16x32xf32> -> vector<16x32xf32>
    %cst_47 = arith.constant dense<0.000000e+00> : vector<16x32xf32>
    %160 = tpu.matmul %48, %76, %cst_47 {dimension_numbers = #tpu.dot_dimension_numbers<[1], [1], [0], [0], [0, 0, 1, 0], [], []>} : vector<16x16xf32>, vector<32x16xf32>, vector<16x32xf32> -> vector<16x32xf32>
    %c0_48 = arith.constant 0 : index
    %c0_49 = arith.constant 0 : index
    %161 = vector.load %arg9[%c0_48, %c0_49] : memref<32x32xf32, #tpu.memory_space<vmem>>, vector<32x32xf32>
    %cst_50 = arith.constant dense<0.000000e+00> : vector<16x32xf32>
    %162 = tpu.matmul %159, %161, %cst_50 {dimension_numbers = #tpu.dot_dimension_numbers<[1], [0], [0], [1], [0, 0, 1, 1], [], []>} : vector<16x32xf32>, vector<32x32xf32>, vector<16x32xf32> -> vector<16x32xf32>
    %163 = vector.broadcast %55 : vector<1x32xf32> to vector<16x32xf32>
    %164 = arith.addf %162, %163 : vector<16x32xf32>
    %165 = arith.addf %164, %160 : vector<16x32xf32>
    %cst_51 = arith.constant dense<0.000000e+00> : vector<16xf32>
    %166 = vector.multi_reduction <add>, %165, %cst_51 [1] : vector<16x32xf32> to vector<16xf32>
    %167 = vector.shape_cast %166 : vector<16xf32> to vector<16x1xf32>
    %cst_52 = arith.constant 3.200000e+01 : f32
    %168 = vector.broadcast %cst_52 : f32 to vector<16x1xf32>
    %169 = arith.divf %167, %168 : vector<16x1xf32>
    %170 = vector.broadcast %169 : vector<16x1xf32> to vector<16x32xf32>
    %171 = arith.subf %165, %170 : vector<16x32xf32>
    %172 = arith.mulf %171, %171 : vector<16x32xf32>
    %cst_53 = arith.constant dense<0.000000e+00> : vector<16xf32>
    %173 = vector.multi_reduction <add>, %172, %cst_53 [1] : vector<16x32xf32> to vector<16xf32>
    %174 = vector.shape_cast %173 : vector<16xf32> to vector<16x1xf32>
    %cst_54 = arith.constant 3.200000e+01 : f32
    %175 = vector.broadcast %cst_54 : f32 to vector<16x1xf32>
    %176 = arith.divf %174, %175 : vector<16x1xf32>
    %177 = vector.broadcast %169 : vector<16x1xf32> to vector<16x32xf32>
    %178 = arith.subf %165, %177 : vector<16x32xf32>
    %cst_55 = arith.constant 9.99999974E-6 : f32
    %179 = vector.broadcast %cst_55 : f32 to vector<16x1xf32>
    %180 = arith.addf %176, %179 : vector<16x1xf32>
    %181 = math.rsqrt %180 : vector<16x1xf32>
    %182 = vector.broadcast %181 : vector<16x1xf32> to vector<16x32xf32>
    %183 = arith.mulf %178, %182 : vector<16x32xf32>
    %184 = vector.broadcast %56 : vector<1x32xf32> to vector<16x32xf32>
    %185 = arith.mulf %183, %184 : vector<16x32xf32>
    %186 = vector.broadcast %57 : vector<1x32xf32> to vector<16x32xf32>
    %187 = arith.addf %185, %186 : vector<16x32xf32>
    %c0_56 = arith.constant 0 : index
    %c0_57 = arith.constant 0 : index
    %188 = vector.load %arg10[%c0_56, %c0_57] : memref<32x32xf32, #tpu.memory_space<vmem>>, vector<32x32xf32>
    %cst_58 = arith.constant dense<0.000000e+00> : vector<16x32xf32>
    %189 = tpu.matmul %187, %188, %cst_58 {dimension_numbers = #tpu.dot_dimension_numbers<[1], [0], [0], [1], [0, 0, 1, 1], [], []>} : vector<16x32xf32>, vector<32x32xf32>, vector<16x32xf32> -> vector<16x32xf32>
    %c0_59 = arith.constant 0 : index
    %c0_60 = arith.constant 0 : index
    %190 = vector.load %arg13[%c0_59, %c0_60] : memref<1x32xf32, #tpu.memory_space<vmem>>, vector<1x32xf32>
    %191 = vector.broadcast %190 : vector<1x32xf32> to vector<16x32xf32>
    %192 = arith.addf %189, %191 : vector<16x32xf32>
    %c0_61 = arith.constant 0 : index
    %c0_62 = arith.constant 0 : index
    %193 = vector.load %arg14[%c0_61, %c0_62] : memref<16x32xf32, #tpu.memory_space<vmem>>, vector<16x32xf32>
    tpu.vector_store %arg14[%c0_61, %c0_62], %192 {strides = array<i32>} : memref<16x32xf32, #tpu.memory_space<vmem>>, vector<16x32xf32>,
    return
  }
}

</mosaic_0001>

<bundles_post_ra>
// kernel: tpu_custom_call.1
= control target key start
LH: loop header
LB: loop body
LE: loop exit
PB: predicated region body
PF: predicated region fallthrough
CT: control target
= control target key end

     0   :  { %19 = vsyncpa [#allocation3], 0  ;;  %s5749_s0 = inlined_call_operand.hbm [shape: f32[4,128], index: 0, kind: input, shape index: {}]   ;;  %s5750_s1 = inlined_call_operand.hbm [shape: s32[1,128], index: 1, kind: input, shape index: {}]   ;;  %s5751_s2 = inlined_call_operand.vmem [shape: s32[1,16], index: 2, kind: input, shape index: {}]   ;;  %s5752_s3 = inlined_call_operand.vmem [shape: f32[16,64], index: 3, kind: input, shape index: {}]   ;;  %s5753_s4 = inlined_call_operand.vmem [shape: f32[32,16], index: 4, kind: input, shape index: {}]   ;;  %s5754_s5 = inlined_call_operand.vmem [shape: f32[32,32], index: 5, kind: input, shape index: {}]   ;;  %s5755_s6 = inlined_call_operand.hbm [shape: f32[32,32], index: 6, kind: input, shape index: {}]   ;;  %s5756_s7 = inlined_call_operand.vmem [shape: f32[64,64], index: 7, kind: input, shape index: {}]   ;;  %s5757_s8 = inlined_call_operand.hbm [shape: f32[32,32], index: 8, kind: input, shape index: {}]   ;;  %s5758_s9 = inlined_call_operand.hbm [shape: f32[32,32], index: 9, kind: input, shape index: {}]   ;;  %s5759_s10 = inlined_call_operand.hbm [shape: f32[32,32], index: 10, kind: input, shape index: {}]   ;;  %s5760_s11 = inlined_call_operand.vmem [shape: f32[64,4], index: 11, kind: input, shape index: {}]   ;;  %s5761_s12 = inlined_call_operand.vmem [shape: f32[3,32], index: 12, kind: input, shape index: {}]   ;;  %s5762_s13 = inlined_call_operand.vmem [shape: f32[1,32], index: 13, kind: input, shape index: {}]   ;;  %s5763_s14 = inlined_call_operand.hbm [shape: f32[16,32], index: 14, kind: output, shape index: {}]  }
   0x1   :  { %20 = vsyncpa [#allocation6], 0 }
   0x2   :  { %21 = vsyncpa [#allocation9], 0 }
   0x3   :  { %22 = vsyncpa [#allocation12], 0  ;;  %s40_s15 = sshll.u32 %s5750_s1, 4  ;;  %s41_s15 = int_to_ptr.hbm [resolvable:$true] %s40_s15 }
   0x4   :  { %23 = vsyncpa [#allocation4], 0  ;;  %s4112_s16 = smov [#allocation5]   ;;  %s73_s20 = sshll.u32 %s5757_s8, 4  ;;  %s74_s20 = int_to_ptr.hbm [resolvable:$true] %s73_s20 }
   0x5   :  { %s42_s17 = sshll.u32 %s4112_s16, 4  ;;  %s4113_s21 = smov [#allocation8]   ;;  %s43_s17 = int_to_ptr.vmem [resolvable:$true] %s42_s17 }
   0x6   :  { %45 = dma.hbm_to_vmem [thread:$0]  %s41_s15, 16, %s43_s17, [#allocation6]  }
   0x7   :  { %s75_s22 = sshll.u32 %s4113_s21, 4  ;;  %s29_s25 = sshll.u32 %s5749_s0, 4  ;;  %s76_s22 = int_to_ptr.vmem [resolvable:$true] %s75_s22  ;;  %s30_s25 = int_to_ptr.hbm [resolvable:$true] %s29_s25 }
   0x8   :  { %s4114_s1 = smov 128   ;;  %s4115_s26 = smov 8  }
   0x9   :  { %81 = dma.hbm_to_vmem [thread:$0]  %s74_s20, 512, %s76_s22, [#allocation9], %s4114_s1, %s4114_s1, %s4115_s26  }
   0xa   :  { %s58_s29 = sshll.u32 %s5755_s6, 4  ;;  %s4116_s8 = smov [#allocation2]   ;;  %s59_s29 = int_to_ptr.hbm [resolvable:$true] %s58_s29 }
   0xb   :  { %s31_s30 = sshll.u32 %s4116_s8, 4  ;;  %s4117_s15 = smov [#allocation7]   ;;  %s32_s30 = int_to_ptr.vmem [resolvable:$true] %s31_s30 }
   0xc   :  { %34 = dma.hbm_to_vmem [thread:$0]  %s30_s25, 64, %s32_s30, [#allocation3]  }
   0xd   :  { %s60_s16 = sshll.u32 %s4117_s15, 4  ;;  %s86_s18 = sshll.u32 %s5758_s9, 4  ;;  %s61_s16 = int_to_ptr.vmem [resolvable:$true] %s60_s16  ;;  %s87_s18 = int_to_ptr.hbm [resolvable:$true] %s86_s18 }
   0xe   :  { %66 = dma.hbm_to_vmem [thread:$0]  %s59_s29, 512, %s61_s16, [#allocation6], %s4114_s1, %s4114_s1, %s4115_s26  }
   0xf   :  { %s99_s6 = sshll.u32 %s5759_s10, 4  ;;  %s4118_s21 = smov [#allocation10]   ;;  %s100_s6 = int_to_ptr.hbm [resolvable:$true] %s99_s6 }
  0x10   :  { %s88_s22 = sshll.u32 %s4118_s21, 4  ;;  %s4119_s23 = smov [#allocation11]   ;;  %s89_s22 = int_to_ptr.vmem [resolvable:$true] %s88_s22 }
  0x11   :  { %94 = dma.hbm_to_vmem [thread:$0]  %s87_s18, 512, %s89_s22, [#allocation9], %s4114_s1, %s4114_s1, %s4115_s26  }
  0x12   :  { %s101_s9 = sshll.u32 %s4119_s23, 4  ;;  %s102_s9 = int_to_ptr.vmem [resolvable:$true] %s101_s9 }
  0x13   :  { %107 = dma.hbm_to_vmem [thread:$0]  %s100_s6, 512, %s102_s9, [#allocation12], %s4114_s1, %s4114_s1, %s4115_s26  }
  0x14   :  { %4102 = dma.done.wait [#allocation3], 64  }
  0x15   :  { %4103 = vsyncadd [#allocation3], 4294967232 }
  0x16   :  { %4104 = dma.done.wait [#allocation6], 528  }
  0x17   :  { %4105 = vsyncadd [#allocation6], 4294966768 }
  0x18   :  { %4106 = dma.done.wait [#allocation9], 1024  }
  0x19   :  { %4107 = vsyncadd [#allocation9], 4294966272 }
  0x1a   :  { %4108 = dma.done.wait [#allocation12], 512  }
  0x1b   :  { %4109 = vsyncadd [#allocation12], 4294966784  ;;  %v5766_v0 = vlaneseq  ;;  %v4120_v1 = vmov 0   ;;  %v273_v6 = vld [vmem:[%s5752_s3 + $0x8] sm:$0xff]  ;;  %v272_v7 = vld [vmem:[%s5752_s3] sm:$0xff]  ;;  %vm294_vm0 = vcmask 130048  }
  0x1c   :  { %3898 = vset.pattern.permute.xlu0 %v4120_v1  ;;  %3899 = vset.pattern.permute.xlu1 %v4120_v1  ;;  %v268_v9 = vld [vmem:[%s5753_s4] sm:$0xff]  ;;  %v261_v13 = vld [vmem:[%s5760_s11 + $0x10] sm:$0xff]  ;;  %v5764_v20 = vmov 1.0   ;;  %v260_v21 = vld [vmem:[%s5760_s11 + $0x8] sm:$0xff]  ;;  %v4122_v58 = vmov 683565275  }
  0x1d   :  { %v4242_v2 = vshrl.u32 %v5766_v0, 7  ;;  %321 = vmatpush.msra.mxu0 %v273_v6  ;;  %v259_v10 = vld [vmem:[%s5760_s11] sm:$0xff]  ;;  %286 = vperm.xlu1 %3899, %v261_v13   ;;  %v262_v22 = vld [vmem:[%s5760_s11 + $0x18] sm:$0xff]  ;;  %v269_v23 = vld [vmem:[%s5753_s4 + $0x8] sm:$0xff]  ;;  %v4123_v60 = vmov 2475754826  }
  0x1e   :  { %276 = vperm.xlu0 %3898, %v259_v10   ;;  %v4267_v15 = vld [vmem:[#allocation5] ss:$0 sm:$0xff]  ;;  %v4273_v16 = vld [vmem:[%s5751_s2] ss:$0 sm:$0xff]  ;;  %v270_v35 = vld [vmem:[%s5753_s4 + $0x10] sm:$0xff]  ;;  %s4133_s19 = smov [#allocation13]  }
  0x1f   :  { %v4245_v3 = vadd.s32 8, %v4242_v2  ;;  %v460_v4 = vcvt.s32.f32 %v4242_v2  ;;  %v4262_v11 = vadd.s32 56, %v4242_v2  ;;  %322 = vmatpush.msra.mxu0 %v272_v7  ;;  %v459_v17 = vld [vmem:[#allocation2] sm:$0xf]  ;;  %v271_v48 = vld [vmem:[%s5753_s4 + $0x18] sm:$0xff]  ;;  %s3671_s20 = sshll.u32 %s4133_s19, 4  ;;  %s3672_s20 = int_to_ptr.vmem [resolvable:$true] %s3671_s20 }
  0x20   :  { %3709 = vmatmul.msk.f32.vlgmr.msra.gmra.mxu0 %vm294_vm0, %v268_v9  ;;  %v4277_v19 = vmul.f32 3.8197186, %v459_v17  ;;  %v5775_v7 = vmov 2102212464   ;;  %v5771_v9 = vmov 920167782  }
  0x21   :  { %v461_v5 = vcvt.s32.f32 %v4245_v3  ;;  %v462_v8 = vmul.f32 -0.5756463, %v460_v4  ;;  %vm345_vm1 = vcmp.eq.s32.totalorder %v4267_v15, %v4262_v11  ;;  %vm413_vm2 = vcmp.eq.s32.totalorder %v4273_v16, %v4262_v11  ;;  %s3673_s22 = sshll.u32 %s5763_s14, 4  ;;  %s3674_s22 = int_to_ptr.hbm [resolvable:$true] %s3673_s22 }
  0x22   :  { %3721 = vmatpush.msk.msra.mxu1 %vm345_vm1, %v5764_v20  ;;  %3741 = vmatpush.msk.msra.mxu2 %vm413_vm2, %v5764_v20  ;;  %v1091_v24 = vperm.slane %v4277_v19, 0 }
  0x23   :  { %v463_v12 = vmul.f32 -0.5756463, %v461_v5  ;;  %v464_v14 = vmul.f32 1.442695, %v462_v8  ;;  %v4124_v5 = vmov 2131351028  }
  0x25   :  { %3911 = vpow2.f32 %v464_v14  ;;  %v466_v18 = vmul.f32 1.442695, %v463_v12  ;;  %291 = vperm.xlu1 %3899, %v262_v22  }
  0x26   :  { %281 = vperm.xlu0 %3898, %v260_v21  }
  0x27   :  { %3913 = vpow2.f32 %v466_v18 }
  0x28   :  { %3710 = vmatmul.msk.f32.gmra.mxu0 %vm294_vm0, %v269_v23 }
  0x2b   :  { %v4293_v25 = vpop.eup %3911 }
  0x2c   :  { %v4296_v26 = vmul.f32 %v4293_v25, %v1091_v24 }
  0x2d   :  { %v4299_v27 = vpop.eup %3913 }
  0x2e   :  { %v1094_v28 = vand.u32 2147483647, %v4296_v26  ;;  %v1097_v29 = vand.u32 2139095040, %v4296_v26  ;;  %v4304_v30 = vmul.f32 %v4299_v27, %v1091_v24  ;;  %v5769_v24 = vmov 1326507024  }
  0x30   :  { %v1098_v31 = vshrl.u32 %v1097_v29, 23  ;;  %v1101_v32 = vand.u32 8388607, %v1094_v28  ;;  %v1249_v33 = vand.u32 2147483647, %v4304_v30  ;;  %v1252_v34 = vand.u32 2139095040, %v4304_v30  ;;  %3711 = vmatmul.msk.f32.gmra.mxu0 %vm294_vm0, %v270_v35 }
  0x32   :  { %v3765_v36 = vadd.s32 4294967169, %v1098_v31  ;;  %v1102_v37 = vor.u32 8388608, %v1101_v32  ;;  %v1253_v38 = vshrl.u32 %v1252_v34, 23  ;;  %v1256_v39 = vand.u32 8388607, %v1249_v33 }
  0x34   :  { %v1104_v40 = vadd.s32 1, %v3765_v36  ;;  %v3768_v41 = vadd.s32 4294967169, %v1253_v38  ;;  %v1257_v42 = vor.u32 8388608, %v1256_v39  ;;  %v4316_v43 = vshll.u32 %v1102_v37, 8 }
  0x36   :  { %vm1105_vm3 = vcmp.gt.s32.totalorder %v1104_v40, 0  ;;  %v1259_v44 = vadd.s32 1, %v3768_v41  ;;  %v4318_v45 = vshll.u32 %v1257_v42, 8  ;;  %v4326_v50 = vand.u32 65535, %v4316_v43 }
  0x37   :  { %v1106_v46 = vsel %vm1105_vm3, %v1104_v40, 0  ;;  %v4329_v51 = vshrl.u32 %v4316_v43, 16 }
  0x38   :  { %v4320_v47 = vand.u32 31, %v1106_v46  ;;  %vm1260_vm4 = vcmp.gt.s32.totalorder %v1259_v44, 0  ;;  %v4332_v53 = vand.u32 65535, %v4318_v45  ;;  %v4334_v54 = vshrl.u32 %v1106_v46, 5  ;;  %3712 = vmatmul.msk.f32.gmra.mxu0 %vm294_vm0, %v271_v48 }
  0x39   :  { %v1261_v49 = vsel %vm1260_vm4, %v1259_v44, 0  ;;  %v4340_v57 = vshrl.u32 %v4318_v45, 16 }
  0x3a   :  { %v1263_v52 = vand.u32 31, %v1261_v49  ;;  %v4337_v55 = vsub.s32 32, %v4320_v47  ;;  %v1262_v56 = vshrl.u32 %v1261_v49, 5  ;;  %v1111_v59 = vshll.u32 %v4122_v58, %v4320_v47 }
  0x3b   :  { %v1114_v61 = vshll.u32 %v4123_v60, %v4320_v47  ;;  %v1117_v12 = vshll.u32 %v4124_v5, %v4320_v47  ;;  %v1120_v13 = vshll.u32 %v5775_v7, %v4320_v47  ;;  %vm1126_vm9 = vcmp.lt.s32.totalorder %v4334_v54, 1 }
  0x3c   :  { %v1264_v62 = vsub.s32 32, %v1263_v52  ;;  %v1266_v63 = vshll.u32 %v4122_v58, %v1263_v52  ;;  %v1269_v4 = vshll.u32 %v4123_v60, %v1263_v52  ;;  %v1272_v6 = vshll.u32 %v4124_v5, %v1263_v52 }
  0x3d   :  { %v1275_v8 = vshll.u32 %v5775_v7, %v1263_v52  ;;  %v1278_v10 = vshll.u32 %v5771_v9, %v1263_v52  ;;  %v1112_v21 = vshrl.u32 %v4123_v60, %v4337_v55  ;;  %vm1281_vm5 = vcmp.lt.s32.totalorder %v1262_v56, 1 }
  0x3e   :  { %v1267_v14 = vshrl.u32 %v4123_v60, %v1264_v62  ;;  %v1270_v17 = vshrl.u32 %v4124_v5, %v1264_v62  ;;  %v1273_v18 = vshrl.u32 %v5775_v7, %v1264_v62  ;;  %v1265_v22 = vshrl.u32 %v4122_v58, %v1264_v62 }
  0x3f   :  { %v1276_v23 = vshrl.u32 %v5771_v9, %v1264_v62  ;;  %v1279_v29 = vshrl.u32 %v5769_v24, %v1264_v62  ;;  %vm1284_vm6 = vcmp.lt.s32.totalorder %v1262_v56, 4  ;;  %vm1283_vm7 = vcmp.lt.s32.totalorder %v1262_v56, 3 }
  0x40   :  { %v1268_v31 = vor.u32 %v1267_v14, %v1266_v63  ;;  %v1271_v32 = vor.u32 %v1270_v17, %v1269_v4  ;;  %v1274_v34 = vor.u32 %v1273_v18, %v1272_v6  ;;  %v1115_v37 = vshrl.u32 %v4124_v5, %v4337_v55 }
  0x41   :  { %v1277_v35 = vor.u32 %v1276_v23, %v1275_v8  ;;  %v1280_v36 = vor.u32 %v1279_v29, %v1278_v10  ;;  %vm1282_vm8 = vcmp.lt.s32.totalorder %v1262_v56, 2  ;;  %v1118_v46 = vshrl.u32 %v5775_v7, %v4337_v55 }
  0x42   :  { %v1286_v38 = vsel %vm1284_vm6, %v1274_v34, 2102212464  ;;  %v1289_v39 = vsel %vm1281_vm5, %v1268_v31, %v1271_v32  ;;  %v1293_v40 = vsel %vm1281_vm5, %v1271_v32, %v1274_v34  ;;  %v1285_v41 = vsel %vm1281_vm5, %v1265_v22, %v1268_v31 }
  0x43   :  { %v1290_v42 = vsel %vm1284_vm6, %v1277_v35, 920167782  ;;  %v1294_v44 = vsel %vm1284_vm6, %v1280_v36, 1326507024  ;;  %v1287_v48 = vsel %vm1283_vm7, %v1271_v32, %v1286_v38  ;;  %v1121_v62 = vshrl.u32 %v5771_v9, %v4337_v55 }
  0x44   :  { %v1291_v49 = vsel %vm1283_vm7, %v1274_v34, %v1290_v42  ;;  %v1295_v52 = vsel %vm1283_vm7, %v1277_v35, %v1294_v44  ;;  %v4374_v6 = vshrl.u32 %v4122_v58, %v4337_v55  ;;  %v4376_v8 = vor.u32 %v1112_v21, %v1111_v59 }
  0x45   :  { %v1292_v63 = vsel %vm1282_vm8, %v1289_v39, %v1291_v49  ;;  %v1296_v4 = vsel %vm1282_vm8, %v1293_v40, %v1295_v52  ;;  %v4379_v22 = vsel %vm1282_vm8, %v1285_v41, %v1287_v48  ;;  %v4381_v23 = vor.u32 %v1115_v37, %v1114_v61 }
  0x46   :  { %v1300_v10 = vand.u32 65535, %v1296_v4  ;;  %v1301_v14 = vshrl.u32 %v1296_v4, 16  ;;  %v1322_v17 = vand.u32 65535, %v1292_v63  ;;  %v1323_v18 = vshrl.u32 %v1292_v63, 16 }
  0x47   :  { %v1119_v29 = vor.u32 %v1118_v46, %v1117_v12  ;;  %v1123_v31 = vshll.u32 %v5771_v9, %v4320_v47  ;;  %v1122_v21 = vor.u32 %v1121_v62, %v1120_v13  ;;  %v1124_v61 = vshrl.u32 %v5769_v24, %v4337_v55 }
  0x48   :  { %v1302_v32 = vmul.u32 %v1300_v10, %v4332_v53  ;;  %v1303_v34 = vmul.u32 %v1301_v14, %v4332_v53  ;;  %v1304_v59 = vmul.u32 %v1300_v10, %v4340_v57  ;;  %v1324_v35 = vmul.u32 %v1322_v17, %v4332_v53 }
  0x49   :  { %v1325_v36 = vmul.u32 %v1323_v18, %v4332_v53  ;;  %v1326_v56 = vmul.u32 %v1322_v17, %v4340_v57  ;;  %v1305_v12 = vmul.u32 %v1301_v14, %v4340_v57  ;;  %v1327_v38 = vmul.u32 %v1323_v18, %v4340_v57 }
  0x4a   :  { %v1306_v37 = vshll.u32 %v1303_v34, 16  ;;  %v1308_v47 = vshll.u32 %v1304_v59, 16  ;;  %vm1127_vm10 = vcmp.lt.s32.totalorder %v4334_v54, 2  ;;  %v1307_v13 = vshrl.u32 %v1303_v34, 16 }
  0x4b   :  { %v1328_v39 = vshll.u32 %v1325_v36, 16  ;;  %v1330_v40 = vshll.u32 %v1326_v56, 16  ;;  %vm1128_vm12 = vcmp.lt.s32.totalorder %v4334_v54, 3  ;;  %v1125_v42 = vor.u32 %v1124_v61, %v1123_v31 }
  0x4c   :  { %vm1310_vm11 = vc.u32 %v1302_v32, %v1306_v37  ;;  %v1312_v53 = vadd.s32 %v1306_v37, %v1302_v32  ;;  %vm1129_vm15 = vcmp.lt.s32.totalorder %v4334_v54, 4  ;;  %v1329_v48 = vshrl.u32 %v1325_v36, 16 }
  0x4d   :  { %v1311_v41 = vsel %vm1310_vm11, 1, %v4120_v1  ;;  %vm1332_vm13 = vc.u32 %v1324_v35, %v1328_v39  ;;  %v1334_v55 = vadd.s32 %v1328_v39, %v1324_v35  ;;  %v1309_v52 = vshrl.u32 %v1304_v59, 16 }
  0x4e   :  { %v1313_v44 = vadd.s32 %v1311_v41, %v1305_v12  ;;  %vm1314_vm14 = vc.u32 %v1312_v53, %v1308_v47  ;;  %v1333_v46 = vsel %vm1332_vm13, 1, %v4120_v1  ;;  %v1134_v4 = vsel %vm1126_vm9, %v4376_v8, %v4381_v23 }
  0x4f   :  { %v1315_v57 = vsel %vm1314_vm14, 1, %v4120_v1  ;;  %v1335_v49 = vadd.s32 %v1333_v46, %v1327_v38  ;;  %vm1336_vm1 = vc.u32 %v1334_v55, %v1330_v40  ;;  %v1331_v10 = vshrl.u32 %v1326_v56, 16 }
  0x50   :  { %v1317_v62 = vadd.s32 %v1315_v57, %v1313_v44  ;;  %v1337_v63 = vsel %vm1336_vm1, 1, %v4120_v1  ;;  %v1135_v17 = vsel %vm1129_vm15, %v1122_v21, 920167782  ;;  %v1138_v18 = vsel %vm1126_vm9, %v4381_v23, %v1119_v29 }
  0x51   :  { %v1339_v14 = vadd.s32 %v1337_v63, %v1335_v49  ;;  %v4412_v32 = vadd.s32 %v1334_v55, %v1330_v40  ;;  %v1136_v34 = vsel %vm1128_vm12, %v1119_v29, %v1135_v17  ;;  %v1139_v59 = vsel %vm1129_vm15, %v1125_v42, 1326507024 }
  0x52   :  { %v1318_v31 = vadd.s32 %v1317_v62, %v1307_v13  ;;  %v1342_v36 = vmul.u32 %v4318_v45, %v4379_v22  ;;  %v1137_v56 = vsel %vm1127_vm10, %v1134_v4, %v1136_v34  ;;  %v1140_v61 = vsel %vm1128_vm12, %v1122_v21, %v1139_v59 }
  0x53   :  { %v1340_v35 = vadd.s32 %v1339_v14, %v1329_v48  ;;  %v1141_v37 = vsel %vm1127_vm10, %v1138_v18, %v1140_v61  ;;  %v1167_v47 = vand.u32 65535, %v1137_v56  ;;  %v1168_v38 = vshrl.u32 %v1137_v56, 16 }
  0x54   :  { %v4424_v12 = vadd.s32 %v1318_v31, %v1309_v52  ;;  %v1131_v40 = vsel %vm1129_vm15, %v1119_v29, 2102212464  ;;  %v1145_v13 = vand.u32 65535, %v1141_v37  ;;  %v1146_v53 = vshrl.u32 %v1141_v37, 16 }
  0x55   :  { %v1341_v39 = vadd.s32 %v1340_v35, %v1331_v10  ;;  %v1169_v45 = vmul.u32 %v1167_v47, %v4326_v50  ;;  %v1170_v22 = vmul.u32 %v1168_v38, %v4326_v50  ;;  %v2333_v21 = vperm.slane %v4277_v19, 2 }
  0x56   :  { %vm1344_vm2 = vc.u32 %v4424_v12, %v4412_v32  ;;  %v1147_v55 = vmul.u32 %v1145_v13, %v4326_v50  ;;  %v1148_v42 = vmul.u32 %v1146_v53, %v4326_v50  ;;  %v1149_v44 = vmul.u32 %v1145_v13, %v4329_v51 }
  0x57   :  { %v1345_v41 = vadd.s32 1, %v1341_v39  ;;  %v1150_v29 = vmul.u32 %v1146_v53, %v4329_v51  ;;  %v1171_v46 = vmul.u32 %v1167_v47, %v4329_v51  ;;  %v1173_v57 = vshll.u32 %v1170_v22, 16 }
  0x58   :  { %v1151_v49 = vshll.u32 %v1148_v42, 16  ;;  %v1153_v52 = vshll.u32 %v1149_v44, 16  ;;  %v1172_v62 = vmul.u32 %v1168_v38, %v4329_v51  ;;  %v1130_v4 = vsel %vm1126_vm9, %v4374_v6, %v4376_v8 }
  0x59   :  { %v1346_v48 = vsel %vm1344_vm2, %v1345_v41, %v1341_v39  ;;  %v1132_v50 = vsel %vm1128_vm12, %v4381_v23, %v1131_v40  ;;  %v1175_v10 = vshll.u32 %v1171_v46, 16  ;;  %vm1177_vm4 = vc.u32 %v1169_v45, %v1173_v57 }
  0x5a   :  { %v1347_v63 = vadd.s32 %v1346_v48, %v1342_v36  ;;  %vm1155_vm3 = vc.u32 %v1147_v55, %v1151_v49  ;;  %v1157_v14 = vadd.s32 %v1151_v49, %v1147_v55  ;;  %v4451_v17 = vmul.f32 %v4299_v27, %v2333_v21 }
  0x5b   :  { %v1156_v18 = vsel %vm1155_vm3, 1, %v4120_v1  ;;  %v1178_v31 = vsel %vm1177_vm4, 1, %v4120_v1  ;;  %v1179_v34 = vadd.s32 %v1173_v57, %v1169_v45  ;;  %v1152_v6 = vshrl.u32 %v1148_v42, 16 }
  0x5c   :  { %v1348_v51 = vadd.s32 536870912, %v1347_v63  ;;  %v1158_v8 = vadd.s32 %v1156_v18, %v1150_v29  ;;  %vm1159_vm5 = vc.u32 %v1157_v14, %v1153_v52  ;;  %v1180_v59 = vadd.s32 %v1178_v31, %v1172_v62 }
  0x5d   :  { %v1160_v35 = vsel %vm1159_vm5, 1, %v4120_v1  ;;  %v1174_v36 = vshrl.u32 %v1170_v22, 16  ;;  %vm1181_vm6 = vc.u32 %v1179_v34, %v1175_v10  ;;  %v1154_v56 = vshrl.u32 %v1149_v44, 16 }
  0x5e   :  { %v1349_v23 = vshrl.u32 %v1348_v51, 30  ;;  %v1162_v61 = vadd.s32 %v1160_v35, %v1158_v8  ;;  %v1182_v37 = vsel %vm1181_vm6, 1, %v4120_v1  ;;  %v2494_v47 = vand.u32 2139095040, %v4451_v17 }
  0x5f   :  { %v1176_v39 = vshrl.u32 %v1171_v46, 16  ;;  %v1184_v40 = vadd.s32 %v1182_v37, %v1180_v59  ;;  %v1183_v53 = vadd.s32 %v1179_v34, %v1175_v10  ;;  %v1133_v55 = vsel %vm1127_vm10, %v1130_v4, %v1132_v50 }
  0x60   :  { %v1350_v38 = vshll.u32 %v1349_v23, 30  ;;  %v1163_v13 = vadd.s32 %v1162_v61, %v1152_v6  ;;  %v2495_v45 = vshrl.u32 %v2494_v47, 23  ;;  %v2491_v22 = vand.u32 2147483647, %v4451_v17 }
  0x61   :  { %v1185_v42 = vadd.s32 %v1184_v40, %v1174_v36  ;;  %v1187_v49 = vmul.u32 %v4316_v43, %v1133_v55  ;;  %v1373_v54 = vsub.s32 4, %v1349_v23  ;;  %v4467_v31 = vmul.f32 %v4293_v25, %v2333_v21 }
  0x62   :  { %v1351_v41 = vsub.s32 %v1347_v63, %v1350_v38  ;;  %v1164_v29 = vadd.s32 %v1163_v13, %v1154_v56  ;;  %v3792_v44 = vadd.s32 4294967169, %v2495_v45  ;;  %v2498_v63 = vand.u32 8388607, %v2491_v22 }
  0x63   :  { %v1186_v48 = vadd.s32 %v1185_v42, %v1176_v39  ;;  %vm1251_vm10 = vcmp.lt.s32.totalorder %v4304_v30, 0  ;;  %v1343_v43 = vadd.s32 %v4412_v32, %v4424_v12  ;;  %v2339_v21 = vand.u32 2139095040, %v4467_v31 }
  0x64   :  { %vm1352_vm7 = vcmp.lt.s32.totalorder %v1351_v41, 0  ;;  %v1353_v57 = vsub.s32 0, %v1351_v41  ;;  %vm1189_vm8 = vc.u32 %v1164_v29, %v1183_v53  ;;  %v2501_v46 = vadd.s32 1, %v3792_v44 }
  0x65   :  { %v1190_v62 = vadd.s32 1, %v1186_v48  ;;  %v2499_v51 = vor.u32 8388608, %v2498_v63  ;;  %v1374_v8 = vsel %vm1251_vm10, %v1373_v54, %v1349_v23  ;;  %vm4479_vm12 = vcmp.le.f32.partialorder %v1249_v33, 0.7853982 }
  0x66   :  { %v1354_v52 = vsel %vm1352_vm7, %v1353_v57, %v1351_v41  ;;  %vm2502_vm9 = vcmp.gt.s32.totalorder %v2501_v46, 0  ;;  %v1376_v23 = vsel %vm4479_vm12, 0, %v1374_v8  ;;  %vm1096_vm13 = vcmp.lt.s32.totalorder %v4296_v26, 0 }
  0x67   :  { %v1355_v10 = vclz %v1354_v52  ;;  %v1191_v4 = vsel %vm1189_vm8, %v1190_v62, %v1186_v48  ;;  %v2503_v18 = vsel %vm2502_vm9, %v2501_v46, 0  ;;  %v4474_v37 = vshll.u32 %v2499_v51, 8 }
  0x68   :  { %v1192_v14 = vadd.s32 %v1191_v4, %v1187_v49  ;;  %v2505_v56 = vand.u32 31, %v2503_v18  ;;  %v1188_v13 = vadd.s32 %v1183_v53, %v1164_v29  ;;  %vm4491_vm14 = vcmp.le.f32.partialorder %v1094_v28, 0.7853982 }
  0x69   :  { %v3769_v50 = vadd.s32 4294967294, %v1355_v10  ;;  %v4498_v42 = vand.u32 65535, %v4474_v37  ;;  %v2340_v44 = vshrl.u32 %v2339_v21, 23  ;;  %v4501_v53 = vshrl.u32 %v4474_v37, 16 }
  0x6a   :  { %v1193_v34 = vadd.s32 536870912, %v1192_v14  ;;  %v2506_v45 = vsub.s32 32, %v2505_v56  ;;  %v2508_v46 = vshll.u32 %v4122_v58, %v2505_v56  ;;  %v2511_v62 = vshll.u32 %v4123_v60, %v2505_v56 }
  0x6b   :  { %vm3770_vm11 = vcmp.lt.s32.totalorder %v3769_v50, 0  ;;  %v2514_v54 = vshll.u32 %v4124_v5, %v2505_v56  ;;  %v2517_v51 = vshll.u32 %v5775_v7, %v2505_v56  ;;  %v4524_v8 = vshrl.u32 %v2503_v18, 5 }
  0x6c   :  { %v1358_v6 = vsel %vm3770_vm11, 0, %v3769_v50  ;;  %v1194_v61 = vshrl.u32 %v1193_v34, 30  ;;  %v2509_v52 = vshrl.u32 %v4123_v60, %v2506_v45  ;;  %v2512_v10 = vshrl.u32 %v4124_v5, %v2506_v45 }
  0x6d   :  { %v1359_v59 = vsub.s32 32, %v1358_v6  ;;  %v1360_v35 = vshll.u32 %v1351_v41, %v1358_v6  ;;  %v1363_v36 = vsub.s32 4294967266, %v1358_v6  ;;  %v4487_v41 = vadd.s32 48, %v4242_v2 }
  0x6e   :  { %v1195_v38 = vshll.u32 %v1194_v61, 30  ;;  %v1218_v49 = vsub.s32 4, %v1194_v61  ;;  %v2515_v4 = vshrl.u32 %v5775_v7, %v2506_v45  ;;  %v4520_v34 = vand.u32 3, %v1376_v23 }
  0x6f   :  { %v1361_v32 = vshrl.u32 %v1343_v43, %v1359_v59  ;;  %v1364_v12 = vadd.s32 127, %v1363_v36  ;;  %vm344_vm15 = vcmp.eq.s32.totalorder %v4267_v15, %v4487_v41  ;;  %vm412_vm1 = vcmp.eq.s32.totalorder %v4273_v16, %v4487_v41 }
  0x70   :  { %v4495_v55 = vsub.s32 %v1192_v14, %v1195_v38  ;;  %3722 = vmatpush.msk.msra.mxu1 %vm344_vm15, %v5764_v20  ;;  %3742 = vmatpush.msk.msra.mxu2 %vm412_vm1, %v5764_v20  ;;  %v2518_v43 = vshrl.u32 %v5771_v9, %v2506_v45  ;;  %v1219_v6 = vsel %vm1096_vm13, %v1218_v49, %v1194_v61  ;;  %v4526_v59 = vadd.s32 4294967169, %v2340_v44 }
  0x71   :  { %v1362_v39 = vor.u32 %v1361_v32, %v1360_v35  ;;  %v1365_v40 = vshll.u32 %v1364_v12, 23  ;;  %v2507_v21 = vshrl.u32 %v4122_v58, %v2506_v45  ;;  %v2510_v32 = vor.u32 %v2509_v52, %v2508_v46 }
  0x72   :  { %vm1197_vm2 = vcmp.lt.s32.totalorder %v4495_v55, 0  ;;  %v1198_v28 = vsub.s32 0, %v4495_v55  ;;  %v2513_v12 = vor.u32 %v2512_v10, %v2511_v62  ;;  %v2516_v38 = vor.u32 %v2515_v4, %v2514_v54 }
  0x73   :  { %v1366_v57 = vor.u32 4788187, %v1365_v40  ;;  %v1369_v48 = vcvt.s32.f32 %v1362_v39  ;;  %v2520_v39 = vshll.u32 %v5771_v9, %v2505_v56  ;;  %v2521_v40 = vshrl.u32 %v5769_v24, %v2506_v45 }
  0x74   :  { %v1199_v63 = vsel %vm1197_vm2, %v1198_v28, %v4495_v55  ;;  %v1221_v18 = vsel %vm4491_vm14, 0, %v1219_v6  ;;  %v4535_v61 = vor.u32 %v2518_v43, %v2517_v51  ;;  %vm2523_vm4 = vcmp.lt.s32.totalorder %v4524_v8, 1 }
  0x75   :  { %v1367_v29 = vand.u32 2147483647, %v1366_v57  ;;  %v1200_v14 = vclz %v1199_v63  ;;  %vm2526_vm5 = vcmp.lt.s32.totalorder %v4524_v8, 4  ;;  %vm2524_vm6 = vcmp.lt.s32.totalorder %v4524_v8, 2 }
  0x76   :  { %v2522_v46 = vor.u32 %v2521_v40, %v2520_v39  ;;  %vm2525_vm7 = vcmp.lt.s32.totalorder %v4524_v8, 3  ;;  %v2528_v47 = vsel %vm2526_vm5, %v2516_v38, 2102212464  ;;  %v2527_v54 = vsel %vm2523_vm4, %v2507_v21, %v2510_v32 }
  0x77   :  { %v1370_v50 = vmul.f32 %v1369_v48, %v1367_v29  ;;  %v3766_v36 = vadd.s32 4294967294, %v1200_v14  ;;  %v1393_v29 = vadd.s32 3, %v1376_v23  ;;  %v2532_v23 = vsel %vm2526_vm5, %v4535_v61, 920167782 }
  0x78   :  { %v2535_v4 = vsel %vm2523_vm4, %v2513_v12, %v2516_v38  ;;  %vm1707_vm8 = vcmp.eq.s32.totalorder %v4520_v34, 2  ;;  %vm1704_vm9 = vcmp.eq.s32.totalorder %v4520_v34, 0  ;;  %vm1392_vm15 = vweird.f32 %v4304_v30 }
  0x79   :  { %v1371_v35 = vxor.u32 2147483648, %v1370_v50  ;;  %vm3767_vm3 = vcmp.lt.s32.totalorder %v3766_v36, 0  ;;  %v4564_v6 = vand.u32 3, %v1393_v29  ;;  %v4585_v29 = vand.u32 3, %v1221_v18 }
  0x7a   :  { %v1203_v48 = vsel %vm3767_vm3, 0, %v3766_v36  ;;  %v2536_v36 = vsel %vm2526_vm5, %v2522_v46, 1326507024 }
  0x7b   :  { %v1372_v57 = vsel %vm1251_vm10, %v1371_v35, %v1370_v50  ;;  %v1204_v45 = vsub.s32 32, %v1203_v48  ;;  %v1205_v49 = vshll.u32 %v4495_v55, %v1203_v48  ;;  %v1208_v28 = vsub.s32 4294967266, %v1203_v48 }
  0x7c   :  { %v4540_v44 = vsel %vm4479_vm12, %v4304_v30, %v1372_v57  ;;  %v2531_v55 = vsel %vm2523_vm4, %v2510_v32, %v2513_v12  ;;  %v2529_v35 = vsel %vm2525_vm7, %v2513_v12, %v2528_v47  ;;  %v4576_v57 = vadd.s32 32, %v4242_v2 }
  0x7d   :  { %v1377_v56 = vmul.f32 %v4540_v44, %v4540_v44  ;;  %v1206_v63 = vshrl.u32 %v1188_v13, %v1204_v45  ;;  %v1209_v10 = vadd.s32 127, %v1208_v28  ;;  %v4562_v13 = vadd.s32 40, %v4242_v2 }
  0x7e   :  { %v2336_v12 = vand.u32 2147483647, %v4467_v31  ;;  %vm1703_vm12 = vcmp.lt.s32.totalorder %v4520_v34, 2  ;;  %v2533_v28 = vsel %vm2525_vm7, %v2516_v38, %v2532_v23  ;;  %vm342_vm1 = vcmp.eq.s32.totalorder %v4267_v15, %v4576_v57 }
  0x7f   :  { %v1378_v52 = vmul.f32 -0.001358992, %v1377_v56  ;;  %v1385_v62 = vmul.f32 -0.00019511016, %v1377_v56  ;;  %v1207_v51 = vor.u32 %v1206_v63, %v1205_v49  ;;  %v1210_v43 = vshll.u32 %v1209_v10, 23 }
  0x80   :  { %vm343_vm10 = vcmp.eq.s32.totalorder %v4267_v15, %v4562_v13  ;;  %vm411_vm11 = vcmp.eq.s32.totalorder %v4273_v16, %v4562_v13  ;;  %vm410_vm2 = vcmp.eq.s32.totalorder %v4273_v16, %v4576_v57  ;;  %v4593_v46 = vsel %vm2524_vm6, %v2527_v54, %v2529_v35 }
  0x81   :  { %v1379_v50 = vadd.f32 0.041655596, %v1378_v52  ;;  %v1386_v14 = vadd.f32 0.008332121, %v1385_v62  ;;  %v1211_v39 = vor.u32 4788187, %v1210_v43  ;;  %v1214_v40 = vcvt.s32.f32 %v1207_v51  ;;  %3723 = vmatpush.msk.msra.mxu1 %vm343_vm10, %v5764_v20  ;;  %3743 = vmatpush.msk.msra.mxu2 %vm411_vm11, %v5764_v20 }
  0x82   :  { %vm1396_vm3 = vcmp.eq.s32.totalorder %v4564_v6, 0  ;;  %vm1399_vm4 = vcmp.eq.s32.totalorder %v4564_v6, 2  ;;  %v1238_v38 = vadd.s32 3, %v1221_v18  ;;  %v4600_v63 = vadd.s32 24, %v4242_v2 }
  0x83   :  { %v1380_v21 = vmul.f32 %v1379_v50, %v1377_v56  ;;  %v1387_v32 = vmul.f32 %v1386_v14, %v1377_v56  ;;  %v1212_v49 = vand.u32 2147483647, %v1211_v39  ;;  %3724 = vmatpush.msk.msra.mxu1 %vm342_vm1, %v5764_v20  ;;  %3744 = vmatpush.msk.msra.mxu2 %vm410_vm2, %v5764_v20  ;;  %v4603_v10 = vadd.s32 16, %v4242_v2 }
  0x84   :  { %v4610_v14 = vsel %vm2524_vm6, %v2531_v55, %v2533_v28  ;;  %vm341_vm5 = vcmp.eq.s32.totalorder %v4267_v15, %v4600_v63  ;;  %vm409_vm10 = vcmp.eq.s32.totalorder %v4273_v16, %v4600_v63  ;;  %vm339_vm2 = vcmp.eq.s32.totalorder %v4267_v15, %v4245_v3 }
  0x85   :  { %v1381_v48 = vadd.f32 -0.4999988, %v1380_v21  ;;  %v1388_v45 = vadd.f32 -0.16666654, %v1387_v32  ;;  %v1215_v62 = vmul.f32 %v1214_v40, %v1212_v49  ;;  %vm340_vm11 = vcmp.eq.s32.totalorder %v4267_v15, %v4603_v10  ;;  %3725 = vmatpush.msk.msra.mxu1 %vm341_vm5, %v5764_v20  ;;  %3745 = vmatpush.msk.msra.mxu2 %vm409_vm10, %v5764_v20 }
  0x86   :  { %vm408_vm1 = vcmp.eq.s32.totalorder %v4273_v16, %v4603_v10  ;;  %v2565_v40 = vshrl.u32 %v4610_v14, 16  ;;  %v2564_v28 = vand.u32 65535, %v4610_v14 }
  0x87   :  { %v1382_v47 = vmul.f32 %v1381_v48, %v1377_v56  ;;  %v1389_v52 = vmul.f32 %v1388_v45, %v1377_v56  ;;  %v2537_v56 = vsel %vm2525_vm7, %v4535_v61, %v2536_v36  ;;  %v1216_v50 = vxor.u32 2147483648, %v1215_v62  ;;  %3726 = vmatpush.msk.msra.mxu1 %vm340_vm11, %v5764_v20  ;;  %3746 = vmatpush.msk.msra.mxu2 %vm408_vm1, %v5764_v20 }
  0x88   :  { %v2538_v55 = vsel %vm2524_vm6, %v2535_v4, %v2537_v56  ;;  %vm1395_vm7 = vcmp.lt.s32.totalorder %v4564_v6, 2  ;;  %v4641_v4 = vand.u32 3, %v1238_v38  ;;  %vm406_vm6 = vcmp.eq.s32.totalorder %v4273_v16, %v4242_v2 }
  0x89   :  { %v1383_v54 = vadd.f32 1.0, %v1382_v47  ;;  %v1390_v23 = vadd.f32 1.0, %v1389_v52  ;;  %v1217_v51 = vsel %vm1096_vm13, %v1216_v50, %v1215_v62  ;;  %vm407_vm13 = vcmp.eq.s32.totalorder %v4273_v16, %v4245_v3  ;;  %3727 = vmatpush.msk.msra.mxu1 %vm339_vm2, %v5764_v20 }
  0x8a   :  { %v4630_v43 = vsel %vm4491_vm14, %v4296_v26, %v1217_v51  ;;  %vm338_vm14 = vcmp.eq.s32.totalorder %v4267_v15, %v4242_v2  ;;  %v2542_v33 = vand.u32 65535, %v2538_v55  ;;  %v2543_v36 = vshrl.u32 %v2538_v55, 16  ;;  %3747 = vmatpush.msk.msra.mxu2 %vm407_vm13, %v5764_v20 }
  0x8b   :  { %v1391_v18 = vmul.f32 %v1390_v23, %v4540_v44  ;;  %v1400_v61 = vxor.u32 2147483648, %v1383_v54  ;;  %v1222_v8 = vmul.f32 %v4630_v43, %v4630_v43  ;;  %3728 = vmatpush.msk.msra.mxu1 %vm338_vm14, %v5764_v20  ;;  %vm1240_vm10 = vcmp.lt.s32.totalorder %v4641_v4, 2 }
  0x8c   :  { %v2544_v45 = vmul.u32 %v2542_v33, %v4498_v42  ;;  %v2545_v49 = vmul.u32 %v2543_v36, %v4498_v42  ;;  %3748 = vmatpush.msk.msra.mxu2 %vm406_vm6, %v5764_v20  ;;  %v2546_v56 = vmul.u32 %v2542_v33, %v4501_v53  ;;  %v2547_v23 = vmul.u32 %v2543_v36, %v4501_v53 }
  0x8d   :  { %v1397_v44 = vxor.u32 2147483648, %v1391_v18  ;;  %v1709_v35 = vsel %vm1707_vm8, %v1400_v61, %v1391_v18  ;;  %v1223_v32 = vmul.f32 -0.001358992, %v1222_v8  ;;  %v1230_v39 = vmul.f32 -0.00019511016, %v1222_v8 }
  0x8e   :  { %v1401_v38 = vsel %vm1399_vm4, %v1400_v61, %v1391_v18  ;;  %vm1553_vm8 = vcmp.eq.s32.totalorder %v4585_v29, 2  ;;  %v2548_v50 = vshll.u32 %v2545_v49, 16  ;;  %v2549_v18 = vshrl.u32 %v2545_v49, 16 }
  0x8f   :  { %v1706_v21 = vsel %vm1704_vm9, %v1383_v54, %v1397_v44  ;;  %v1224_v52 = vadd.f32 0.041655596, %v1223_v32  ;;  %v1231_v62 = vadd.f32 0.008332121, %v1230_v39  ;;  %v1398_v34 = vsel %vm1396_vm3, %v1383_v54, %v1397_v44 }
  0x90   :  { %v1710_v48 = vsel %vm1703_vm12, %v1706_v21, %v1709_v35  ;;  %vm1244_vm9 = vcmp.eq.s32.totalorder %v4641_v4, 2  ;;  %v2567_v61 = vmul.u32 %v2565_v40, %v4498_v42  ;;  %vm1550_vm12 = vcmp.eq.s32.totalorder %v4585_v29, 0 }
  0x91   :  { %v1711_v47 = vsel %vm1392_vm15, nan, %v1710_v48  ;;  %v1225_v15 = vmul.f32 %v1224_v52, %v1222_v8  ;;  %v1232_v14 = vmul.f32 %v1231_v62, %v1222_v8  ;;  %vm1241_vm4 = vcmp.eq.s32.totalorder %v4641_v4, 0 }
  0x92   :  { %2987 = vmatpush.msra.mxu3 %v1711_v47  ;;  %v2550_v16 = vshll.u32 %v2546_v56, 16  ;;  %vm2552_vm5 = vc.u32 %v2544_v45, %v2548_v50  ;;  %v2554_v51 = vadd.s32 %v2548_v50, %v2544_v45  ;;  %v2566_v54 = vmul.u32 %v2564_v28, %v4498_v42 }
  0x93   :  { %v1226_v55 = vadd.f32 -0.4999988, %v1225_v15  ;;  %v1233_v44 = vadd.f32 -0.16666654, %v1232_v14  ;;  %vm1549_vm3 = vcmp.lt.s32.totalorder %v4585_v29, 2  ;;  %v2553_v35 = vsel %vm2552_vm5, 1, %v4120_v1 }
  0x94   :  { %v2568_v33 = vmul.u32 %v2564_v28, %v4501_v53  ;;  %vm1237_vm11 = vweird.f32 %v4296_v26  ;;  %v2555_v36 = vadd.s32 %v2553_v35, %v2547_v23  ;;  %vm2556_vm1 = vc.u32 %v2554_v51, %v2550_v16 }
  0x95   :  { %v2569_v21 = vmul.u32 %v2565_v40, %v4501_v53  ;;  %v2570_v32 = vshll.u32 %v2567_v61, 16  ;;  %v1227_v39 = vmul.f32 %v1226_v55, %v1222_v8  ;;  %v1234_v48 = vmul.f32 %v1233_v44, %v1222_v8 }
  0x96   :  { %v1402_v42 = vsel %vm1395_vm7, %v1398_v34, %v1401_v38  ;;  %v2557_v45 = vsel %vm2556_vm1, 1, %v4120_v1  ;;  %v2551_v49 = vshrl.u32 %v2546_v56, 16  ;;  %v2572_v52 = vshll.u32 %v2568_v33, 16 }
  0x97   :  { %v2559_v47 = vadd.s32 %v2557_v45, %v2555_v36  ;;  %vm2574_vm2 = vc.u32 %v2566_v54, %v2570_v32  ;;  %v1228_v62 = vadd.f32 1.0, %v1227_v39  ;;  %v1235_v28 = vadd.f32 1.0, %v1234_v48 }
  0x98   :  { %vm362_vm13 = vcmask 523264   ;;  %v2575_v23 = vsel %vm2574_vm2, 1, %v4120_v1  ;;  %v2576_v50 = vadd.s32 %v2570_v32, %v2566_v54  ;;  %v2571_v53 = vshrl.u32 %v2567_v61, 16 }
  0x99   :  { %v2560_v15 = vadd.s32 %v2559_v47, %v2549_v18  ;;  %v2577_v40 = vadd.s32 %v2575_v23, %v2569_v21  ;;  %v2343_v8 = vand.u32 8388607, %v2336_v12  ;;  %v1236_v6 = vmul.f32 %v1235_v28, %v4630_v43 }
  0x9a   :  { %v1245_v38 = vxor.u32 2147483648, %v1228_v62  ;;  %v2573_v34 = vshrl.u32 %v2568_v33, 16  ;;  %vm2578_vm7 = vc.u32 %v2576_v50, %v2572_v52  ;;  %v4703_v16 = vadd.s32 %v2576_v50, %v2572_v52  ;;  %v2958_v50 = vld [vmem:[#allocation7] sm:$0xff] }
  0x9b   :  { %v4700_v56 = vadd.s32 %v2560_v15, %v2551_v49  ;;  %v2579_v14 = vsel %vm2578_vm7, 1, %v4120_v1  ;;  %v2346_v51 = vadd.s32 1, %v4526_v59  ;;  %v1242_v54 = vxor.u32 2147483648, %v1236_v6  ;;  %v277_v59 = vpop.permute.xlu0 %276 }
  0x9c   :  { %v1555_v18 = vsel %vm1553_vm8, %v1245_v38, %v1236_v6  ;;  %v1246_v61 = vsel %vm1244_vm9, %v1245_v38, %v1236_v6  ;;  %v2581_v55 = vadd.s32 %v2579_v14, %v2577_v40  ;;  %v1403_v43 = vsel %vm1392_vm15, nan, %v1402_v42 }
  0x9d   :  { %v2584_v44 = vmul.u32 %v4474_v37, %v4593_v46  ;;  %v2344_v35 = vor.u32 8388608, %v2343_v8  ;;  %vm2347_vm14 = vcmp.gt.s32.totalorder %v2346_v51, 0  ;;  %v1552_v33 = vsel %vm1550_vm12, %v1228_v62, %v1242_v54  ;;  %v324_v42 = vpop.f32.mrf.mxu0 }
  0x9e   :  { %v1243_v36 = vsel %vm1241_vm4, %v1228_v62, %v1242_v54  ;;  %v2582_v21 = vadd.s32 %v2581_v55, %v2571_v53  ;;  %v2348_v32 = vsel %vm2347_vm14, %v2346_v51, 0  ;;  %v1556_v39 = vsel %vm1549_vm3, %v1552_v33, %v1555_v18 }
  0x9f   :  { %v1247_v30 = vsel %vm1240_vm10, %v1243_v36, %v1246_v61  ;;  %vm2586_vm15 = vc.u32 %v4700_v56, %v4703_v16  ;;  %v2350_v37 = vand.u32 31, %v2348_v32  ;;  %v1557_v46 = vsel %vm1237_vm11, nan, %v1556_v39 }
  0xa0   :  { %v1248_v48 = vsel %vm1237_vm11, nan, %v1247_v30  ;;  %v2583_v45 = vadd.s32 %v2582_v21, %v2573_v34  ;;  %v4728_v49 = vshrl.u32 %v2348_v32, 5  ;;  %2988 = vmatpush.msra.mxu3 %v1557_v46  ;;  %v325_v29 = vadd.f32 %v324_v42, %v277_v59 }
  0xa1   :  { %v4730_v47 = vsub.s32 32, %v2350_v37  ;;  %v2353_v4 = vshll.u32 %v4122_v58, %v2350_v37  ;;  %v2356_v52 = vshll.u32 %v4123_v60, %v2350_v37  ;;  %v2359_v28 = vshll.u32 %v4124_v5, %v2350_v37 }
  0xa2   :  { %v2587_v62 = vadd.s32 1, %v2583_v45  ;;  %v2362_v23 = vshll.u32 %v5775_v7, %v2350_v37  ;;  %v2365_v26 = vshll.u32 %v5771_v9, %v2350_v37  ;;  %2989 = vmatpush.msra.mxu3 %v1403_v43  ;;  %vm5777_vm6 = vcmask 261120   ;;  %3729 = vmatmul.msk.f32.vlgmr.msra.gmra.mxu1 %vm362_vm13, %v325_v29 }
  0xa3   :  { %v2354_v15 = vshrl.u32 %v4123_v60, %v4730_v47  ;;  %v2357_v53 = vshrl.u32 %v4124_v5, %v4730_v47  ;;  %v4742_v40 = vshll.u32 %v2344_v35, 8  ;;  %3749 = vmatmul.msk.f32.vlgmr.msra.gmra.mxu2 %vm362_vm13, %v325_v29  ;;  %v2360_v6 = vshrl.u32 %v5775_v7, %v4730_v47  ;;  %v282_v35 = vpop.permute.xlu0 %281 }
  0xa4   :  { %v2588_v8 = vsel %vm2586_vm15, %v2587_v62, %v2583_v45  ;;  %v2363_v38 = vshrl.u32 %v5771_v9, %v4730_v47  ;;  %v2366_v34 = vshrl.u32 %v5769_v24, %v4730_v47  ;;  %2990 = vmatpush.msra.mxu3 %v1248_v48  ;;  %vm2368_vm8 = vcmp.lt.s32.totalorder %v4728_v49, 1  ;;  %v2959_v48 = vld [vmem:[#allocation7 + $0x8] sm:$0xff] }
  0xa5   :  { %v2589_v14 = vadd.s32 %v2588_v8, %v2584_v44  ;;  %v4754_v51 = vor.u32 %v2354_v15, %v2353_v4  ;;  %v4756_v54 = vor.u32 %v2357_v53, %v2356_v52  ;;  %3801 = vmatmul.msk.f32.vlgmr.msra.gmra.mxu3 %vm5777_vm6, %v2958_v50  ;;  %v2361_v18 = vor.u32 %v2360_v6, %v2359_v28  ;;  %v327_v44 = vpop.f32.mrf.mxu0 }
  0xa6   :  { %v2364_v61 = vor.u32 %v2363_v38, %v2362_v23  ;;  %v2367_v55 = vor.u32 %v2366_v34, %v2365_v26  ;;  %vm2370_vm9 = vcmp.lt.s32.totalorder %v4728_v49, 3  ;;  %vm2369_vm12 = vcmp.lt.s32.totalorder %v4728_v49, 2  ;;  %v287_v34 = vpop.permute.xlu1 %286 }
  0xa7   :  { %v2590_v43 = vadd.s32 536870912, %v2589_v14  ;;  %vm2371_vm4 = vcmp.lt.s32.totalorder %v4728_v49, 4  ;;  %v2376_v33 = vsel %vm2368_vm8, %v4754_v51, %v4756_v54  ;;  %v328_v36 = vadd.f32 %v327_v44, %v282_v35 }
  0xa8   :  { %v2377_v59 = vsel %vm2371_vm4, %v2364_v61, 920167782  ;;  %v2380_v30 = vsel %vm2368_vm8, %v4756_v54, %v2361_v18  ;;  %v2381_v37 = vsel %vm2371_vm4, %v2367_v55, 1326507024  ;;  %v2385_v46 = vand.u32 65535, %v4742_v40 }
  0xa9   :  { %v4769_v21 = vshrl.u32 %v2590_v43, 30  ;;  %v2378_v32 = vsel %vm2370_vm9, %v2361_v18, %v2377_v59  ;;  %v2382_v45 = vsel %vm2370_vm9, %v2364_v61, %v2381_v37  ;;  %v2386_v29 = vshrl.u32 %v4742_v40, 16 }
  0xaa   :  { %v2379_v39 = vsel %vm2369_vm12, %v2376_v33, %v2378_v32  ;;  %3730 = vmatmul.msk.f32.gmra.mxu1 %vm362_vm13, %v328_v36  ;;  %v2383_v4 = vsel %vm2369_vm12, %v2380_v30, %v2382_v45  ;;  %v2585_v50 = vadd.s32 %v4703_v16, %v4700_v56  ;;  %v2352_v61 = vshrl.u32 %v4122_v58, %v4730_v47  ;;  %v2960_v30 = vld [vmem:[#allocation7 + $0x10] sm:$0xff] }
  0xab   :  { %v2592_v42 = vshll.u32 %v4769_v21, 30  ;;  %3750 = vmatmul.msk.f32.gmra.mxu2 %vm362_vm13, %v328_v36  ;;  %v2409_v52 = vand.u32 65535, %v2379_v39  ;;  %v2410_v62 = vshrl.u32 %v2379_v39, 16  ;;  %v2387_v23 = vand.u32 65535, %v2383_v4 }
  0xac   :  { %v2388_v26 = vshrl.u32 %v2383_v4, 16  ;;  %v2373_v36 = vsel %vm2371_vm4, %v2361_v18, 2102212464  ;;  %vm2493_vm14 = vcmp.lt.s32.totalorder %v4451_v17, 0  ;;  %vm2492_vm15 = vcmp.le.f32.partialorder %v2491_v22, 0.7853982 }
  0xad   :  { %v4789_v28 = vsub.s32 %v2589_v14, %v2592_v42  ;;  %3802 = vmatmul.msk.f32.gmra.mxu3 %vm5777_vm6, %v2959_v48  ;;  %v4794_v15 = vmul.u32 %v2410_v62, %v2385_v46  ;;  %v4796_v53 = vmul.u32 %v2409_v52, %v2386_v29  ;;  %v2389_v6 = vmul.u32 %v2387_v23, %v2385_v46  ;;  %v330_v14 = vpop.f32.mrf.mxu0 }
  0xae   :  { %v2390_v38 = vmul.u32 %v2388_v26, %v2385_v46  ;;  %v2391_v55 = vmul.u32 %v2387_v23, %v2386_v29  ;;  %v2411_v43 = vmul.u32 %v2409_v52, %v2385_v46  ;;  %v331_v56 = vadd.f32 %v330_v14, %v287_v34 }
  0xaf   :  { %vm2594_vm5 = vcmp.lt.s32.totalorder %v4789_v28, 0  ;;  %v2595_v8 = vsub.s32 0, %v4789_v28  ;;  %v2415_v35 = vshll.u32 %v4794_v15, 16  ;;  %v2392_v44 = vmul.u32 %v2388_v26, %v2386_v29 }
  0xb0   :  { %v2393_v33 = vshll.u32 %v2390_v38, 16  ;;  %v2395_v32 = vshll.u32 %v2391_v55, 16  ;;  %v2414_v39 = vmul.u32 %v2410_v62, %v2386_v29  ;;  %v2394_v37 = vshrl.u32 %v2390_v38, 16 }
  0xb1   :  { %v2596_v16 = vsel %vm2594_vm5, %v2595_v8, %v4789_v28  ;;  %v2417_v46 = vshll.u32 %v4796_v53, 16  ;;  %vm2419_vm10 = vc.u32 %v2411_v43, %v2415_v35  ;;  %v2421_v45 = vadd.s32 %v2415_v35, %v2411_v43 }
  0xb2   :  { %v2597_v59 = vclz %v2596_v16  ;;  %3731 = vmatmul.msk.f32.gmra.mxu1 %vm362_vm13, %v331_v56  ;;  %vm2397_vm3 = vc.u32 %v2389_v6, %v2393_v33  ;;  %v2399_v47 = vadd.s32 %v2393_v33, %v2389_v6  ;;  %v2396_v4 = vshrl.u32 %v2391_v55, 16  ;;  %v2961_v33 = vld [vmem:[#allocation7 + $0x18] sm:$0xff] }
  0xb3   :  { %3751 = vmatmul.msk.f32.gmra.mxu2 %vm362_vm13, %v331_v56  ;;  %v2398_v42 = vsel %vm2397_vm3, 1, %v4120_v1  ;;  %v2420_v18 = vsel %vm2419_vm10, 1, %v4120_v1  ;;  %v2416_v62 = vshrl.u32 %v4794_v15, 16  ;;  %vm2423_vm2 = vc.u32 %v2421_v45, %v2417_v46 }
  0xb4   :  { %v3793_v48 = vadd.s32 4294967294, %v2597_v59  ;;  %v2400_v52 = vadd.s32 %v2398_v42, %v2392_v44  ;;  %vm2401_vm11 = vc.u32 %v2399_v47, %v2395_v32  ;;  %v2422_v23 = vadd.s32 %v2420_v18, %v2414_v39 }
  0xb5   :  { %3803 = vmatmul.msk.f32.gmra.mxu3 %vm5777_vm6, %v2960_v30  ;;  %v2402_v29 = vsel %vm2401_vm11, 1, %v4120_v1  ;;  %v1712_v6 = vperm.slane %v4277_v19, 1  ;;  %v2424_v55 = vsel %vm2423_vm2, 1, %v4120_v1  ;;  %v2372_v43 = vsel %vm2368_vm8, %v2352_v61, %v4754_v51 }
  0xb6   :  { %vm3794_vm1 = vcmp.lt.s32.totalorder %v3793_v48, 0  ;;  %v2404_v8 = vadd.s32 %v2402_v29, %v2400_v52  ;;  %v2374_v15 = vsel %vm2370_vm9, %v4756_v54, %v2373_v36  ;;  %v2418_v44 = vshrl.u32 %v4796_v53, 16 }
  0xb7   :  { %v2600_v26 = vsel %vm3794_vm1, 0, %v3793_v48  ;;  %v2426_v19 = vadd.s32 %v2424_v55, %v2422_v23  ;;  %v4825_v32 = vmul.f32 %v4299_v27, %v1712_v6  ;;  %v2375_v51 = vsel %vm2369_vm12, %v2372_v43, %v2374_v15 }
  0xb8   :  { %v2601_v38 = vsub.s32 32, %v2600_v26  ;;  %v2602_v34 = vshll.u32 %v4789_v28, %v2600_v26  ;;  %v2605_v14 = vsub.s32 4294967266, %v2600_v26  ;;  %v2405_v35 = vadd.s32 %v2404_v8, %v2394_v37 }
  0xb9   :  { %v2425_v28 = vadd.s32 %v2421_v45, %v2417_v46  ;;  %v2427_v61 = vadd.s32 %v2426_v19, %v2416_v62  ;;  %v2615_v54 = vsub.s32 4, %v4769_v21  ;;  %v1870_v47 = vand.u32 2147483647, %v4825_v32 }
  0xba   :  { %v2603_v56 = vshrl.u32 %v2585_v50, %v2601_v38  ;;  %v2606_v16 = vadd.s32 127, %v2605_v14  ;;  %v2406_v59 = vadd.s32 %v2405_v35, %v2396_v4  ;;  %v1873_v50 = vand.u32 2139095040, %v4825_v32 }
  0xbb   :  { %v2428_v37 = vadd.s32 %v2427_v61, %v2418_v44  ;;  %v2429_v46 = vmul.u32 %v4742_v40, %v2375_v51  ;;  %v4835_v42 = vmul.f32 %v4293_v25, %v1712_v6  ;;  %v2616_v18 = vsel %vm2493_vm14, %v2615_v54, %v4769_v21 }
  0xbc   :  { %v2604_v39 = vor.u32 %v2603_v56, %v2602_v34  ;;  %v2607_v30 = vshll.u32 %v2606_v16, 23  ;;  %vm2431_vm7 = vc.u32 %v2406_v59, %v2425_v28  ;;  %v1874_v48 = vshrl.u32 %v1873_v50, 23 }
  0xbd   :  { %3804 = vmatmul.msk.f32.gmra.mxu3 %vm5777_vm6, %v2961_v33  ;;  %v2432_v45 = vadd.s32 1, %v2428_v37  ;;  %v1877_v62 = vand.u32 8388607, %v1870_v47  ;;  %v1718_v40 = vand.u32 2139095040, %v4835_v42  ;;  %v4844_v6 = vsel %vm2492_vm15, 0, %v2616_v18 }
  0xbe   :  { %v2608_v53 = vor.u32 4788187, %v2607_v30  ;;  %v2611_v36 = vcvt.s32.f32 %v2604_v39  ;;  %v3780_v4 = vadd.s32 4294967169, %v1874_v48  ;;  %v1715_v21 = vand.u32 2147483647, %v4835_v42 }
  0xbf   :  { %v2433_v29 = vsel %vm2431_vm7, %v2432_v45, %v2428_v37  ;;  %v1878_v14 = vor.u32 8388608, %v1877_v62  ;;  %v1719_v56 = vshrl.u32 %v1718_v40, 23  ;;  %v4851_v44 = vand.u32 3, %v4844_v6 }
  0xc0   :  { %v2609_v49 = vand.u32 2147483647, %v2608_v53  ;;  %v2434_v23 = vadd.s32 %v2433_v29, %v2429_v46  ;;  %v1880_v26 = vadd.s32 1, %v3780_v4  ;;  %v2430_v30 = vadd.s32 %v2425_v28, %v2406_v59 }
  0xc1   :  { %v4858_v61 = vshll.u32 %v1878_v14, 8  ;;  %v3777_v54 = vadd.s32 4294967169, %v1719_v56  ;;  %v4862_v50 = vand.u32 8388607, %v1715_v21  ;;  %vm2949_vm9 = vcmp.eq.s32.totalorder %v4851_v44, 2 }
  0xc2   :  { %v2612_v52 = vmul.f32 %v2611_v36, %v2609_v49  ;;  %v2435_v38 = vadd.s32 536870912, %v2434_v23  ;;  %vm1881_vm8 = vcmp.gt.s32.totalorder %v1880_v26, 0  ;;  %vm2946_vm4 = vcmp.eq.s32.totalorder %v4851_v44, 0 }
  0xc3   :  { %v1882_v55 = vsel %vm1881_vm8, %v1880_v26, 0  ;;  %vm2945_vm5 = vcmp.lt.s32.totalorder %v4851_v44, 2  ;;  %vm2634_vm3 = vweird.f32 %v4451_v17  ;;  %vm2338_vm11 = vcmp.lt.s32.totalorder %v4467_v31, 0 }
  0xc4   :  { %v2613_v8 = vxor.u32 2147483648, %v2612_v52  ;;  %v4848_v15 = vshrl.u32 %v2435_v38, 30  ;;  %v1884_v35 = vand.u32 31, %v1882_v55  ;;  %v4873_v4 = vshrl.u32 %v1882_v55, 5 }
  0xc6   :  { %v2614_v34 = vsel %vm2493_vm14, %v2613_v8, %v2612_v52  ;;  %v2437_v22 = vshll.u32 %v4848_v15, 30  ;;  %v4854_v19 = vsub.s32 32, %v1884_v35  ;;  %v1887_v37 = vshll.u32 %v4122_v58, %v1884_v35 }
  0xc7   :  { %v2617_v43 = vsel %vm2492_vm15, %v4451_v17, %v2614_v34  ;;  %v1890_v28 = vshll.u32 %v4123_v60, %v1884_v35  ;;  %v1896_v52 = vshll.u32 %v5775_v7, %v1884_v35  ;;  %v1893_v29 = vshll.u32 %v4124_v5, %v1884_v35 }
  0xc8   :  { %v2619_v16 = vmul.f32 %v2617_v43, %v2617_v43  ;;  %v4856_v51 = vsub.s32 %v2434_v23, %v2437_v22  ;;  %v1888_v46 = vshrl.u32 %v4123_v60, %v4854_v19  ;;  %v1891_v48 = vshrl.u32 %v4124_v5, %v4854_v19 }
  0xc9   :  { %v1894_v62 = vshrl.u32 %v5775_v7, %v4854_v19  ;;  %v1897_v23 = vshrl.u32 %v5771_v9, %v4854_v19  ;;  %v1899_v55 = vshll.u32 %v5771_v9, %v1884_v35  ;;  %v1900_v56 = vshrl.u32 %v5769_v24, %v4854_v19 }
  0xca   :  { %v2620_v33 = vmul.f32 -0.001358992, %v2619_v16  ;;  %v2627_v39 = vmul.f32 -0.00019511016, %v2619_v16  ;;  %vm2439_vm12 = vcmp.lt.s32.totalorder %v4856_v51, 0  ;;  %v2440_v59 = vsub.s32 0, %v4856_v51 }
  0xcb   :  { %v4884_v38 = vor.u32 %v1888_v46, %v1887_v37  ;;  %v4887_v34 = vor.u32 %v1891_v48, %v1890_v28  ;;  %v1898_v14 = vor.u32 %v1897_v23, %v1896_v52  ;;  %vm1902_vm10 = vcmp.lt.s32.totalorder %v4873_v4, 1 }
  0xcc   :  { %v2621_v53 = vadd.f32 0.041655596, %v2620_v33  ;;  %v2628_v36 = vadd.f32 0.008332121, %v2627_v39  ;;  %v2441_v18 = vsel %vm2439_vm12, %v2440_v59, %v4856_v51  ;;  %vm1903_vm1 = vcmp.lt.s32.totalorder %v4873_v4, 2 }
  0xcd   :  { %v2442_v8 = vclz %v2441_v18  ;;  %vm1905_vm2 = vcmp.lt.s32.totalorder %v4873_v4, 4  ;;  %vm1904_vm14 = vcmp.lt.s32.totalorder %v4873_v4, 3  ;;  %v1910_v59 = vsel %vm1902_vm10, %v4884_v38, %v4887_v34 }
  0xce   :  { %v2622_v49 = vmul.f32 %v2621_v53, %v2619_v16  ;;  %v2629_v45 = vmul.f32 %v2628_v36, %v2619_v16  ;;  %v1895_v53 = vor.u32 %v1894_v62, %v1893_v29  ;;  %v1919_v36 = vand.u32 65535, %v4858_v61 }
  0xcf   :  { %v3790_v39 = vadd.s32 4294967294, %v2442_v8  ;;  %v1911_v28 = vsel %vm1905_vm2, %v1898_v14, 920167782  ;;  %vm4911_vm15 = vcmp.le.f32.partialorder %v2336_v12, 0.7853982  ;;  %v2460_v62 = vsub.s32 4, %v4848_v15 }
  0xd0   :  { %v2623_v26 = vadd.f32 -0.4999988, %v2622_v49  ;;  %v2630_v40 = vadd.f32 -0.16666654, %v2629_v45  ;;  %v1912_v23 = vsel %vm1904_vm14, %v1895_v53, %v1911_v28  ;;  %v292_v28 = vpop.permute.xlu1 %291 }
  0xd1   :  { %vm3791_vm7 = vcmp.lt.s32.totalorder %v3790_v39, 0  ;;  %v1913_v8 = vsel %vm1903_vm1, %v1910_v59, %v1912_v23 }
  0xd2   :  { %v2624_v22 = vmul.f32 %v2623_v26, %v2619_v16  ;;  %v2631_v33 = vmul.f32 %v2630_v40, %v2619_v16  ;;  %v2445_v46 = vsel %vm3791_vm7, 0, %v3790_v39  ;;  %v1901_v16 = vor.u32 %v1900_v56, %v1899_v55 }
  0xd3   :  { %v2446_v52 = vsub.s32 32, %v2445_v46  ;;  %v2447_v18 = vshll.u32 %v4856_v51, %v2445_v46  ;;  %v2450_v29 = vsub.s32 4294967266, %v2445_v46  ;;  %v1725_v26 = vadd.s32 1, %v3777_v54 }
  0xd4   :  { %v4897_v37 = vadd.f32 1.0, %v2624_v22  ;;  %v2632_v35 = vadd.f32 1.0, %v2631_v33  ;;  %v1886_v55 = vshrl.u32 %v4122_v58, %v4854_v19  ;;  %v1914_v54 = vsel %vm1902_vm10, %v4887_v34, %v1895_v53 }
  0xd5   :  { %v2448_v40 = vshrl.u32 %v2430_v30, %v2446_v52  ;;  %v2451_v51 = vadd.s32 127, %v2450_v29  ;;  %v1920_v56 = vshrl.u32 %v4858_v61, 16  ;;  %v1915_v33 = vsel %vm1905_vm2, %v1901_v16, 1326507024  ;;  %v333_v29 = vpop.f32.mrf.mxu0 }
  0xd6   :  { %v4906_v48 = vmul.f32 %v2632_v35, %v2617_v43  ;;  %v2642_v49 = vxor.u32 2147483648, %v4897_v37  ;;  %v1943_v39 = vand.u32 65535, %v1913_v8  ;;  %v1916_v46 = vsel %vm1904_vm14, %v1898_v14, %v1915_v33 }
  0xd7   :  { %v2449_v30 = vor.u32 %v2448_v40, %v2447_v18  ;;  %v2452_v35 = vshll.u32 %v2451_v51, 23  ;;  %v1944_v59 = vshrl.u32 %v1913_v8, 16  ;;  %v2461_v18 = vsel %vm2338_vm11, %v2460_v62, %v4848_v15 }
  0xd8   :  { %v2639_v43 = vxor.u32 2147483648, %v4906_v48  ;;  %v2951_v12 = vsel %vm2949_vm9, %v2642_v49, %v4906_v48  ;;  %v1907_v16 = vsel %vm1905_vm2, %v1895_v53, 2102212464  ;;  %vm1726_vm8 = vcmp.gt.s32.totalorder %v1725_v26, 0 }
  0xd9   :  { %v2453_v44 = vor.u32 4788187, %v2452_v35  ;;  %v2456_v23 = vcvt.s32.f32 %v2449_v30  ;;  %v1917_v14 = vsel %vm1903_vm1, %v1914_v54, %v1916_v46  ;;  %v1946_v51 = vmul.u32 %v1944_v59, %v1919_v36 }
  0xda   :  { %v2948_v22 = vsel %vm2946_vm4, %v4897_v37, %v2639_v43  ;;  %v1921_v40 = vand.u32 65535, %v1917_v14  ;;  %v1922_v8 = vshrl.u32 %v1917_v14, 16  ;;  %v4955_v15 = vsel %vm4911_vm15, 0, %v2461_v18 }
  0xdb   :  { %v2952_v19 = vsel %vm2945_vm5, %v2948_v22, %v2951_v12  ;;  %v334_v12 = vadd.f32 %v333_v29, %v292_v28  ;;  %v1947_v22 = vmul.u32 %v1943_v39, %v1920_v56  ;;  %v2454_v33 = vand.u32 2147483647, %v2453_v44 }
  0xdc   :  { %v2953_v52 = vsel %vm2634_vm3, nan, %v2952_v19  ;;  %v1906_v53 = vsel %vm1902_vm10, %v1886_v55, %v4884_v38  ;;  %v1945_v62 = vmul.u32 %v1943_v39, %v1919_v36  ;;  %v1908_v54 = vsel %vm1904_vm14, %v4887_v34, %v1907_v16 }
  0xdd   :  { %3045 = vmatpush.msrb.mxu3 %v2953_v52  ;;  %3732 = vmatmul.msk.f32.gmra.mxu1 %vm362_vm13, %v334_v12  ;;  %v1923_v30 = vmul.u32 %v1921_v40, %v1919_v36  ;;  %v1924_v19 = vmul.u32 %v1922_v8, %v1919_v36  ;;  %v1925_v35 = vmul.u32 %v1921_v40, %v1920_v56  ;;  %v1949_v52 = vshll.u32 %v1946_v51, 16 }
  0xde   :  { %3752 = vmatmul.msk.f32.gmra.mxu2 %vm362_vm13, %v334_v12  ;;  %v2457_v46 = vmul.f32 %v2456_v23, %v2454_v33  ;;  %v1948_v28 = vmul.u32 %v1944_v59, %v1920_v56  ;;  %v1951_v18 = vshll.u32 %v1947_v22, 16  ;;  %v1926_v29 = vmul.u32 %v1922_v8, %v1920_v56 }
  0xdf   :  { %v1927_v44 = vshll.u32 %v1924_v19, 16  ;;  %v1929_v14 = vshll.u32 %v1925_v35, 16  ;;  %v1727_v38 = vsel %vm1726_vm8, %v1725_v26, 0  ;;  %v1950_v39 = vshrl.u32 %v1946_v51, 16 }
  0xe0   :  { %v2458_v55 = vxor.u32 2147483648, %v2457_v46  ;;  %vm1953_vm9 = vc.u32 %v1945_v62, %v1949_v52  ;;  %v1955_v12 = vadd.s32 %v1949_v52, %v1945_v62  ;;  %v1928_v20 = vshrl.u32 %v1924_v19, 16 }
  0xe1   :  { %vm1931_vm12 = vc.u32 %v1923_v30, %v1927_v44  ;;  %v1933_v0 = vadd.s32 %v1927_v44, %v1923_v30  ;;  %v1954_v34 = vsel %vm1953_vm9, 1, %v4120_v1  ;;  %v1952_v51 = vshrl.u32 %v1947_v22, 16 }
  0xe2   :  { %v2459_v36 = vsel %vm2338_vm11, %v2458_v55, %v2457_v46  ;;  %v1932_v59 = vsel %vm1931_vm12, 1, %v4120_v1  ;;  %v1956_v16 = vadd.s32 %v1954_v34, %v1948_v28  ;;  %vm1957_vm4 = vc.u32 %v1955_v12, %v1951_v18 }
  0xe3   :  { %v2462_v26 = vsel %vm4911_vm15, %v4467_v31, %v2459_v36  ;;  %v1934_v56 = vadd.s32 %v1932_v59, %v1926_v29  ;;  %vm1935_vm5 = vc.u32 %v1933_v0, %v1929_v14  ;;  %v1958_v23 = vsel %vm1957_vm4, 1, %v4120_v1 }
  0xe4   :  { %v2464_v40 = vmul.f32 %v2462_v26, %v2462_v26  ;;  %v1936_v8 = vsel %vm1935_vm5, 1, %v4120_v1  ;;  %v1960_v33 = vadd.s32 %v1958_v23, %v1956_v16  ;;  %v1930_v62 = vshrl.u32 %v1925_v35, 16 }
  0xe5   :  { %v1938_v30 = vadd.s32 %v1936_v8, %v1934_v56  ;;  %v4975_v19 = vshrl.u32 %v1727_v38, 5  ;;  %v1729_v46 = vand.u32 31, %v1727_v38  ;;  %v1909_v45 = vsel %vm1903_vm1, %v1906_v53, %v1908_v54 }
  0xe6   :  { %v2465_v28 = vmul.f32 -0.001358992, %v2464_v40  ;;  %v2472_v52 = vmul.f32 -0.00019511016, %v2464_v40  ;;  %v1961_v44 = vadd.s32 %v1960_v33, %v1950_v39  ;;  %v4980_v0 = vand.u32 3, %v4955_v15 }
  0xe7   :  { %v1939_v29 = vadd.s32 %v1938_v30, %v1928_v20  ;;  %v4982_v14 = vadd.s32 %v1955_v12, %v1951_v18  ;;  %v1730_v55 = vsub.s32 32, %v1729_v46  ;;  %v1732_v36 = vshll.u32 %v4122_v58, %v1729_v46 }
  0xe8   :  { %v2466_v22 = vadd.f32 0.041655596, %v2465_v28  ;;  %v2473_v34 = vadd.f32 0.008332121, %v2472_v52  ;;  %v1962_v35 = vadd.s32 %v1961_v44, %v1952_v51  ;;  %v1963_v38 = vmul.u32 %v4858_v61, %v1909_v45 }
  0xe9   :  { %v4985_v59 = vadd.s32 %v1939_v29, %v1930_v62  ;;  %v1733_v4 = vshrl.u32 %v4123_v60, %v1730_v55  ;;  %vm1747_vm10 = vcmp.lt.s32.totalorder %v4975_v19, 1  ;;  %v1735_v20 = vshll.u32 %v4123_v60, %v1729_v46 }
  0xea   :  { %v2467_v53 = vmul.f32 %v2466_v22, %v2464_v40  ;;  %v2474_v54 = vmul.f32 %v2473_v34, %v2464_v40  ;;  %v1966_v39 = vadd.s32 1, %v1962_v35  ;;  %v1736_v18 = vshrl.u32 %v4124_v5, %v1730_v55 }
  0xeb   :  { %vm1965_vm11 = vc.u32 %v4985_v59, %v4982_v14  ;;  %v1738_v12 = vshll.u32 %v4124_v5, %v1729_v46  ;;  %v1739_v16 = vshrl.u32 %v5775_v7, %v1730_v55  ;;  %v1734_v8 = vor.u32 %v1733_v4, %v1732_v36 }
  0xec   :  { %v2468_v56 = vadd.f32 -0.4999988, %v2467_v53  ;;  %v2475_v61 = vadd.f32 -0.16666654, %v2474_v54  ;;  %v1967_v23 = vsel %vm1965_vm11, %v1966_v39, %v1962_v35  ;;  %v1741_v33 = vshll.u32 %v5775_v7, %v1729_v46 }
  0xed   :  { %v1968_v51 = vadd.s32 %v1967_v23, %v1963_v38  ;;  %v1742_v62 = vshrl.u32 %v5771_v9, %v1730_v55  ;;  %v1744_v30 = vshll.u32 %v5771_v9, %v1729_v46  ;;  %v1745_v45 = vshrl.u32 %v5769_v24, %v1730_v55 }
  0xee   :  { %v2469_v28 = vmul.f32 %v2468_v56, %v2464_v40  ;;  %v2476_v52 = vmul.f32 %v2475_v61, %v2464_v40  ;;  %vm1750_vm1 = vcmp.lt.s32.totalorder %v4975_v19, 4  ;;  %v5001_v29 = vor.u32 %v1736_v18, %v1735_v20 }
  0xef   :  { %v1969_v44 = vadd.s32 536870912, %v1968_v51  ;;  %v1740_v22 = vor.u32 %v1739_v16, %v1738_v12  ;;  %v1743_v34 = vor.u32 %v1742_v62, %v1741_v33  ;;  %v1746_v38 = vor.u32 %v1745_v45, %v1744_v30 }
  0xf0   :  { %v5003_v35 = vadd.f32 1.0, %v2469_v28  ;;  %v2477_v36 = vadd.f32 1.0, %v2476_v52  ;;  %vm1749_vm2 = vcmp.lt.s32.totalorder %v4975_v19, 3  ;;  %vm2795_vm7 = vcmp.eq.s32.totalorder %v4980_v0, 2 }
  0xf1   :  { %v5007_v46 = vshrl.u32 %v1969_v44, 30  ;;  %v1723_v40 = vor.u32 8388608, %v4862_v50  ;;  %v1756_v4 = vsel %vm1750_vm1, %v1743_v34, 920167782  ;;  %vm2791_vm14 = vcmp.lt.s32.totalorder %v4980_v0, 2 }
  0xf2   :  { %v5012_v53 = vmul.f32 %v2477_v36, %v2462_v26  ;;  %v5767_v54 = vxor.u32 2147483648, %v5003_v35  ;;  %vm2792_vm15 = vcmp.eq.s32.totalorder %v4980_v0, 0  ;;  %vm1748_vm8 = vcmp.lt.s32.totalorder %v4975_v19, 2 }
  0xf3   :  { %v1971_v39 = vshll.u32 %v5007_v46, 30  ;;  %v1755_v20 = vsel %vm1747_vm10, %v1734_v8, %v5001_v29  ;;  %v1757_v50 = vsel %vm1749_vm2, %v1740_v22, %v1756_v4  ;;  %v1759_v12 = vsel %vm1747_vm10, %v5001_v29, %v1740_v22 }
  0xf4   :  { %v5768_v26 = vxor.u32 2147483648, %v5012_v53  ;;  %v2797_v18 = vsel %vm2795_vm7, %v5767_v54, %v5012_v53  ;;  %v1760_v16 = vsel %vm1750_vm1, %v1746_v38, 1326507024  ;;  %vm2479_vm9 = vweird.f32 %v4467_v31 }
  0xf5   :  { %v1972_v56 = vsub.s32 %v1968_v51, %v1971_v39  ;;  %v1761_v61 = vsel %vm1749_vm2, %v1743_v34, %v1760_v16  ;;  %v5036_v23 = vshll.u32 %v1723_v40, 8  ;;  %v1731_v62 = vshrl.u32 %v4122_v58, %v1730_v55 }
  0xf6   :  { %v2794_v33 = vsel %vm2792_vm15, %v5003_v35, %v5768_v26  ;;  %v1758_v30 = vsel %vm1748_vm8, %v1755_v20, %v1757_v50  ;;  %v1762_v28 = vsel %vm1748_vm8, %v1759_v12, %v1761_v61  ;;  %v1752_v61 = vsel %vm1750_vm1, %v1740_v22, 2102212464 }
  0xf7   :  { %v2798_v51 = vsel %vm2791_vm14, %v2794_v33, %v2797_v18  ;;  %vm1973_vm12 = vcmp.lt.s32.totalorder %v1972_v56, 0  ;;  %v1974_v52 = vsub.s32 0, %v1972_v56  ;;  %v1764_v45 = vand.u32 65535, %v5036_v23 }
  0xf8   :  { %v2799_v44 = vsel %vm2479_vm9, nan, %v2798_v51  ;;  %v1765_v34 = vshrl.u32 %v5036_v23, 16  ;;  %v1766_v36 = vand.u32 65535, %v1762_v28  ;;  %v1767_v55 = vshrl.u32 %v1762_v28, 16 }
  0xf9   :  { %3046 = vmatpush.msrb.mxu3 %v2799_v44  ;;  %v1975_v38 = vsel %vm1973_vm12, %v1974_v52, %v1972_v56  ;;  %v1788_v40 = vand.u32 65535, %v1758_v30  ;;  %v1789_v4 = vshrl.u32 %v1758_v30, 16  ;;  %v1964_v18 = vadd.s32 %v4982_v14, %v4985_v59 }
  0xfa   :  { %v1976_v39 = vclz %v1975_v38  ;;  %v1768_v20 = vmul.u32 %v1766_v36, %v1764_v45  ;;  %v1769_v50 = vmul.u32 %v1767_v55, %v1764_v45  ;;  %v1770_v0 = vmul.u32 %v1766_v36, %v1765_v34 }
  0xfb   :  { %v1751_v16 = vsel %vm1747_vm10, %v1731_v62, %v1734_v8  ;;  %v2635_v28 = vadd.s32 3, %v4844_v6  ;;  %v1771_v51 = vmul.u32 %v1767_v55, %v1765_v34  ;;  %v1790_v52 = vmul.u32 %v1788_v40, %v1764_v45 }
  0xfc   :  { %v3781_v12 = vadd.s32 4294967294, %v1976_v39  ;;  %v1772_v33 = vshll.u32 %v1769_v50, 16  ;;  %v1791_v30 = vmul.u32 %v1789_v4, %v1764_v45  ;;  %v1774_v44 = vshll.u32 %v1770_v0, 16 }
  0xfd   :  { %v1792_v36 = vmul.u32 %v1788_v40, %v1765_v34  ;;  %v2636_v54 = vand.u32 3, %v2635_v28  ;;  %v1793_v26 = vmul.u32 %v1789_v4, %v1765_v34  ;;  %v1773_v22 = vshrl.u32 %v1769_v50, 16 }
  0xfe   :  { %vm3782_vm4 = vcmp.lt.s32.totalorder %v3781_v12, 0  ;;  %vm1776_vm5 = vc.u32 %v1768_v20, %v1772_v33  ;;  %v1778_v59 = vadd.s32 %v1772_v33, %v1768_v20  ;;  %v1794_v6 = vshll.u32 %v1791_v30, 16 }
  0xff   :  { %v1979_v38 = vsel %vm3782_vm4, 0, %v3781_v12  ;;  %v1777_v14 = vsel %vm1776_vm5, 1, %v4120_v1  ;;  %vm2638_vm10 = vcmp.eq.s32.totalorder %v2636_v54, 0  ;;  %vm2637_vm11 = vcmp.lt.s32.totalorder %v2636_v54, 2 }
 0x100   :  { %v1980_v39 = vsub.s32 32, %v1979_v38  ;;  %v1981_v8 = vshll.u32 %v1972_v56, %v1979_v38  ;;  %v1984_v62 = vsub.s32 4294967266, %v1979_v38  ;;  %v1779_v24 = vadd.s32 %v1777_v14, %v1771_v51 }
 0x101   :  { %v2640_v45 = vsel %vm2638_vm10, %v4897_v37, %v2639_v43  ;;  %vm2641_vm1 = vcmp.eq.s32.totalorder %v2636_v54, 2  ;;  %v1775_v40 = vshrl.u32 %v1770_v0, 16  ;;  %vm1780_vm7 = vc.u32 %v1778_v59, %v1774_v44 }
 0x102   :  { %v1982_v55 = vshrl.u32 %v1964_v18, %v1980_v39  ;;  %v1985_v9 = vadd.s32 127, %v1984_v62  ;;  %v1796_v12 = vshll.u32 %v1792_v36, 16  ;;  %v2643_v56 = vsel %vm2641_vm1, %v2642_v49, %v4906_v48  ;;  %v3925_v49 = vld [vmem:[#allocation2] sm:$0xf] }
 0x103   :  { %v1781_v34 = vsel %vm1780_vm7, 1, %v4120_v1  ;;  %v2644_v4 = vsel %vm2637_vm11, %v2640_v45, %v2643_v56  ;;  %vm1798_vm14 = vc.u32 %v1790_v52, %v1794_v6  ;;  %v1800_v18 = vadd.s32 %v1794_v6, %v1790_v52 }
 0x104   :  { %v1983_v20 = vor.u32 %v1982_v55, %v1981_v8  ;;  %v1986_v33 = vshll.u32 %v1985_v9, 23  ;;  %v1783_v50 = vadd.s32 %v1781_v34, %v1779_v24  ;;  %v2645_v43 = vsel %vm2634_vm3, nan, %v2644_v4 }
 0x105   :  { %v1799_v54 = vsel %vm1798_vm14, 1, %v4120_v1  ;;  %3047 = vmatpush.msrb.mxu3 %v2645_v43  ;;  %v1795_v9 = vshrl.u32 %v1791_v30, 16  ;;  %vm1802_vm15 = vc.u32 %v1800_v18, %v1796_v12  ;;  %v1753_v48 = vsel %vm1749_vm2, %v5001_v29, %v1752_v61 }
 0x106   :  { %v1987_v28 = vor.u32 4788187, %v1986_v33  ;;  %v1990_v51 = vcvt.s32.f32 %v1983_v20  ;;  %v1784_v0 = vadd.s32 %v1783_v50, %v1773_v22  ;;  %v1801_v44 = vadd.s32 %v1799_v54, %v1793_v26 }
 0x107   :  { %v1803_v24 = vsel %vm1802_vm15, 1, %v4120_v1  ;;  %v468_v52 = vmul.f32 5.0, %v3925_v49  ;;  %v1797_v38 = vshrl.u32 %v1792_v36, 16  ;;  %v5076_v39 = vadd.s32 %v1800_v18, %v1796_v12 }
 0x108   :  { %v1988_v37 = vand.u32 2147483647, %v1987_v28  ;;  %v1805_v14 = vadd.s32 %v1803_v24, %v1801_v44  ;;  %v5074_v59 = vadd.s32 %v1784_v0, %v1775_v40  ;;  %vm5080_vm3 = vcmp.le.f32.partialorder %v1870_v47, 0.7853982 }
 0x109   :  { %v469_v8 = vperm.slane %v468_v52, 3  ;;  %vm1872_vm2 = vcmp.lt.s32.totalorder %v4825_v32, 0  ;;  %v1754_v29 = vsel %vm1748_vm8, %v1751_v16, %v1753_v48  ;;  %v1994_v36 = vsub.s32 4, %v5007_v46 }
 0x10a   :  { %v1991_v17 = vmul.f32 %v1990_v51, %v1988_v37  ;;  %v1806_v61 = vadd.s32 %v1805_v14, %v1795_v9  ;;  %v1808_v55 = vmul.u32 %v5036_v23, %v1754_v29  ;;  %vm1810_vm12 = vc.u32 %v5074_v59, %v5076_v39 }
 0x10b   :  { %v5089_v62 = vmul.f32 %v4299_v27, %v469_v8  ;;  %v5092_v22 = vmul.f32 %v4293_v25, %v469_v8  ;;  %v1995_v40 = vsel %vm1872_vm2, %v1994_v36, %v5007_v46  ;;  %vm5118_vm4 = vcmp.le.f32.partialorder %v1715_v21, 0.7853982 }
 0x10c   :  { %v1992_v30 = vxor.u32 2147483648, %v1991_v17  ;;  %v1807_v6 = vadd.s32 %v1806_v61, %v1797_v38  ;;  %v5110_v18 = vsel %vm5080_vm3, 0, %v1995_v40  ;;  %vm1717_vm5 = vcmp.lt.s32.totalorder %v4835_v42, 0 }
 0x10d   :  { %v630_v19 = vand.u32 2139095040, %v5089_v62  ;;  %v5774_v45 = vand.u32 2147483647, %v5089_v62  ;;  %v475_v25 = vand.u32 2139095040, %v5092_v22  ;;  %v5773_v46 = vand.u32 2147483647, %v5092_v22 }
 0x10e   :  { %v1993_v47 = vsel %vm1872_vm2, %v1992_v30, %v1991_v17  ;;  %v1811_v27 = vadd.s32 1, %v1807_v6  ;;  %v2323_v24 = vand.u32 3, %v5110_v18  ;;  %vm2013_vm10 = vweird.f32 %v4825_v32 }
 0x10f   :  { %v1996_v16 = vsel %vm5080_vm3, %v4825_v32, %v1993_v47  ;;  %v631_v23 = vshrl.u32 %v630_v19, 23  ;;  %v476_v33 = vshrl.u32 %v475_v25, 23  ;;  %v634_v28 = vand.u32 8388607, %v5774_v45 }
 0x110   :  { %v1998_v12 = vmul.f32 %v1996_v16, %v1996_v16  ;;  %v1812_v20 = vsel %vm1810_vm12, %v1811_v27, %v1807_v6  ;;  %v5126_v29 = vand.u32 8388607, %v5773_v46  ;;  %vm2324_vm11 = vcmp.lt.s32.totalorder %v2323_v24, 2 }
 0x111   :  { %v1813_v4 = vadd.s32 %v1812_v20, %v1808_v55  ;;  %v3756_v50 = vadd.s32 4294967169, %v631_v23  ;;  %v3753_v9 = vadd.s32 4294967169, %v476_v33  ;;  %v635_v52 = vor.u32 8388608, %v634_v28 }
 0x112   :  { %v1999_v56 = vmul.f32 -0.001358992, %v1998_v12  ;;  %v2006_v34 = vmul.f32 -0.00019511016, %v1998_v12  ;;  %vm2325_vm1 = vcmp.eq.s32.totalorder %v2323_v24, 0  ;;  %vm2328_vm7 = vcmp.eq.s32.totalorder %v2323_v24, 2 }
 0x113   :  { %v1814_v54 = vadd.s32 536870912, %v1813_v4  ;;  %v637_v0 = vadd.s32 1, %v3756_v50  ;;  %v482_v61 = vadd.s32 1, %v3753_v9  ;;  %v5128_v47 = vshll.u32 %v635_v52, 8 }
 0x114   :  { %v2000_v51 = vadd.f32 0.041655596, %v1999_v56  ;;  %v2007_v43 = vadd.f32 0.008332121, %v2006_v34  ;;  %v1809_v25 = vadd.s32 %v5076_v39, %v5074_v59  ;;  %v5788_v24 = vmov 920167782  }
 0x115   :  { %v1815_v48 = vshrl.u32 %v1814_v54, 30  ;;  %vm638_vm8 = vcmp.gt.s32.totalorder %v637_v0, 0  ;;  %vm483_vm15 = vcmp.gt.s32.totalorder %v482_v61, 0  ;;  %v5143_v50 = vand.u32 65535, %v5128_v47 }
 0x116   :  { %v2001_v44 = vmul.f32 %v2000_v51, %v1998_v12  ;;  %v2008_v37 = vmul.f32 %v2007_v43, %v1998_v12  ;;  %v639_v38 = vsel %vm638_vm8, %v637_v0, 0  ;;  %v5146_v59 = vshrl.u32 %v5128_v47, 16 }
 0x117   :  { %v1816_v8 = vshll.u32 %v1815_v48, 30  ;;  %v1839_v26 = vsub.s32 4, %v1815_v48  ;;  %v641_v6 = vand.u32 31, %v639_v38  ;;  %v5157_v51 = vsel %vm483_vm15, %v482_v61, 0 }
 0x118   :  { %v2002_v14 = vadd.f32 -0.4999988, %v2001_v44  ;;  %v2009_v17 = vadd.f32 -0.16666654, %v2008_v37  ;;  %v2480_v37 = vadd.s32 3, %v4955_v15  ;;  %v5791_v45 = vxor.u32 2147483648, %v5003_v35 }
 0x119   :  { %v1817_v36 = vsub.s32 %v1813_v4, %v1816_v8  ;;  %v1840_v40 = vsel %vm1717_vm5, %v1839_v26, %v1815_v48  ;;  %v642_v56 = vsub.s32 32, %v641_v6  ;;  %v5140_v4 = vshrl.u32 %v639_v38, 5 }
 0x11a   :  { %v2003_v30 = vmul.f32 %v2002_v14, %v1998_v12  ;;  %v2010_v21 = vmul.f32 %v2009_v17, %v1998_v12  ;;  %v5155_v28 = vsel %vm5118_vm4, 0, %v1840_v40  ;;  %v644_v0 = vshll.u32 %v4122_v58, %v641_v6 }
 0x11b   :  { %vm1818_vm14 = vcmp.lt.s32.totalorder %v1817_v36, 0  ;;  %v1819_v27 = vsub.s32 0, %v1817_v36  ;;  %v643_v54 = vshrl.u32 %v4122_v58, %v642_v56  ;;  %v647_v9 = vshll.u32 %v4123_v60, %v641_v6 }
 0x11c   :  { %v5130_v55 = vadd.f32 1.0, %v2003_v30  ;;  %v2011_v19 = vadd.f32 1.0, %v2010_v21  ;;  %v645_v48 = vshrl.u32 %v4123_v60, %v642_v56  ;;  %v648_v52 = vshrl.u32 %v4124_v5, %v642_v56 }
 0x11d   :  { %v1820_v33 = vsel %vm1818_vm14, %v1819_v27, %v1817_v36  ;;  %v650_v14 = vshll.u32 %v4124_v5, %v641_v6  ;;  %v651_v17 = vshrl.u32 %v5775_v7, %v642_v56  ;;  %v2481_v61 = vand.u32 3, %v2480_v37 }
 0x11e   :  { %v5137_v23 = vmul.f32 %v2011_v19, %v1996_v16  ;;  %v2021_v20 = vxor.u32 2147483648, %v5130_v55  ;;  %v1821_v34 = vclz %v1820_v33  ;;  %v653_v30 = vshll.u32 %v5775_v7, %v641_v6 }
 0x11f   :  { %v2014_v27 = vadd.s32 3, %v5110_v18  ;;  %vm2483_vm2 = vcmp.eq.s32.totalorder %v2481_v61, 0  ;;  %v654_v40 = vshrl.u32 %v5788_v24, %v642_v56  ;;  %v656_v33 = vshll.u32 %v5788_v24, %v641_v6 }
 0x120   :  { %v2018_v39 = vxor.u32 2147483648, %v5137_v23  ;;  %v2330_v16 = vsel %vm2328_vm7, %v2021_v20, %v5137_v23  ;;  %v3778_v43 = vadd.s32 4294967294, %v1821_v34  ;;  %v5789_v34 = vmov 1326507024  }
 0x121   :  { %vm2482_vm12 = vcmp.lt.s32.totalorder %v2481_v61, 2  ;;  %vm2486_vm8 = vcmp.eq.s32.totalorder %v2481_v61, 2  ;;  %v5185_v6 = vand.u32 3, %v2014_v27  ;;  %vm660_vm7 = vcmp.lt.s32.totalorder %v5140_v4, 2 }
 0x122   :  { %v2327_v44 = vsel %vm2325_vm1, %v5130_v55, %v2018_v39  ;;  %vm3779_vm3 = vcmp.lt.s32.totalorder %v3778_v43, 0  ;;  %v2488_v12 = vsel %vm2486_vm8, %v5791_v45, %v5012_v53  ;;  %vm662_vm1 = vcmp.lt.s32.totalorder %v5140_v4, 4 }
 0x123   :  { %v2331_v38 = vsel %vm2324_vm11, %v2327_v44, %v2330_v16  ;;  %v1824_v26 = vsel %vm3779_vm3, 0, %v3778_v43  ;;  %v657_v16 = vshrl.u32 %v5789_v34, %v642_v56  ;;  %v5790_v43 = vxor.u32 2147483648, %v5012_v53 }
 0x124   :  { %v2332_v8 = vsel %vm2013_vm10, nan, %v2331_v38  ;;  %v1825_v15 = vsub.s32 32, %v1824_v26  ;;  %v1826_v21 = vshll.u32 %v1817_v36, %v1824_v26  ;;  %v1829_v19 = vsub.s32 4294967266, %v1824_v26 }
 0x125   :  { %3016 = vmatpush.msrb.mxu0 %v2332_v8  ;;  %v2485_v37 = vsel %vm2483_vm2, %v5003_v35, %v5790_v43  ;;  %v646_v38 = vor.u32 %v645_v48, %v644_v0  ;;  %v649_v36 = vor.u32 %v648_v52, %v647_v9  ;;  %v652_v8 = vor.u32 %v651_v17, %v650_v14 }
 0x126   :  { %v1827_v44 = vshrl.u32 %v1809_v25, %v1825_v15  ;;  %v1830_v46 = vadd.s32 127, %v1829_v19  ;;  %v2489_v56 = vsel %vm2482_vm12, %v2485_v37, %v2488_v12  ;;  %v655_v25 = vor.u32 %v654_v40, %v653_v30 }
 0x127   :  { %v658_v15 = vor.u32 %v657_v16, %v656_v33  ;;  %vm659_vm11 = vcmp.lt.s32.totalorder %v5140_v4, 1  ;;  %v2490_v0 = vsel %vm2479_vm9, nan, %v2489_v56  ;;  %vm661_vm14 = vcmp.lt.s32.totalorder %v5140_v4, 3 }
 0x128   :  { %v1828_v26 = vor.u32 %v1827_v44, %v1826_v21  ;;  %v1831_v18 = vshll.u32 %v1830_v46, 23  ;;  %3048 = vmatpush.msrb.mxu3 %v2490_v0  ;;  %v663_v35 = vsel %vm659_vm11, %v643_v54, %v646_v38  ;;  %v664_v53 = vsel %vm662_vm1, %v652_v8, 2102212464  ;;  %v5197_v46 = vld [vmem:[#allocation7] sm:$0xff]  ;;  %v5265_v0 = vld [vmem:[#allocation7 + $0x8] sm:$0xff] }
 0x129   :  { %3809 = vmatmul.msk.f32.vlgmr.msrb.gmra.mxu3 %vm5777_vm6, %v5197_v46  ;;  %vm2017_vm9 = vcmp.eq.s32.totalorder %v5185_v6, 0  ;;  %v665_v31 = vsel %vm661_vm14, %v649_v36, %v664_v53  ;;  %v667_v12 = vsel %vm659_vm11, %v646_v38, %v649_v36  ;;  %v5207_v9 = vand.u32 3, %v5155_v28 }
 0x12a   :  { %v1832_v19 = vor.u32 4788187, %v1831_v18  ;;  %v1835_v7 = vcvt.s32.f32 %v1828_v26  ;;  %vm2020_vm15 = vcmp.eq.s32.totalorder %v5185_v6, 2  ;;  %v668_v54 = vsel %vm662_vm1, %v655_v25, 920167782 }
 0x12b   :  { %v671_v48 = vsel %vm659_vm11, %v649_v36, %v652_v8  ;;  %v5216_v14 = vsel %vm660_vm7, %v663_v35, %v665_v31  ;;  %v669_v17 = vsel %vm661_vm14, %v652_v8, %v668_v54  ;;  %v672_v61 = vsel %vm662_vm1, %v658_v15, 1326507024 }
 0x12c   :  { %v1833_v45 = vand.u32 2147483647, %v1832_v19  ;;  %v5225_v30 = vsel %vm2017_vm9, %v5130_v55, %v2018_v39  ;;  %v670_v21 = vsel %vm660_vm7, %v667_v12, %v669_v17  ;;  %v5232_v27 = vand.u32 31, %v5157_v51 }
 0x12d   :  { %v700_v16 = vand.u32 65535, %v670_v21  ;;  %v701_v44 = vshrl.u32 %v670_v21, 16  ;;  %v5239_v39 = vsel %vm2020_vm15, %v2021_v20, %v5137_v23  ;;  %v720_v38 = vmul.u32 %v5128_v47, %v5216_v14 }
 0x12e   :  { %v1836_v52 = vmul.f32 %v1835_v7, %v1833_v45  ;;  %v673_v7 = vsel %vm661_vm14, %v655_v25, %v672_v61  ;;  %v5261_v15 = vsub.s32 32, %v5232_v27  ;;  %v489_v19 = vshll.u32 %v4122_v58, %v5232_v27 }
 0x12f   :  { %v674_v33 = vsel %vm660_vm7, %v671_v48, %v673_v7  ;;  %v702_v8 = vmul.u32 %v700_v16, %v5143_v50  ;;  %v703_v4 = vmul.u32 %v701_v44, %v5143_v50  ;;  %v5248_v26 = vmul.u32 %v700_v16, %v5146_v59 }
 0x130   :  { %v1837_v40 = vxor.u32 2147483648, %v1836_v52  ;;  %v678_v43 = vand.u32 65535, %v674_v33  ;;  %v679_v37 = vshrl.u32 %v674_v33, 16  ;;  %v705_v53 = vmul.u32 %v701_v44, %v5146_v59 }
 0x131   :  { %v706_v25 = vshll.u32 %v703_v4, 16  ;;  %3810 = vmatmul.msk.f32.gmra.mxu3 %vm5777_vm6, %v5265_v0  ;;  %vm2016_vm3 = vcmp.lt.s32.totalorder %v5185_v6, 2  ;;  %vm2174_vm2 = vcmp.eq.s32.totalorder %v5207_v9, 2  ;;  %vm2171_vm8 = vcmp.eq.s32.totalorder %v5207_v9, 0 }
 0x132   :  { %v1838_v36 = vsel %vm1717_vm5, %v1837_v40, %v1836_v52  ;;  %v680_v23 = vmul.u32 %v678_v43, %v5143_v50  ;;  %v681_v20 = vmul.u32 %v679_v37, %v5143_v50  ;;  %v682_v18 = vmul.u32 %v678_v43, %v5146_v59 }
 0x133   :  { %v5253_v55 = vsel %vm5118_vm4, %v4835_v42, %v1838_v36  ;;  %v683_v49 = vmul.u32 %v679_v37, %v5146_v59  ;;  %v708_v52 = vshll.u32 %v5248_v26, 16  ;;  %vm710_vm5 = vc.u32 %v702_v8, %v706_v25 }
 0x134   :  { %v1843_v56 = vmul.f32 %v5253_v55, %v5253_v55  ;;  %v684_v50 = vshll.u32 %v681_v20, 16  ;;  %v686_v35 = vshll.u32 %v682_v18, 16  ;;  %v685_v12 = vshrl.u32 %v681_v20, 16 }
 0x135   :  { %v687_v54 = vshrl.u32 %v682_v18, 16  ;;  %v711_v7 = vsel %vm710_vm5, 1, %v4120_v1  ;;  %v712_v40 = vadd.s32 %v706_v25, %v702_v8  ;;  %v707_v37 = vshrl.u32 %v703_v4, 16 }
 0x136   :  { %v1844_v45 = vmul.f32 -0.001358992, %v1843_v56  ;;  %v1851_v31 = vmul.f32 -0.00019511016, %v1843_v56  ;;  %vm688_vm4 = vc.u32 %v680_v23, %v684_v50  ;;  %v690_v48 = vadd.s32 %v684_v50, %v680_v23 }
 0x137   :  { %v689_v21 = vsel %vm688_vm4, 1, %v4120_v1  ;;  %v713_v33 = vadd.s32 %v711_v7, %v705_v53  ;;  %v709_v23 = vshrl.u32 %v5248_v26, 16  ;;  %vm714_vm11 = vc.u32 %v712_v40, %v708_v52 }
 0x138   :  { %v1845_v17 = vadd.f32 0.041655596, %v1844_v45  ;;  %v1852_v61 = vadd.f32 0.008332121, %v1851_v31  ;;  %v691_v59 = vadd.s32 %v689_v21, %v683_v49  ;;  %vm692_vm12 = vc.u32 %v690_v48, %v686_v35  ;;  %v5285_v49 = vld [vmem:[#allocation7 + $0x10] sm:$0xff] }
 0x139   :  { %v693_v43 = vsel %vm692_vm12, 1, %v4120_v1  ;;  %v5279_v20 = vadd.s32 %v712_v40, %v708_v52  ;;  %vm2170_vm1 = vcmp.lt.s32.totalorder %v5207_v9, 2  ;;  %v715_v8 = vsel %vm714_vm11, 1, %v4120_v1  ;;  %3811 = vmatmul.msk.f32.gmra.mxu3 %vm5777_vm6, %v5285_v49 }
 0x13a   :  { %v1846_v16 = vmul.f32 %v1845_v17, %v1843_v56  ;;  %v1853_v44 = vmul.f32 %v1852_v61, %v1843_v56  ;;  %v695_v36 = vadd.s32 %v693_v43, %v691_v59  ;;  %v490_v25 = vshrl.u32 %v4123_v60, %v5261_v15 }
 0x13b   :  { %vm1858_vm7 = vweird.f32 %v4835_v42  ;;  %v717_v26 = vadd.s32 %v715_v8, %v713_v33  ;;  %v492_v35 = vshll.u32 %v4123_v60, %v5232_v27  ;;  %v493_v53 = vshrl.u32 %v4124_v5, %v5261_v15 }
 0x13c   :  { %v1847_v18 = vadd.f32 -0.4999988, %v1846_v16  ;;  %v1854_v50 = vadd.f32 -0.16666654, %v1853_v44  ;;  %v696_v4 = vadd.s32 %v695_v36, %v685_v12  ;;  %v5295_v48 = vshrl.u32 %v5157_v51, 5 }
 0x13d   :  { %v495_v52 = vshll.u32 %v4124_v5, %v5232_v27  ;;  %v718_v61 = vadd.s32 %v717_v26, %v707_v37  ;;  %v5792_v12 = vmov 2102212464   ;;  %v491_v40 = vor.u32 %v490_v25, %v489_v19 }
 0x13e   :  { %v1848_v45 = vmul.f32 %v1847_v18, %v1843_v56  ;;  %v1855_v31 = vmul.f32 %v1854_v50, %v1843_v56  ;;  %v5299_v17 = vadd.s32 %v696_v4, %v687_v54  ;;  %v496_v21 = vshrl.u32 %v5792_v12, %v5261_v15 }
 0x13f   :  { %v498_v60 = vshll.u32 %v5792_v12, %v5232_v27  ;;  %v499_v51 = vshrl.u32 %v5788_v24, %v5261_v15  ;;  %v719_v56 = vadd.s32 %v718_v61, %v709_v23  ;;  %v494_v5 = vor.u32 %v493_v53, %v492_v35 }
 0x140   :  { %v5305_v7 = vadd.f32 1.0, %v1848_v45  ;;  %v1856_v59 = vadd.f32 1.0, %v1855_v31  ;;  %vm722_vm14 = vc.u32 %v5299_v17, %v5279_v20  ;;  %v501_v54 = vshll.u32 %v5788_v24, %v5232_v27 }
 0x141   :  { %v500_v44 = vor.u32 %v499_v51, %v498_v60  ;;  %v502_v19 = vshrl.u32 %v5789_v34, %v5261_v15  ;;  %v2023_v43 = vsel %vm2016_vm3, %v5225_v30, %v5239_v39  ;;  %v723_v37 = vadd.s32 1, %v719_v56  ;;  %v5332_v34 = vld [vmem:[#allocation7 + $0x18] sm:$0xff] }
 0x142   :  { %v5314_v33 = vmul.f32 %v1856_v59, %v5253_v55  ;;  %v1866_v16 = vxor.u32 2147483648, %v5305_v7  ;;  %v497_v36 = vor.u32 %v496_v21, %v495_v52  ;;  %vm504_vm9 = vcmp.lt.s32.totalorder %v5295_v48, 1  ;;  %3812 = vmatmul.msk.f32.gmra.mxu3 %vm5777_vm6, %v5332_v34 }
 0x143   :  { %vm506_vm15 = vcmp.lt.s32.totalorder %v5295_v48, 3  ;;  %vm507_vm4 = vcmp.lt.s32.totalorder %v5295_v48, 4  ;;  %v724_v6 = vsel %vm722_vm14, %v723_v37, %v719_v56  ;;  %v503_v30 = vor.u32 %v502_v19, %v501_v54 }
 0x144   :  { %v1863_v24 = vxor.u32 2147483648, %v5314_v33  ;;  %v2176_v27 = vsel %vm2174_vm2, %v1866_v16, %v5314_v33  ;;  %vm505_vm5 = vcmp.lt.s32.totalorder %v5295_v48, 2  ;;  %v512_v39 = vsel %vm504_vm9, %v491_v40, %v494_v5 }
 0x145   :  { %v725_v23 = vadd.s32 %v724_v6, %v720_v38  ;;  %v513_v18 = vsel %vm507_vm4, %v500_v44, 920167782  ;;  %v2024_v8 = vsel %vm2013_vm10, nan, %v2023_v43  ;;  %v516_v14 = vsel %vm504_vm9, %v494_v5, %v497_v36 }
 0x146   :  { %v2173_v55 = vsel %vm2171_vm8, %v5305_v7, %v1863_v24  ;;  %v514_v25 = vsel %vm506_vm15, %v497_v36, %v513_v18  ;;  %v517_v9 = vsel %vm507_vm4, %v503_v30, 1326507024  ;;  %v5793_v32 = vor.u32 8388608, %v5126_v29 }
 0x147   :  { %v2177_v50 = vsel %vm2170_vm1, %v2173_v55, %v2176_v27  ;;  %v726_v26 = vadd.s32 536870912, %v725_v23  ;;  %v515_v47 = vsel %vm505_vm5, %v512_v39, %v514_v25  ;;  %v518_v45 = vsel %vm506_vm15, %v500_v44, %v517_v9 }
 0x148   :  { %v2178_v4 = vsel %vm1858_vm7, nan, %v2177_v50  ;;  %v5368_v38 = vshll.u32 %v5793_v32, 8  ;;  %v545_v35 = vand.u32 65535, %v515_v47  ;;  %v546_v31 = vshrl.u32 %v515_v47, 16 }
 0x149   :  { %3017 = vmatpush.msrb.mxu0 %v2178_v4  ;;  %v5370_v53 = vshrl.u32 %v726_v26, 30  ;;  %v488_v52 = vshrl.u32 %v4122_v58, %v5261_v15  ;;  %v519_v61 = vsel %vm505_vm5, %v516_v14, %v518_v45  ;;  %v509_v44 = vsel %vm507_vm4, %v497_v36, 2102212464 }
 0x14a   :  { %v521_v12 = vand.u32 65535, %v5368_v38  ;;  %v522_v29 = vshrl.u32 %v5368_v38, 16  ;;  %v523_v60 = vand.u32 65535, %v519_v61  ;;  %v524_v59 = vshrl.u32 %v519_v61, 16 }
 0x14b   :  { %3018 = vmatpush.msrb.mxu0 %v2024_v8  ;;  %v728_v21 = vshll.u32 %v5370_v53, 30  ;;  %v508_v58 = vsel %vm504_vm9, %v488_v52, %v491_v40  ;;  %v510_v55 = vsel %vm506_vm15, %v494_v5, %v509_v44  ;;  %v721_v45 = vadd.s32 %v5279_v20, %v5299_v17 }
 0x14c   :  { %v548_v51 = vmul.u32 %v546_v31, %v521_v12  ;;  %v549_v56 = vmul.u32 %v545_v35, %v522_v29  ;;  %v525_v19 = vmul.u32 %v523_v60, %v521_v12  ;;  %v526_v43 = vmul.u32 %v524_v59, %v521_v12 }
 0x14d   :  { %v729_v54 = vsub.s32 %v725_v23, %v728_v21  ;;  %v527_v15 = vmul.u32 %v523_v60, %v522_v29  ;;  %v547_v37 = vmul.u32 %v545_v35, %v521_v12  ;;  %v528_v30 = vmul.u32 %v524_v59, %v522_v29 }
 0x14e   :  { %v551_v27 = vshll.u32 %v548_v51, 16  ;;  %v529_v39 = vshll.u32 %v526_v43, 16  ;;  %v550_v23 = vmul.u32 %v546_v31, %v522_v29  ;;  %v553_v50 = vshll.u32 %v549_v56, 16 }
 0x14f   :  { %vm730_vm10 = vcmp.lt.s32.totalorder %v729_v54, 0  ;;  %v731_v6 = vsub.s32 0, %v729_v54  ;;  %v531_v18 = vshll.u32 %v527_v15, 16  ;;  %v530_v36 = vshrl.u32 %v526_v43, 16 }
 0x150   :  { %vm533_vm3 = vc.u32 %v525_v19, %v529_v39  ;;  %v535_v25 = vadd.s32 %v529_v39, %v525_v19  ;;  %vm555_vm2 = vc.u32 %v547_v37, %v551_v27  ;;  %v557_v26 = vadd.s32 %v551_v27, %v547_v37 }
 0x151   :  { %v732_v8 = vsel %vm730_vm10, %v731_v6, %v729_v54  ;;  %v534_v40 = vsel %vm533_vm3, 1, %v4120_v1  ;;  %v552_v14 = vshrl.u32 %v548_v51, 16  ;;  %v556_v9 = vsel %vm555_vm2, 1, %v4120_v1 }
 0x152   :  { %v733_v4 = vclz %v732_v8  ;;  %v536_v47 = vadd.s32 %v534_v40, %v528_v30  ;;  %vm537_vm12 = vc.u32 %v535_v25, %v531_v18  ;;  %v558_v35 = vadd.s32 %v556_v9, %v550_v23 }
 0x153   :  { %v538_v5 = vsel %vm537_vm12, 1, %v4120_v1  ;;  %vm559_vm8 = vc.u32 %v557_v26, %v553_v50  ;;  %v532_v61 = vshrl.u32 %v527_v15, 16  ;;  %v554_v12 = vshrl.u32 %v549_v56, 16 }
 0x154   :  { %v3757_v32 = vadd.s32 4294967294, %v733_v4  ;;  %v540_v31 = vadd.s32 %v538_v5, %v536_v47  ;;  %v560_v52 = vsel %vm559_vm8, 1, %v4120_v1  ;;  %v1859_v60 = vadd.s32 3, %v5155_v28 }
 0x155   :  { %v562_v29 = vadd.s32 %v560_v52, %v558_v35  ;;  %v511_v59 = vsel %vm505_vm5, %v508_v58, %v510_v55  ;;  %v561_v20 = vadd.s32 %v557_v26, %v553_v50  ;;  %vm629_vm4 = vcmp.lt.s32.totalorder %v5089_v62, 0 }
 0x156   :  { %vm3758_vm11 = vcmp.lt.s32.totalorder %v3757_v32, 0  ;;  %v541_v51 = vadd.s32 %v540_v31, %v530_v36  ;;  %v1860_v27 = vand.u32 3, %v1859_v60  ;;  %v565_v56 = vmul.u32 %v5368_v38, %v511_v59 }
 0x157   :  { %v736_v21 = vsel %vm3758_vm11, 0, %v3757_v32  ;;  %v563_v37 = vadd.s32 %v562_v29, %v552_v14  ;;  %v751_v40 = vsub.s32 4, %v5370_v53  ;;  %vm770_vm8 = vweird.f32 %v5089_v62 }
 0x158   :  { %v737_v44 = vsub.s32 32, %v736_v21  ;;  %v738_v19 = vshll.u32 %v729_v54, %v736_v21  ;;  %v741_v43 = vsub.s32 4294967266, %v736_v21  ;;  %v542_v1 = vadd.s32 %v541_v51, %v532_v61 }
 0x159   :  { %v564_v30 = vadd.s32 %v563_v37, %v554_v12  ;;  %vm1862_vm1 = vcmp.eq.s32.totalorder %v1860_v27, 0  ;;  %vm1865_vm14 = vcmp.eq.s32.totalorder %v1860_v27, 2  ;;  %vm1861_vm9 = vcmp.lt.s32.totalorder %v1860_v27, 2 }
 0x15a   :  { %v739_v17 = vshrl.u32 %v721_v45, %v737_v44  ;;  %v742_v6 = vadd.s32 127, %v741_v43  ;;  %v1864_v48 = vsel %vm1862_vm1, %v5305_v7, %v1863_v24  ;;  %v1867_v54 = vsel %vm1865_vm14, %v1866_v16, %v5314_v33 }
 0x15b   :  { %vm567_vm15 = vc.u32 %v542_v1, %v561_v20  ;;  %v568_v58 = vadd.s32 1, %v564_v30  ;;  %v1868_v18 = vsel %vm1861_vm9, %v1864_v48, %v1867_v54  ;;  %v5794_v7 = vand.u32 2147483647, %v5089_v62 }
 0x15c   :  { %v740_v15 = vor.u32 %v739_v17, %v738_v19  ;;  %v743_v28 = vshll.u32 %v742_v6, 23  ;;  %v1869_v23 = vsel %vm1858_vm7, nan, %v1868_v18  ;;  %v752_v5 = vsel %vm629_vm4, %v751_v40, %v5370_v53 }
 0x15d   :  { %v569_v38 = vsel %vm567_vm15, %v568_v58, %v564_v30  ;;  %3019 = vmatpush.msrb.mxu0 %v1869_v23  ;;  %vm5410_vm5 = vcmp.le.f32.partialorder %v5794_v7, 0.7853982  ;;  %vm474_vm11 = vcmp.lt.s32.totalorder %v5092_v22, 0 }
 0x15e   :  { %v744_v39 = vor.u32 4788187, %v743_v28  ;;  %v747_v55 = vcvt.s32.f32 %v740_v15  ;;  %v570_v8 = vadd.s32 %v569_v38, %v565_v56  ;;  %3805 = vmatmul.msk.f32.vlgmr.msrb.gmra.mxu0 %vm5777_vm6, %v5197_v46  ;;  %v754_v61 = vsel %vm5410_vm5, 0, %v752_v5 }
 0x15f   :  { %v1080_v51 = vand.u32 3, %v754_v61 }
 0x160   :  { %v745_v50 = vand.u32 2147483647, %v744_v39  ;;  %v571_v36 = vadd.s32 536870912, %v570_v8 }
 0x161   :  { %vm1085_vm3 = vcmp.eq.s32.totalorder %v1080_v51, 2  ;;  %vm1082_vm2 = vcmp.eq.s32.totalorder %v1080_v51, 0  ;;  %vm1081_vm12 = vcmp.lt.s32.totalorder %v1080_v51, 2 }
 0x162   :  { %v748_v24 = vmul.f32 %v747_v55, %v745_v50  ;;  %v5414_v42 = vshrl.u32 %v571_v36, 30  ;;  %v5797_v50 = vand.u32 2147483647, %v5092_v22 }
 0x164   :  { %v749_v16 = vxor.u32 2147483648, %v748_v24  ;;  %v573_v4 = vshll.u32 %v5414_v42, 30  ;;  %vm473_vm1 = vcmp.le.f32.partialorder %v5797_v50, 0.7853982 }
 0x166   :  { %v750_v25 = vsel %vm629_vm4, %v749_v16, %v748_v24  ;;  %v574_v47 = vsub.s32 %v570_v8, %v573_v4  ;;  %3806 = vmatmul.msk.f32.gmra.mxu0 %vm5777_vm6, %v5265_v0  ;;  %v566_v0 = vadd.s32 %v561_v20, %v542_v1  ;;  %v596_v24 = vsub.s32 4, %v5414_v42 }
 0x167   :  { %v753_v46 = vsel %vm5410_vm5, %v5089_v62, %v750_v25  ;;  %v771_v4 = vadd.s32 3, %v754_v61 }
 0x168   :  { %v755_v26 = vmul.f32 %v753_v46, %v753_v46  ;;  %vm575_vm7 = vcmp.lt.s32.totalorder %v574_v47, 0  ;;  %v576_v32 = vsub.s32 0, %v574_v47  ;;  %v597_v33 = vsel %vm474_vm11, %v596_v24, %v5414_v42 }
 0x169   :  { %v599_v40 = vsel %vm473_vm1, 0, %v597_v33 }
 0x16a   :  { %v756_v14 = vmul.f32 -0.001358992, %v755_v26  ;;  %v763_v9 = vmul.f32 -0.00019511016, %v755_v26  ;;  %v577_v31 = vsel %vm575_vm7, %v576_v32, %v574_v47  ;;  %v772_v32 = vand.u32 3, %v771_v4 }
 0x16b   :  { %v578_v52 = vclz %v577_v31 }
 0x16c   :  { %v757_v35 = vadd.f32 0.041655596, %v756_v14  ;;  %v764_v45 = vadd.f32 0.008332121, %v763_v9  ;;  %vm774_vm14 = vcmp.eq.s32.totalorder %v772_v32, 0  ;;  %vm777_vm9 = vcmp.eq.s32.totalorder %v772_v32, 2 }
 0x16d   :  { %v3754_v21 = vadd.s32 4294967294, %v578_v52  ;;  %vm773_vm4 = vcmp.lt.s32.totalorder %v772_v32, 2 }
 0x16e   :  { %v758_v12 = vmul.f32 %v757_v35, %v755_v26  ;;  %v765_v29 = vmul.f32 %v764_v45, %v755_v26  ;;  %3807 = vmatmul.msk.f32.gmra.mxu0 %vm5777_vm6, %v5285_v49  ;;  %v926_v45 = vand.u32 3, %v599_v40 }
 0x16f   :  { %vm3755_vm10 = vcmp.lt.s32.totalorder %v3754_v21, 0 }
 0x170   :  { %v759_v60 = vadd.f32 -0.4999988, %v758_v12  ;;  %v766_v59 = vadd.f32 -0.16666654, %v765_v29  ;;  %v581_v19 = vsel %vm3755_vm10, 0, %v3754_v21  ;;  %vm931_vm15 = vcmp.eq.s32.totalorder %v926_v45, 2 }
 0x171   :  { %v582_v43 = vsub.s32 32, %v581_v19  ;;  %v583_v37 = vshll.u32 %v574_v47, %v581_v19  ;;  %v586_v27 = vsub.s32 4294967266, %v581_v19  ;;  %v616_v47 = vadd.s32 3, %v599_v40 }
 0x172   :  { %v760_v44 = vmul.f32 %v759_v60, %v755_v26  ;;  %v767_v53 = vmul.f32 %v766_v59, %v755_v26  ;;  %vm927_vm7 = vcmp.lt.s32.totalorder %v926_v45, 2  ;;  %vm928_vm10 = vcmp.eq.s32.totalorder %v926_v45, 0 }
 0x173   :  { %v584_v30 = vshrl.u32 %v566_v0, %v582_v43  ;;  %v587_v56 = vadd.s32 127, %v586_v27  ;;  %v617_v31 = vand.u32 3, %v616_v47 }
 0x174   :  { %v761_v17 = vadd.f32 1.0, %v760_v44  ;;  %v768_v6 = vadd.f32 1.0, %v767_v53 }
 0x175   :  { %v585_v48 = vor.u32 %v584_v30, %v583_v37  ;;  %v588_v20 = vshll.u32 %v587_v56, 23  ;;  %vm622_vm5 = vcmp.eq.s32.totalorder %v617_v31, 2  ;;  %v5447_v56 = vld [vmem:[%s5760_s11 + $0x8] sm:$0xff] }
 0x176   :  { %v769_v15 = vmul.f32 %v768_v6, %v753_v46  ;;  %v778_v28 = vxor.u32 2147483648, %v761_v17  ;;  %3808 = vmatmul.msk.f32.gmra.mxu0 %vm5777_vm6, %v5332_v34  ;;  %v4128_v6 = vmov 1  }
 0x177   :  { %v589_v49 = vor.u32 4788187, %v588_v20  ;;  %v592_v58 = vcvt.s32.f32 %v585_v48  ;;  %3901 = vset.pattern.permute.xlu0 %v4128_v6  ;;  %3902 = vset.pattern.permute.xlu1 %v4128_v6  ;;  %v2954_v48 = vld [vmem:[%s5754_s5] sm:$0xff]  ;;  %v5474_v20 = vpop.f32.mrf.mxu2 }
 0x178   :  { %v775_v1 = vxor.u32 2147483648, %v769_v15  ;;  %v1087_v54 = vsel %vm1085_vm3, %v778_v28, %v769_v15  ;;  %v779_v59 = vsel %vm777_vm9, %v778_v28, %v769_v15  ;;  %vm619_vm3 = vcmp.eq.s32.totalorder %v617_v31, 0  ;;  %3116 = vperm.xlu0 %3901, %v5447_v56   ;;  %v5453_v15 = vld [vmem:[%s5760_s11] sm:$0xff]  ;;  %3900 = vset.pattern.permute.xlu2 %v4128_v6  ;;  %v5461_v28 = vld [vmem:[%s5760_s11 + $0x18] sm:$0xff] }
 0x179   :  { %v590_v18 = vand.u32 2147483647, %v589_v49  ;;  %3112 = vperm.xlu1 %3902, %v5453_v15   ;;  %3124 = vperm.xlu2 %3900, %v5461_v28  }
 0x17a   :  { %v1084_v39 = vsel %vm1082_vm2, %v761_v17, %v775_v1  ;;  %v776_v60 = vsel %vm774_vm14, %v761_v17, %v775_v1  ;;  %vm618_vm2 = vcmp.lt.s32.totalorder %v617_v31, 2  ;;  %v2955_v1 = vld [vmem:[%s5754_s5 + $0x8] sm:$0xff] }
 0x17b   :  { %v1088_v55 = vsel %vm1081_vm12, %v1084_v39, %v1087_v54  ;;  %v593_v38 = vmul.f32 %v592_v58, %v590_v18  ;;  %vm615_vm12 = vweird.f32 %v5092_v22  ;;  %v780_v53 = vsel %vm773_vm4, %v776_v60, %v779_v59  ;;  %v2956_v54 = vld [vmem:[%s5754_s5 + $0x10] sm:$0xff]  ;;  %v2957_v58 = vld [vmem:[%s5754_s5 + $0x18] sm:$0xff]  ;;  %v2992_v18 = vpop.f32.mrf.mxu3 }
 0x17c   :  { %v1089_v23 = vsel %vm770_vm8, nan, %v1088_v55  ;;  %v781_v30 = vsel %vm770_vm8, nan, %v780_v53 }
 0x17d   :  { %3094 = vmatpush.msrb.mxu1 %v1089_v23  ;;  %v594_v8 = vxor.u32 2147483648, %v593_v38 }
 0x17f   :  { %v595_v36 = vsel %vm474_vm11, %v594_v8, %v593_v38  ;;  %v5483_v49 = vpop.f32.mrf.mxu2  ;;  %v392_v38 = vpop.f32.mrf.mxu1  ;;  %v3240_v8 = vld [vmem:[#allocation8] sm:$0xff] }
 0x180   :  { %v598_v7 = vsel %vm473_vm1, %v5092_v22, %v595_v36  ;;  %v5471_v22 = vld [vmem:[%s5760_s11 + $0x10] sm:$0xff] }
 0x181   :  { %v600_v34 = vmul.f32 %v598_v7, %v598_v7  ;;  %3120 = vperm.xlu2 %3900, %v5471_v22   ;;  %v3241_v36 = vld [vmem:[#allocation8 + $0x8] sm:$0xff] }
 0x183   :  { %v601_v16 = vmul.f32 -0.001358992, %v600_v34  ;;  %v608_v25 = vmul.f32 -0.00019511016, %v600_v34  ;;  %v2995_v23 = vpop.f32.mrf.mxu3 }
 0x185   :  { %v602_v46 = vadd.f32 0.041655596, %v601_v16  ;;  %v609_v26 = vadd.f32 0.008332121, %v608_v25  ;;  %v3242_v16 = vld [vmem:[#allocation8 + $0x10] sm:$0xff]  ;;  %v4129_v25 = vmov 2  }
 0x186   :  { %3904 = vset.pattern.permute.xlu1 %v4129_v25  ;;  %3905 = vset.pattern.permute.xlu0 %v4129_v25 }
 0x187   :  { %v603_v14 = vmul.f32 %v602_v46, %v600_v34  ;;  %v610_v9 = vmul.f32 %v609_v26, %v600_v34  ;;  %v5490_v39 = vpop.f32.mrf.mxu2  ;;  %v395_v24 = vpop.f32.mrf.mxu1  ;;  %3249 = vperm.xlu1 %3904, %v5447_v56   ;;  %3257 = vperm.xlu0 %3905, %v5461_v28   ;;  %v3243_v26 = vld [vmem:[#allocation8 + $0x18] sm:$0xff] }
 0x189   :  { %v604_v5 = vadd.f32 -0.4999988, %v603_v14  ;;  %v611_v35 = vadd.f32 -0.16666654, %v610_v9  ;;  %3903 = vset.pattern.permute.xlu2 %v4129_v25 }
 0x18a   :  { %3245 = vperm.xlu2 %3903, %v5453_v15  }
 0x18b   :  { %v605_v52 = vmul.f32 %v604_v5, %v600_v34  ;;  %v612_v12 = vmul.f32 %v611_v35, %v600_v34  ;;  %v2998_v50 = vpop.f32.mrf.mxu3 }
 0x18d   :  { %v606_v29 = vadd.f32 1.0, %v605_v52  ;;  %v613_v42 = vadd.f32 1.0, %v612_v12 }
 0x18f   :  { %v614_v61 = vmul.f32 %v613_v42, %v598_v7  ;;  %v623_v21 = vxor.u32 2147483648, %v606_v29  ;;  %v5492_v55 = vpop.f32.mrf.mxu2  ;;  %v398_v34 = vpop.f32.mrf.mxu1 }
 0x190   :  { %3284 = vmatpush.msra.mxu0 %v5492_v55 }
 0x191   :  { %v620_v51 = vxor.u32 2147483648, %v614_v61  ;;  %v933_v0 = vsel %vm931_vm15, %v623_v21, %v614_v61  ;;  %v624_v44 = vsel %vm622_vm5, %v623_v21, %v614_v61 }
 0x192   :  { %3285 = vmatpush.msra.mxu0 %v5490_v39  ;;  %3253 = vperm.xlu2 %3903, %v5471_v22  }
 0x193   :  { %v930_v19 = vsel %vm928_vm10, %v606_v29, %v620_v51  ;;  %v621_v43 = vsel %vm619_vm3, %v606_v29, %v620_v51  ;;  %v3001_v7 = vpop.f32.mrf.mxu3 }
 0x194   :  { %v934_v37 = vsel %vm927_vm7, %v930_v19, %v933_v0  ;;  %v625_v27 = vsel %vm618_vm2, %v621_v43, %v624_v44  ;;  %3286 = vmatpush.msra.mxu0 %v5483_v49 }
 0x195   :  { %v935_v17 = vsel %vm615_vm12, nan, %v934_v37  ;;  %v626_v62 = vsel %vm615_vm12, nan, %v625_v27 }
 0x196   :  { %3095 = vmatpush.msrb.mxu1 %v935_v17  ;;  %3287 = vmatpush.msra.mxu0 %v5474_v20 }
 0x197   :  { %3825 = vmatmul.msk.f32.vlgmr.msra.gmra.mxu0 %vm5777_vm6, %v3240_v8  ;;  %v401_v40 = vpop.f32.mrf.mxu1  ;;  %v143_v8 = vmul.u32 8, %v4242_v2 }
 0x198   :  { %3096 = vmatpush.msrb.mxu1 %v781_v30 }
 0x19a   :  { %3097 = vmatpush.msrb.mxu1 %v626_v62 }
 0x19b   :  { %3813 = vmatmul.msk.f32.vlgmr.msrb.gmra.mxu1 %vm5777_vm6, %v2954_v48 }
 0x19f   :  { %3826 = vmatmul.msk.f32.gmra.mxu0 %vm5777_vm6, %v3241_v36  ;;  %v3135_v36 = vld [vmem:[%s5756_s7 + $0x20] sm:$0xff] }
 0x1a3   :  { %3814 = vmatmul.msk.f32.gmra.mxu1 %vm5777_vm6, %v2955_v1  ;;  %v3131_v1 = vld [vmem:[%s5756_s7] sm:$0xff] }
 0x1a7   :  { %3827 = vmatmul.msk.f32.gmra.mxu0 %vm5777_vm6, %v3242_v16 }
 0x1ab   :  { %3815 = vmatmul.msk.f32.gmra.mxu1 %vm5777_vm6, %v2956_v54  ;;  %v5798_v54 = vlaneseq }
 0x1ac   :  { %v3050_v4 = vpop.f32.mrf.mxu3 }
 0x1af   :  { %3828 = vmatmul.msk.f32.gmra.mxu0 %vm5777_vm6, %v3243_v26 }
 0x1b3   :  { %3816 = vmatmul.msk.f32.gmra.mxu1 %vm5777_vm6, %v2957_v58  ;;  %v5513_v58 = vand.u32 127, %v5798_v54  ;;  %v170_v54 = vadd.s32 120, %v4242_v2 }
 0x1b4   :  { %v3053_v47 = vpop.f32.mrf.mxu3 }
 0x1b5   :  { %vm145_vm14 = vcmp.ge.s32.totalorder %v5513_v58, %v143_v8 }
 0x1bc   :  { %v3056_v5 = vpop.f32.mrf.mxu3 }
 0x1c5   :  { %v3059_v42 = vpop.f32.mrf.mxu3 }
 0x1d3   :  { %v3125_v45 = vpop.permute.xlu2 %3124 }
 0x1db   :  { %v3021_v33 = vpop.f32.mrf.mxu0  ;;  %v3121_v53 = vpop.permute.xlu2 %3120 }
 0x1dc   :  { %v3062_v61 = vmax.f32 %v2992_v18, %v3021_v33  ;;  %v144_v18 = vmul.u32 8, %v4245_v3  ;;  %v3137_v33 = vld [vmem:[%s5756_s7 + $0x30] sm:$0xff] }
 0x1de   :  { %v3066_v51 = vmax.f32 %v3062_v61, %v3050_v4  ;;  %vm146_vm8 = vcmp.ge.s32.totalorder %v5513_v58, %v144_v18 }
 0x1e3   :  { %v3024_v46 = vpop.f32.mrf.mxu0 }
 0x1e4   :  { %v3063_v12 = vmax.f32 %v2995_v23, %v3024_v46  ;;  %v148_v23 = vadd.s32 8, %v144_v18  ;;  %v3246_v16 = vpop.permute.xlu2 %3245  ;;  %v264_v46 = vld [vmem:[%s5760_s11 + $0x28] sm:$0xff] }
 0x1e6   :  { %v3067_v60 = vmax.f32 %v3063_v12, %v3053_v47  ;;  %vm150_vm11 = vcmp.lt.s32.totalorder %v5513_v58, %v148_v23  ;;  %v263_v47 = vld [vmem:[%s5760_s11 + $0x20] sm:$0xff]  ;;  %v169_v23 = vadd.s32 112, %v4242_v2 }
 0x1e7   :  { %vm5523_vm1 = vmand %vm146_vm8, %vm150_vm11 }
 0x1ea   :  { %v3117_v37 = vpop.permute.xlu0 %3116 }
 0x1eb   :  { %v3027_v9 = vpop.f32.mrf.mxu0  ;;  %v3113_v30 = vpop.permute.xlu1 %3112 }
 0x1ec   :  { %v3064_v31 = vmax.f32 %v2998_v50, %v3027_v9  ;;  %v5801_v50 = vmov 1.0  }
 0x1ed   :  { %3829 = vmatpush.msk.msra.mxu3 %vm5523_vm1, %v5801_v50 }
 0x1ee   :  { %v3068_v21 = vmax.f32 %v3064_v31, %v3056_v5 }
 0x1f3   :  { %v3030_v35 = vpop.f32.mrf.mxu0 }
 0x1f4   :  { %v3065_v29 = vmax.f32 %v3001_v7, %v3030_v35  ;;  %v4130_v7 = vmov 3  }
 0x1f5   :  { %3906 = vset.pattern.permute.xlu1 %v4130_v7  ;;  %3907 = vset.pattern.permute.xlu2 %v4130_v7 }
 0x1f6   :  { %v3069_v59 = vmax.f32 %v3065_v29, %v3059_v42  ;;  %3152 = vperm.xlu1 %3906, %v5461_v28   ;;  %3148 = vperm.xlu2 %3907, %v5471_v22   ;;  %v266_v28 = vld [vmem:[%s5760_s11 + $0x38] sm:$0xff]  ;;  %v265_v22 = vld [vmem:[%s5760_s11 + $0x30] sm:$0xff] }
 0x1f9   :  { %v3258_v5 = vpop.permute.xlu0 %3257 }
 0x1fe   :  { %3144 = vperm.xlu1 %3906, %v5447_v56   ;;  %3140 = vperm.xlu2 %3907, %v5453_v15   ;;  %v3138_v56 = vld [vmem:[%s5756_s7 + $0x38] sm:$0xff]  ;;  %v3250_v15 = vpop.permute.xlu1 %3249 }
 0x206   :  { %3172 = vperm.xlu1 %3906, %v266_v28   ;;  %3167 = vperm.xlu2 %3907, %v265_v22  }
 0x20e   :  { %3162 = vperm.xlu1 %3906, %v264_v46   ;;  %3157 = vperm.xlu2 %3907, %v263_v47  }
 0x214   :  { %v3289_v25 = vpop.f32.mrf.mxu0 }
 0x215   :  { %v3290_v4 = vadd.f32 %v3289_v25, %v3246_v16 }
 0x218   :  { %v3099_v14 = vpop.f32.mrf.mxu1 }
 0x219   :  { %v3100_v27 = vadd.f32 %v3099_v14, %v3066_v51  ;;  %v3254_v14 = vpop.permute.xlu2 %3253 }
 0x21b   :  { %v3127_v48 = vadd.f32 %v3113_v30, %v3100_v27 }
 0x220   :  { %v3102_v32 = vpop.f32.mrf.mxu1 }
 0x221   :  { %v3103_v19 = vadd.f32 %v3102_v32, %v3067_v60 }
 0x223   :  { %v3128_v62 = vadd.f32 %v3117_v37, %v3103_v19 }
 0x228   :  { %v3105_v52 = vpop.f32.mrf.mxu1 }
 0x229   :  { %v3106_v0 = vadd.f32 %v3105_v52, %v3068_v21 }
 0x22b   :  { %v3129_v6 = vadd.f32 %v3121_v53, %v3106_v0 }
 0x230   :  { %v3108_v44 = vpop.f32.mrf.mxu1 }
 0x231   :  { %v3109_v43 = vadd.f32 %v3108_v44, %v3069_v59 }
 0x233   :  { %v3130_v17 = vadd.f32 %v3125_v45, %v3109_v43 }
 0x235   :  { %3207 = vmatpush.msrb.mxu2 %v3130_v17 }
 0x237   :  { %3208 = vmatpush.msrb.mxu2 %v3129_v6 }
 0x239   :  { %3209 = vmatpush.msrb.mxu2 %v3128_v62  ;;  %v4131_v62 = vmov 0.0  }
 0x23b   :  { %3210 = vmatpush.msrb.mxu2 %v3127_v48 }
 0x23d   :  { %3211 = vmatpush.msrb.mxu2 %v401_v40  ;;  %v3292_v40 = vpop.f32.mrf.mxu0 }
 0x23e   :  { %v3293_v26 = vadd.f32 %v3292_v40, %v3250_v15 }
 0x23f   :  { %3212 = vmatpush.msrb.mxu2 %v398_v34  ;;  %v3136_v34 = vld [vmem:[%s5756_s7 + $0x28] sm:$0xff] }
 0x241   :  { %3213 = vmatpush.msrb.mxu2 %v395_v24  ;;  %v147_v24 = vadd.s32 8, %v143_v8  ;;  %v166_v8 = vadd.s32 88, %v4242_v2 }
 0x243   :  { %3214 = vmatpush.msrb.mxu2 %v392_v38  ;;  %v3132_v38 = vld [vmem:[%s5756_s7 + $0x8] sm:$0xff]  ;;  %vm149_vm9 = vcmp.lt.s32.totalorder %v5513_v58, %v147_v24  ;;  %v164_v24 = vadd.s32 72, %v4242_v2 }
 0x244   :  { %3817 = vmatmul.msk.f32.vlgmr.msrb.gmra.mxu2 %vm362_vm13, %v3131_v1  ;;  %vm5546_vm15 = vmand %vm145_vm14, %vm149_vm9  ;;  %v5600_v1 = vmul.u32 8, %v5513_v58 }
 0x245   :  { %3862 = vmatpush.xpose.msk.msra.mxu2 %vm294_vm0, %v5492_v55  ;;  %3830 = vmatpush.msk.msra.mxu3 %vm5546_vm15, %v5801_v50  ;;  %v3295_v9 = vpop.f32.mrf.mxu0  ;;  %v3689_v48 = vsel %vm5546_vm15, 1.0, %v4131_v62  ;;  %v5727_v55 = vld [vmem:[%s5761_s12] sm:$0x7] }
 0x246   :  { %3831 = vmatmul.msk.f32.vlgmr.msra.gmra.mxu3 %vm294_vm0, %v3290_v4  ;;  %v3296_v32 = vadd.f32 %v3295_v9, %v3254_v14  ;;  %v5604_v18 = vadd.s32 8, %v5600_v1  ;;  %vm186_vm5 = vcmp.ge.s32.totalorder %v169_v23, %v5600_v1  ;;  %vm183_vm9 = vcmp.ge.s32.totalorder %v166_v8, %v5600_v1 }
 0x248   :  { %vm204_vm4 = vcmp.lt.s32.totalorder %v170_v54, %v5604_v18  ;;  %vm203_vm7 = vcmp.lt.s32.totalorder %v169_v23, %v5604_v18 }
 0x249   :  { %3863 = vmatpush.xpose.msk.msra.mxu2 %vm294_vm0, %v5490_v39  ;;  %v3133_v39 = vld [vmem:[%s5756_s7 + $0x10] sm:$0xff]  ;;  %vm219_vm12 = vmand %vm186_vm5, %vm203_vm7 }
 0x24c   :  { %3818 = vmatmul.msk.f32.gmra.mxu2 %vm362_vm13, %v3132_v38  ;;  %v168_v38 = vadd.s32 104, %v4242_v2 }
 0x24d   :  { %3864 = vmatpush.xpose.msk.msra.mxu2 %vm294_vm0, %v5483_v49  ;;  %v3134_v49 = vld [vmem:[%s5756_s7 + $0x18] sm:$0xff]  ;;  %v3298_v35 = vpop.f32.mrf.mxu0 }
 0x24e   :  { %3832 = vmatmul.msk.f32.gmra.mxu3 %vm294_vm0, %v3293_v26  ;;  %v3299_v45 = vadd.f32 %v3298_v35, %v3258_v5  ;;  %vm185_vm3 = vcmp.ge.s32.totalorder %v168_v38, %v5600_v1  ;;  %vm202_vm2 = vcmp.lt.s32.totalorder %v168_v38, %v5604_v18  ;;  %v4132_v38 = vmov 32.0  }
 0x24f   :  { %vm218_vm14 = vmand %vm185_vm3, %vm202_vm2  ;;  %vm181_vm3 = vcmp.ge.s32.totalorder %v164_v24, %v5600_v1  ;;  %vm198_vm2 = vcmp.lt.s32.totalorder %v164_v24, %v5604_v18 }
 0x250   :  { %v3149_v61 = vpop.permute.xlu2 %3148 }
 0x251   :  { %3865 = vmatpush.xpose.msk.msra.mxu2 %vm294_vm0, %v5474_v20 }
 0x254   :  { %3819 = vmatmul.msk.f32.gmra.mxu2 %vm362_vm13, %v3133_v39  ;;  %v167_v39 = vadd.s32 96, %v4242_v2 }
 0x256   :  { %3833 = vmatmul.msk.f32.gmra.mxu3 %vm294_vm0, %v3296_v32  ;;  %vm184_vm8 = vcmp.ge.s32.totalorder %v167_v39, %v5600_v1  ;;  %vm201_vm11 = vcmp.lt.s32.totalorder %v167_v39, %v5604_v18 }
 0x258   :  { %v3141_v0 = vpop.permute.xlu2 %3140 }
 0x25c   :  { %3820 = vmatmul.msk.f32.gmra.mxu2 %vm362_vm13, %v3134_v49  ;;  %v165_v49 = vadd.s32 80, %v4242_v2 }
 0x25e   :  { %3834 = vmatmul.msk.f32.gmra.mxu3 %vm294_vm0, %v3299_v45  ;;  %vm182_vm5 = vcmp.ge.s32.totalorder %v165_v49, %v5600_v1  ;;  %vm199_vm7 = vcmp.lt.s32.totalorder %v165_v49, %v5604_v18  ;;  %v3538_v45 = vld [vmem:[#allocation10 + $0x18] sm:$0xff] }
 0x264   :  { %3821 = vmatmul.msk.f32.gmra.mxu2 %vm362_vm13, %v3135_v36  ;;  %v163_v36 = vadd.s32 64, %v4242_v2 }
 0x268   :  { %v3153_v21 = vpop.permute.xlu1 %3152 }
 0x26c   :  { %3822 = vmatmul.msk.f32.gmra.mxu2 %vm362_vm13, %v3136_v34 }
 0x270   :  { %v3145_v53 = vpop.permute.xlu1 %3144 }
 0x274   :  { %3823 = vmatmul.msk.f32.gmra.mxu2 %vm362_vm13, %v3137_v33 }
 0x278   :  { %v3173_v35 = vpop.permute.xlu1 %3172 }
 0x27c   :  { %3824 = vmatmul.msk.f32.gmra.mxu2 %vm362_vm13, %v3138_v56  ;;  %vm187_vm13 = vcmp.ge.s32.totalorder %v170_v54, %v5600_v1 }
 0x27d   :  { %vm220_vm10 = vmand %vm187_vm13, %vm204_vm4  ;;  %vm200_vm13 = vcmp.lt.s32.totalorder %v166_v8, %v5604_v18 }
 0x27e   :  { %3836 = vmatpush.msk.msrb.mxu0 %vm220_vm10, %v5801_v50  ;;  %vm217_vm4 = vmand %vm184_vm8, %vm201_vm11  ;;  %vm180_vm8 = vcmp.ge.s32.totalorder %v163_v36, %v5600_v1  ;;  %vm197_vm11 = vcmp.lt.s32.totalorder %v163_v36, %v5604_v18 }
 0x27f   :  { %vm216_vm10 = vmand %vm183_vm9, %vm200_vm13  ;;  %vm196_vm9 = vcmp.lt.s32.totalorder %v4262_v11, %v5604_v18 }
 0x280   :  { %3837 = vmatpush.msk.msrb.mxu0 %vm219_vm12, %v5801_v50  ;;  %vm215_vm12 = vmand %vm182_vm5, %vm199_vm7  ;;  %vm195_vm5 = vcmp.lt.s32.totalorder %v4487_v41, %v5604_v18 }
 0x281   :  { %vm213_vm13 = vmand %vm180_vm8, %vm197_vm11  ;;  %vm193_vm8 = vcmp.lt.s32.totalorder %v4576_v57, %v5604_v18 }
 0x282   :  { %3838 = vmatpush.msk.msrb.mxu0 %vm218_vm14, %v5801_v50  ;;  %vm214_vm14 = vmand %vm181_vm3, %vm198_vm2  ;;  %vm3370_vm3 = vcmask 1043456   ;;  %vm177_vm2 = vcmp.ge.s32.totalorder %v4562_v13, %v5600_v1 }
 0x284   :  { %3839 = vmatpush.msk.msrb.mxu0 %vm217_vm4, %v5801_v50  ;;  %vm178_vm4 = vcmp.ge.s32.totalorder %v4487_v41, %v5600_v1 }
 0x286   :  { %3840 = vmatpush.msk.msrb.mxu0 %vm216_vm10, %v5801_v50  ;;  %vm211_vm10 = vmand %vm178_vm4, %vm195_vm5  ;;  %vm174_vm4 = vcmp.ge.s32.totalorder %v4603_v10, %v5600_v1  ;;  %vm191_vm5 = vcmp.lt.s32.totalorder %v4603_v10, %v5604_v18 }
 0x288   :  { %3841 = vmatpush.msk.msrb.mxu0 %vm215_vm12, %v5801_v50  ;;  %vm194_vm12 = vcmp.lt.s32.totalorder %v4562_v13, %v5604_v18 }
 0x289   :  { %vm210_vm11 = vmand %vm177_vm2, %vm194_vm12  ;;  %vm190_vm2 = vcmp.lt.s32.totalorder %v4245_v3, %v5604_v18 }
 0x28a   :  { %3842 = vmatpush.msk.msrb.mxu0 %vm214_vm14, %v5801_v50  ;;  %vm175_vm14 = vcmp.ge.s32.totalorder %v4600_v63, %v5600_v1  ;;  %vm5674_vm12 = vmand %vm174_vm4, %vm191_vm5  ;;  %vm5810_vm4 = vcmask 261120  }
 0x28b   :  { %v3693_v40 = vsel %vm5674_vm12, 1.0, %v4131_v62  ;;  %vm5811_vm5 = vmmov %vm5810_vm4 }
 0x28c   :  { %3843 = vmatpush.msk.msrb.mxu0 %vm213_vm13, %v5801_v50 }
 0x2c7   :  { %v3216_v31 = vpop.f32.mrf.mxu2 }
 0x2c8   :  { %v3217_v27 = vadd.f32 %v3216_v31, %v3141_v0  ;;  %v3537_v31 = vld [vmem:[#allocation10 + $0x10] sm:$0xff] }
 0x2c9   :  { %v3330_v52 = vpop.f32.mrf.mxu3 }
 0x2ca   :  { %v3342_v30 = vmul.f32 %v3330_v52, %v3217_v27 }
 0x2cf   :  { %v3219_v12 = vpop.f32.mrf.mxu2 }
 0x2d0   :  { %v3220_v43 = vadd.f32 %v3219_v12, %v3145_v53 }
 0x2d1   :  { %v3333_v29 = vpop.f32.mrf.mxu3 }
 0x2d2   :  { %v3343_v17 = vmul.f32 %v3333_v29, %v3220_v43  ;;  %v3536_v29 = vld [vmem:[#allocation10 + $0x8] sm:$0xff] }
 0x2d7   :  { %v3222_v42 = vpop.f32.mrf.mxu2 }
 0x2d8   :  { %v3223_v51 = vadd.f32 %v3222_v42, %v3149_v61  ;;  %v3168_v42 = vpop.permute.xlu2 %3167 }
 0x2d9   :  { %v3336_v60 = vpop.f32.mrf.mxu3 }
 0x2da   :  { %v3344_v6 = vmul.f32 %v3336_v60, %v3223_v51  ;;  %v3163_v51 = vpop.permute.xlu1 %3162 }
 0x2df   :  { %v3225_v59 = vpop.f32.mrf.mxu2 }
 0x2e0   :  { %v3226_v44 = vadd.f32 %v3225_v59, %v3153_v21 }
 0x2e1   :  { %v3339_v19 = vpop.f32.mrf.mxu3 }
 0x2e2   :  { %v3345_v37 = vmul.f32 %v3339_v19, %v3226_v44 }
 0x2e4   :  { %3361 = vmatpush.msra.mxu1 %v3345_v37  ;;  %v3535_v37 = vld [vmem:[#allocation10] sm:$0xff] }
 0x2e6   :  { %3362 = vmatpush.msra.mxu1 %v3344_v6 }
 0x2e7   :  { %v3228_v26 = vpop.f32.mrf.mxu2 }
 0x2e8   :  { %3363 = vmatpush.msra.mxu1 %v3343_v17 }
 0x2ea   :  { %3364 = vmatpush.msra.mxu1 %v3342_v30 }
 0x2eb   :  { %3835 = vmatmul.msk.f32.vlgmr.msra.gmra.mxu1 %vm5777_vm6, %v3689_v48  ;;  %vm179_vm6 = vcmp.ge.s32.totalorder %v4262_v11, %v5600_v1 }
 0x2ec   :  { %3852 = vmatpush.msk.msrb.mxu1 %vm5523_vm1, %v5801_v50  ;;  %vm212_vm7 = vmand %vm179_vm6, %vm196_vm9  ;;  %vm176_vm6 = vcmp.ge.s32.totalorder %v4576_v57, %v5600_v1  ;;  %vm192_vm9 = vcmp.lt.s32.totalorder %v4600_v63, %v5604_v18 }
 0x2ed   :  { %3844 = vmatpush.msk.msrb.mxu0 %vm212_vm7, %v5801_v50  ;;  %vm209_vm13 = vmand %vm176_vm6, %vm193_vm8  ;;  %vm172_vm6 = vcmp.ge.s32.totalorder %v4242_v2, %v5600_v1  ;;  %vm189_vm8 = vcmp.lt.s32.totalorder %v4242_v2, %v5604_v18 }
 0x2ee   :  { %3853 = vmatpush.msk.msrb.mxu1 %vm5546_vm15, %v5801_v50  ;;  %vm5665_vm7 = vmand %vm175_vm14, %vm192_vm9  ;;  %vm3422_vm9 = vcmask 31744  }
 0x2ef   :  { %3845 = vmatpush.msk.msrb.mxu0 %vm211_vm10, %v5801_v50  ;;  %vm173_vm10 = vcmp.ge.s32.totalorder %v4245_v3, %v5600_v1  ;;  %vm205_vm14 = vmand %vm172_vm6, %vm189_vm8  ;;  %v3694_v46 = vsel %vm5665_vm7, 1.0, %v4131_v62  ;;  %v3231_v47 = vpop.f32.mrf.mxu2 }
 0x2f0   :  { %v3691_v22 = vsel %vm205_vm14, 1.0, %v4131_v62  ;;  %v3232_v44 = vadd.f32 %v3231_v47, %v3163_v51 }
 0x2f1   :  { %3846 = vmatpush.msk.msrb.mxu0 %vm210_vm11, %v5801_v50  ;;  %vm5685_vm11 = vmand %vm173_vm10, %vm190_vm2 }
 0x2f2   :  { %v3692_v15 = vsel %vm5685_vm11, 1.0, %v4131_v62 }
 0x2f3   :  { %3847 = vmatpush.msk.msrb.mxu0 %vm209_vm13, %v5801_v50  ;;  %vm254_vm13 = vcmp.eq.s32.totalorder %v4245_v3, %v5513_v58 }
 0x2f4   :  { %v3708_v27 = vsel %vm254_vm13, 1.0, %v4131_v62 }
 0x2f5   :  { %3848 = vmatpush.msk.msrb.mxu0 %vm5665_vm7, %v5801_v50 }
 0x2f7   :  { %3849 = vmatpush.msk.msrb.mxu0 %vm5674_vm12, %v5801_v50  ;;  %v3234_v32 = vpop.f32.mrf.mxu2 }
 0x2f8   :  { %v3235_v59 = vadd.f32 %v3234_v32, %v3168_v42 }
 0x2f9   :  { %3850 = vmatpush.msk.msrb.mxu0 %vm5685_vm11, %v5801_v50 }
 0x2fb   :  { %3851 = vmatpush.msk.msrb.mxu0 %vm205_vm14, %v5801_v50 }
 0x2fd   :  { %3558 = vmatpush.msra.mxu0 %v3538_v45 }
 0x2ff   :  { %v3237_v12 = vpop.f32.mrf.mxu2  ;;  %3559 = vmatpush.msra.mxu0 %v3537_v31 }
 0x300   :  { %v3238_v61 = vadd.f32 %v3237_v12, %v3173_v35 }
 0x301   :  { %3560 = vmatpush.msra.mxu0 %v3536_v29  ;;  %v3622_v29 = vperm.slane %v5727_v55, 1 }
 0x303   :  { %3561 = vmatpush.msra.mxu0 %v3535_v37 }
 0x368   :  { %v3366_v7 = vpop.f32.mrf.mxu1 }
 0x369   :  { %v3369_v11 = vmul.f32 0.35355338, %v3366_v7 }
 0x36b   :  { %v3371_v34 = vsel %vm3370_vm3, %v3369_v11, -inf }
 0x36c   :  { %3372 = vmax.xlane.f32.xlu0 %v3371_v34 }
 0x3df   :  { %v3373_v63 = vpop.xlane.xlu0 %3372 }
 0x3e0   :  { %v3374_v10 = vsub.f32 %v3369_v11, %v3373_v63 }
 0x3e2   :  { %v3375_v33 = vmul.f32 1.442695, %v3374_v10 }
 0x3e4   :  { %3915 = vpow2.f32 %v3375_v33 }
 0x3ea   :  { %v3916_v16 = vpop.eup %3915 }
 0x3eb   :  { %3393 = vmatmul.f32.vlgmr.msrb.gmra.mxu0 %v3916_v16 }
 0x468   :  { %v3394_v25 = vpop.f32.mrf.mxu0 }
 0x469   :  { %3854 = vmatmul.msk.f32.vlgmr.msrb.gmra.mxu1 %vm294_vm0, %v3394_v25 }
 0x4e6   :  { %v3417_v28 = vpop.f32.mrf.mxu1 }
 0x4e7   :  { %3917 = vrcp.f32 %v3417_v28 }
 0x4e8   :  { %3919 = vrcp.f32 %v4132_v38 }
 0x4ed   :  { %v3918_v4 = vpop.eup %3917 }
 0x4ee   :  { %v3421_v56 = vmul.f32 %v3918_v4, %v3916_v16  ;;  %v3920_v39 = vpop.eup %3919 }
 0x4ef   :  { %v3578_v8 = vmul.f32 32.0, %v3920_v39 }
 0x4f0   :  { %3855 = vmatpush.msk.msra.mxu1 %vm3370_vm3, %v3421_v56  ;;  %vm253_vm3 = vcmp.eq.s32.totalorder %v4242_v2, %v5513_v58  ;;  %v3158_v2 = vpop.permute.xlu2 %3157  ;;  %v3630_v56 = vld [vmem:[#allocation11 + $0x10] sm:$0xff] }
 0x4f1   :  { %3856 = vmatmul.msk.f32.vlgmr.msra.gmra.mxu1 %vm3422_vm9, %v3691_v22  ;;  %v3707_v52 = vsel %vm253_vm3, 1.0, %v4131_v62  ;;  %v3229_v19 = vadd.f32 %v3228_v26, %v3158_v2  ;;  %v3579_v49 = vsub.f32 1.0, %v3578_v8  ;;  %v3631_v22 = vld [vmem:[#allocation11 + $0x18] sm:$0xff] }
 0x4f2   :  { %3866 = vmatmul.msk.f32.vlgmr.msra.gmra.mxu2 %vm294_vm0, %v3707_v52  ;;  %3654 = vmatpush.msrb.mxu0 %v3631_v22 }
 0x4f3   :  { %v3580_v24 = vmul.f32 %v3920_v39, %v3579_v49 }
 0x4f4   :  { %3655 = vmatpush.msrb.mxu0 %v3630_v56 }
 0x4f5   :  { %v3581_v36 = vadd.f32 %v3920_v39, %v3580_v24 }
 0x4f9   :  { %3857 = vmatmul.msk.f32.gmra.mxu1 %vm3422_vm9, %v3692_v15 }
 0x4fa   :  { %3867 = vmatmul.msk.f32.gmra.mxu2 %vm294_vm0, %v3708_v27  ;;  %v3910_v27 = vld [vmem:[%s5762_s13] ss:$0 sm:$0xff] }
 0x501   :  { %3858 = vmatmul.msk.f32.gmra.mxu1 %vm3422_vm9, %v3693_v40  ;;  %v3629_v40 = vld [vmem:[#allocation11 + $0x8] sm:$0xff] }
 0x502   :  { %3656 = vmatpush.msrb.mxu0 %v3629_v40 }
 0x509   :  { %3859 = vmatmul.msk.f32.gmra.mxu1 %vm3422_vm9, %v3694_v46  ;;  %v3628_v46 = vld [vmem:[#allocation11] sm:$0xff] }
 0x50a   :  { %3657 = vmatpush.msrb.mxu0 %v3628_v46 }
 0x56e   :  { %v3455_v14 = vpop.f32.mrf.mxu1 }
 0x56f   :  { %v3467_v43 = vmul.f32 %v3455_v14, %v3229_v19 }
 0x575   :  { %v3529_v20 = vpop.f32.mrf.mxu2 }
 0x576   :  { %v3458_v9 = vpop.f32.mrf.mxu1 }
 0x577   :  { %v3468_v53 = vmul.f32 %v3458_v9, %v3232_v44 }
 0x57d   :  { %v3532_v1 = vpop.f32.mrf.mxu2 }
 0x57e   :  { %v3461_v5 = vpop.f32.mrf.mxu1 }
 0x57f   :  { %v3469_v0 = vmul.f32 %v3461_v5, %v3235_v59 }
 0x586   :  { %v3464_v21 = vpop.f32.mrf.mxu1 }
 0x587   :  { %v3470_v60 = vmul.f32 %v3464_v21, %v3238_v61  ;;  %v3625_v21 = vperm.slane %v5727_v55, 2 }
 0x589   :  { %3483 = vmatpush.xpose.msrb.mxu3 %v3470_v60 }
 0x58d   :  { %3484 = vmatpush.xpose.msrb.mxu3 %v3469_v0 }
 0x591   :  { %3485 = vmatpush.xpose.msrb.mxu3 %v3468_v53 }
 0x595   :  { %3486 = vmatpush.xpose.msrb.mxu3 %v3467_v43 }
 0x598   :  { %3860 = vmatmul.msk.f32.vlgmr.msrb.gmra.mxu3 %vm5546_vm15, %v5801_v50  ;;  %vm3582_vm15 = vweird.f32 %v3920_v39 }
 0x599   :  { %v3583_v7 = vsel %vm3582_vm15, %v3920_v39, %v3581_v36  ;;  %3872 = vmatpush.msra.mxu3 %v3631_v22 }
 0x59b   :  { %3873 = vmatpush.msra.mxu3 %v3630_v56 }
 0x59d   :  { %3874 = vmatpush.msra.mxu3 %v3629_v40 }
 0x59f   :  { %3875 = vmatpush.msra.mxu3 %v3628_v46 }
 0x5a0   :  { %3861 = vmatmul.msk.f32.gmra.mxu3 %vm5523_vm1, %v5801_v50  ;;  %v3539_v50 = vperm.slane %v5727_v55, 0  ;;  %vm5812_vm1 = vmmov %vm5810_vm4 }
 0x5a1   :  { %vm5813_vm0 = vmmov %vm5812_vm1 }
 0x5a2   :  { %vm5814_vm7 = vmmov %vm5813_vm0 }
 0x5a3   :  { %vm5815_vm10 = vmmov %vm5813_vm0 }
 0x5a4   :  { %vm5816_vm9 = vmmov %vm5813_vm0 }
 0x5a5   :  { %vm5817_vm3 = vmmov %vm5813_vm0 }
 0x5a6   :  { %vm5818_vm13 = vmmov %vm5813_vm0 }
 0x61b   :  { %v3488_v6 = vpop.f32.mrf.mxu3 }
 0x61c   :  { %3868 = vmatmul.msk.f32.vlgmr.msra.gmra.mxu0 %vm5810_vm4, %v3488_v6  ;;  %vm5819_vm4 = vmmov %vm5813_vm0 }
 0x623   :  { %v3491_v17 = vpop.f32.mrf.mxu3 }
 0x624   :  { %3869 = vmatmul.msk.f32.gmra.mxu0 %vm5811_vm5, %v3491_v17 }
 0x699   :  { %v3563_v30 = vpop.f32.mrf.mxu0 }
 0x69a   :  { %v3564_v3 = vadd.f32 %v3563_v30, %v3539_v50 }
 0x69c   :  { %v3569_v58 = vadd.f32 %v3564_v3, %v3529_v20 }
 0x69e   :  { %v3571_v62 = vsel %vm5812_vm1, %v3569_v58, 0.0 }
 0x69f   :  { %3572 = vadd.xlane.f32.xlu2 %v3571_v62 }
 0x6a1   :  { %v3566_v48 = vpop.f32.mrf.mxu0 }
 0x6a2   :  { %v3567_v54 = vadd.f32 %v3566_v48, %v3539_v50 }
 0x6a4   :  { %v3570_v18 = vadd.f32 %v3567_v54, %v3532_v1 }
 0x6a6   :  { %v3574_v23 = vsel %vm5813_vm0, %v3570_v18, 0.0 }
 0x6a7   :  { %3575 = vadd.xlane.f32.xlu1 %v3574_v23 }
 0x712   :  { %v3573_v11 = vpop.xlane.xlu2 %3572 }
 0x713   :  { %v3584_v13 = vmul.f32 %v3583_v7, %v3573_v11 }
 0x715   :  { %v3586_v10 = vsub.f32 %v3569_v58, %v3584_v13 }
 0x717   :  { %v3588_v16 = vmul.f32 %v3586_v10, %v3586_v10 }
 0x719   :  { %v3590_v25 = vsel %vm5815_vm10, %v3588_v16, 0.0 }
 0x71a   :  { %v3576_v34 = vpop.xlane.xlu1 %3575 }
 0x71b   :  { %v3585_v41 = vmul.f32 %v3583_v7, %v3576_v34 }
 0x71d   :  { %v3587_v57 = vsub.f32 %v3570_v18, %v3585_v41 }
 0x71f   :  { %v3589_v63 = vmul.f32 %v3587_v57, %v3587_v57 }
 0x721   :  { %v3593_v33 = vsel %vm5814_vm7, %v3589_v63, 0.0 }
 0x722   :  { %3594 = vadd.xlane.f32.xlu0 %v3593_v33 }
 0x72a   :  { %3591 = vadd.xlane.f32.xlu0 %v3590_v25 }
 0x795   :  { %v3595_v28 = vpop.xlane.xlu0 %3594 }
 0x796   :  { %v3597_v4 = vmul.f32 %v3595_v28, %v3583_v7 }
 0x798   :  { %v3599_v15 = vadd.f32 1e-05, %v3597_v4 }
 0x79a   :  { %3921 = vrsqrt.f32 %v3599_v15  ;;  %vm3616_vm12 = vweird.f32 %v3599_v15 }
 0x79d   :  { %v3592_v26 = vpop.xlane.xlu0 %3591 }
 0x79e   :  { %v3596_v47 = vmul.f32 %v3592_v26, %v3583_v7 }
 0x7a0   :  { %v3922_v14 = vpop.eup %3921  ;;  %v3598_v9 = vadd.f32 1e-05, %v3596_v47 }
 0x7a1   :  { %v3611_v32 = vmul.f32 %v3922_v14, %v3599_v15  ;;  %vm3617_vm2 = vweird.f32 %v3922_v14 }
 0x7a2   :  { %3923 = vrsqrt.f32 %v3598_v9  ;;  %vm3618_vm6 = vmor %vm3616_vm12, %vm3617_vm2  ;;  %vm3606_vm11 = vweird.f32 %v3598_v9 }
 0x7a3   :  { %v3612_v5 = vmul.f32 %v3922_v14, %v3611_v32 }
 0x7a5   :  { %v3613_v35 = vmul.f32 0.5, %v3612_v5 }
 0x7a7   :  { %v3614_v45 = vsub.f32 1.5, %v3613_v35 }
 0x7a8   :  { %v3924_v31 = vpop.eup %3923 }
 0x7a9   :  { %v3615_v52 = vmul.f32 %v3922_v14, %v3614_v45  ;;  %v3601_v12 = vmul.f32 %v3924_v31, %v3598_v9  ;;  %vm3607_vm8 = vweird.f32 %v3924_v31 }
 0x7aa   :  { %vm3608_vm14 = vmor %vm3606_vm11, %vm3607_vm8 }
 0x7ab   :  { %v3619_v42 = vsel %vm3618_vm6, %v3922_v14, %v3615_v52  ;;  %v3602_v61 = vmul.f32 %v3924_v31, %v3601_v12 }
 0x7ac   :  { %v3621_v60 = vmul.f32 %v3619_v42, %v3587_v57 }
 0x7ad   :  { %v3603_v59 = vmul.f32 0.5, %v3602_v61 }
 0x7ae   :  { %v3624_v51 = vmul.f32 %v3622_v29, %v3621_v60 }
 0x7af   :  { %v3604_v0 = vsub.f32 1.5, %v3603_v59 }
 0x7b0   :  { %v3627_v44 = vadd.f32 %v3625_v21, %v3624_v51 }
 0x7b1   :  { %v3605_v2 = vmul.f32 %v3924_v31, %v3604_v0 }
 0x7b2   :  { %3871 = vmatmul.msk.f32.vlgmr.msra.gmra.mxu3 %vm5816_vm9, %v3627_v44 }
 0x7b3   :  { %v3609_v53 = vsel %vm3608_vm14, %v3924_v31, %v3605_v2 }
 0x7b4   :  { %v3620_v19 = vmul.f32 %v3609_v53, %v3586_v10 }
 0x7b6   :  { %v3623_v43 = vmul.f32 %v3622_v29, %v3620_v19 }
 0x7b8   :  { %v3626_v37 = vadd.f32 %v3625_v21, %v3623_v43 }
 0x7ba   :  { %3870 = vmatmul.msk.f32.vlgmr.msrb.gmra.mxu0 %vm5817_vm3, %v3626_v37 }
 0x835   :  { %v3662_v6 = vpop.f32.mrf.mxu3 }
 0x836   :  { %v3663_v17 = vadd.f32 %v3910_v27, %v3662_v6 }
 0x837   :  { %v3659_v55 = vpop.f32.mrf.mxu0 }
 0x838   :  { %3666 = vst.msk [vmem:[#allocation13 + $0x8] sm:$0xff] %vm5818_vm13, %v3663_v17  ;;  %v3660_v50 = vadd.f32 %v3910_v27, %v3659_v55 }
 0x83a   :  { %3665 = vst.msk [vmem:[#allocation13] sm:$0xff] %vm5819_vm4, %v3660_v50 }
 0x83b   :  { %3679 = dma.vmem_to_hbm [thread:$0]  %s3672_s20, 256, %s3674_s22, [#allocation4], %s4114_s1, %s4114_s1, %s4115_s26  }
 0x83c   :  { %4110 = dma.done.wait [#allocation4], 256  }
 0x83d   :  { %4111 = vsyncadd [#allocation4], 4294967040 }
 0x83e   :  { %3684 = vsyncpa [#allocation3], 1 }
 0x83f   :  { %3685 = vsyncpa [#allocation6], 1 }
 0x840   :  { %3686 = vsyncpa [#allocation9], 1 }
 0x841   :  { %3687 = vsyncpa [#allocation12], 1 }
 0x842   :  { %3688 = vsyncpa [#allocation4], 1 }

</bundles_post_ra>
